<compile_context>
chip_gen: v7x
topology: tpu7x:2x2x1
jax: 0.10.0
libtpu: 0.0.40
codegen_flags: <defaults>
</compile_context>

<pallas_src>
import functools

import jax
import jax.numpy as jnp
import numpy as np
from jax.experimental import pallas as pl
from jax.experimental.pallas import tpu as pltpu


# ----------------------------------------------------------------------------
# Small helpers
# ----------------------------------------------------------------------------
def _round_up(x, m):
    return (x + m - 1) // m * m


def _largest_divisor_leq(n, cap, multiple):
    """Largest d <= cap with d % multiple == 0 and n % d == 0 (multiple must divide n)."""
    best = multiple
    d = multiple
    lim = min(n, cap)
    while d <= lim:
        if n % d == 0:
            best = d
        d += multiple
    return best


def _choose_time_block(T, Bp):
    """Pick time-block length Tt and padded sequence length T_pad (Tt divides T_pad)."""
    cap = max(1, min(64, max(1, 256 // Bp)))   # target Tt*Bp >= 256 rows, Tt <= 64
    cap = min(cap, T)
    best = _largest_divisor_leq(T, cap, 1)
    if best * Bp >= 128 or best == T:
        return best, T                          # no padding needed
    # No decent divisor (e.g. prime T): pad T to a multiple of a block size that
    # minimizes padding waste; padded timesteps are masked inside the kernel.
    lo = max(1, min(cap, 128 // max(Bp, 1)))
    tt = min(range(lo, cap + 1), key=lambda c: (_round_up(T, c) - T, -c))
    return tt, _round_up(T, tt)


def _vmem_limit(footprint_bytes):
    # Footprint + headroom for compiler-internal scratch; capped safely below v7x's
    # 64 MiB physical VMEM (also always legal on v5e/v6e's 128 MiB).
    return int(min(max(footprint_bytes * 1.25 + (4 << 20), 16 << 20), 56 << 20))


def _pad_gate_cols(w, H, Hp):
    """(rows, 4H) -> (rows, 4Hp), padding each of the 4 gate blocks to Hp columns."""
    rows = w.shape[0]
    w4 = w.reshape(rows, 4, H)
    w4 = jnp.pad(w4, ((0, 0), (0, 0), (0, Hp - H)))
    return w4.reshape(rows, 4 * Hp)


# ----------------------------------------------------------------------------
# Pallas kernel 1: bidirectional LSTM recurrence, time-blocked, directions fused.
# ----------------------------------------------------------------------------
def _bilstm_kernel(x_f_ref, x_b_ref,
                   wih_f_ref, whh_f_ref, b_f_ref,
                   wih_b_ref, whh_b_ref, b_b_ref,
                   out_f_ref, out_b_ref,
                   h_f, c_f, h_b, c_b, gx_f, gx_b,
                   *, Tt, Bp, Hp, T_real, masked):
    pid = pl.program_id(0)
    nT = pl.num_programs(0)

    @pl.when(pid == 0)
    def _():
        h_f[...] = jnp.zeros_like(h_f)
        c_f[...] = jnp.zeros_like(c_f)
        h_b[...] = jnp.zeros_like(h_b)
        c_b[...] = jnp.zeros_like(c_b)

    # Batched input projection for the whole time block (hoisted out of the recurrence).
    gx_f[...] = (jnp.dot(x_f_ref[...], wih_f_ref[...],
                         preferred_element_type=jnp.float32) + b_f_ref[...])
    gx_b[...] = (jnp.dot(x_b_ref[...], wih_b_ref[...],
                         preferred_element_type=jnp.float32) + b_b_ref[...])

    def gates_to_hc(gates, c):
        i = jax.nn.sigmoid(gates[:, 0 * Hp:1 * Hp])
        f = jax.nn.sigmoid(gates[:, 1 * Hp:2 * Hp])
        g = jnp.tanh(gates[:, 2 * Hp:3 * Hp])
        o = jax.nn.sigmoid(gates[:, 3 * Hp:4 * Hp])
        c_new = f * c + i * g
        h_new = o * jnp.tanh(c_new)
        return h_new, c_new

    def step(tt, carry):
        hf, cf, hb, cb = carry
        tb = Tt - 1 - tt
        row_f = pl.multiple_of(tt * Bp, Bp)
        row_b = pl.multiple_of(tb * Bp, Bp)
        # Issue both directions' recurrent matmuls back-to-back: the two serial
        # chains are independent, so the MXU work of one overlaps the EUP/VPU
        # gate math of the other.
        gates_f = gx_f[pl.ds(row_f, Bp), :] + jnp.dot(
            hf, whh_f_ref[...], preferred_element_type=jnp.float32)
        gates_b = gx_b[pl.ds(row_b, Bp), :] + jnp.dot(
            hb, whh_b_ref[...], preferred_element_type=jnp.float32)
        hf_new, cf_new = gates_to_hc(gates_f, cf)
        hb_new, cb_new = gates_to_hc(gates_b, cb)
        if masked:
            # Padded timesteps (forward-time index >= T_real) must not touch the
            # carried state (critical for the backward direction, which sees the
            # padded tail first).  Their output rows are stripped by the wrapper.
            tg_f = pid * Tt + tt
            tg_b = (nT - 1 - pid) * Tt + tb
            vf = tg_f < T_real
            vb = tg_b < T_real
            hf_new = jnp.where(vf, hf_new, hf)
            cf_new = jnp.where(vf, cf_new, cf)
            hb_new = jnp.where(vb, hb_new, hb)
            cb_new = jnp.where(vb, cb_new, cb)
        out_f_ref[pl.ds(row_f, Bp), :] = hf_new
        out_b_ref[pl.ds(row_b, Bp), :] = hb_new
        return hf_new, cf_new, hb_new, cb_new

    hf, cf, hb, cb = jax.lax.fori_loop(
        0, Tt, step, (h_f[...], c_f[...], h_b[...], c_b[...]),
        unroll=min(Tt, 8))
    h_f[...] = hf
    c_f[...] = cf
    h_b[...] = hb
    c_b[...] = cb


def bidirectional_lstm_pallas(x2d, wih_f, whh_f, b_f, wih_b, whh_b, b_b,
                              *, T_pad, T_real, Tt, Bp, Hp, nIn):
    """x2d: (T_pad*Bp, nIn) f32 (time-major, batch padded).  Returns (out_f, out_b),
    each (T_pad*Bp, Hp) f32, stored in forward time order for both directions."""
    nT = T_pad // Tt
    rows_blk = Tt * Bp

    def resident(shape):
        # Constant index map => loaded once and kept resident; single-buffered.
        return pl.BlockSpec(shape, lambda t: (0, 0), pipeline_mode=pl.Buffered(1))

    in_specs = [
        pl.BlockSpec((rows_blk, nIn), lambda t: (t, 0)),           # x, forward block order
        pl.BlockSpec((rows_blk, nIn), lambda t: (nT - 1 - t, 0)),  # x, reverse block order
        resident((nIn, 4 * Hp)),                                   # W_ih forward
        resident((Hp, 4 * Hp)),                                    # W_hh forward
        resident((1, 4 * Hp)),                                     # bias forward
        resident((nIn, 4 * Hp)),                                   # W_ih backward
        resident((Hp, 4 * Hp)),                                    # W_hh backward
        resident((1, 4 * Hp)),                                     # bias backward
    ]
    out_specs = [
        pl.BlockSpec((rows_blk, Hp), lambda t: (t, 0)),            # forward hidden
        pl.BlockSpec((rows_blk, Hp), lambda t: (nT - 1 - t, 0)),   # backward hidden
    ]
    scratch_shapes = (
        [pltpu.VMEM((Bp, Hp), jnp.float32)] * 4               # h_f, c_f, h_b, c_b carries
        + [pltpu.VMEM((rows_blk, 4 * Hp), jnp.float32)] * 2   # gx_f, gx_b
    )
    grid_spec = pltpu.PrefetchScalarGridSpec(
        num_scalar_prefetch=0,
        grid=(nT,),
        in_specs=in_specs,
        out_specs=out_specs,
        scratch_shapes=scratch_shapes,
    )
    out_shape = (
        jax.ShapeDtypeStruct((T_pad * Bp, Hp), jnp.float32),
        jax.ShapeDtypeStruct((T_pad * Bp, Hp), jnp.float32),
    )

    f32 = 4
    footprint = f32 * (
        2 * (nIn * 4 * Hp + Hp * 4 * Hp + 4 * Hp)   # weights (single-buffered)
        + 2 * 2 * rows_blk * nIn                    # x blocks (double-buffered)
        + 2 * 2 * rows_blk * Hp                     # output blocks (double-buffered)
        + 4 * Bp * Hp + 2 * rows_blk * 4 * Hp)      # scratch
    flops = 2 * 2 * T_pad * Bp * 4 * Hp * (nIn + Hp)
    transcendentals = 2 * T_pad * Bp * Hp * 5
    bytes_accessed = f32 * (2 * T_pad * Bp * nIn
                            + 2 * (nIn * 4 * Hp + Hp * 4 * Hp + 4 * Hp)
                            + 2 * T_pad * Bp * Hp)

    kernel = functools.partial(_bilstm_kernel, Tt=Tt, Bp=Bp, Hp=Hp,
                               T_real=T_real, masked=(T_pad != T_real))
    return pl.pallas_call(
        kernel,
        grid_spec=grid_spec,
        out_shape=out_shape,
        compiler_params=pltpu.CompilerParams(
            dimension_semantics=("arbitrary",),       # recurrence: must stay sequential
            vmem_limit_bytes=_vmem_limit(footprint)),
        cost_estimate=pl.CostEstimate(flops=flops,
                                      transcendentals=transcendentals,
                                      bytes_accessed=bytes_accessed),
    )(x2d, x2d, wih_f, whh_f, b_f, wih_b, whh_b, b_b)


# ----------------------------------------------------------------------------
# Pallas kernel 2: fused embedding Linear.
#   out = concat(out_f, out_b) @ W + b   (single long-K matmul per row tile,
#   concat done in VMEM so the recurrent output is never concatenated in HBM).
# ----------------------------------------------------------------------------
def _emb_kernel(hf_ref, hb_ref, w_ref, b_ref, o_ref):
    h_cat = jnp.concatenate([hf_ref[...], hb_ref[...]], axis=-1)
    o_ref[...] = (jnp.dot(h_cat, w_ref[...], preferred_element_type=jnp.float32)
                  + b_ref[...])


def embedding_pallas(hf, hb, w_cat, b):
    """hf, hb: (N, Hp); w_cat: (2Hp, nOutp); b: (1, nOutp) -> (N, nOutp)."""
    N, Hp = hf.shape
    nOutp = w_cat.shape[1]
    RT = _largest_divisor_leq(N, 512, 8)     # row tile (multiple of 8, divides N)
    grid = (N // RT,)

    f32 = 4
    footprint = f32 * (2 * 2 * RT * Hp + 2 * Hp * nOutp + nOutp + 2 * RT * nOutp)
    flops = 2 * N * 2 * Hp * nOutp
    bytes_accessed = f32 * (2 * N * Hp + 2 * Hp * nOutp + N * nOutp)

    return pl.pallas_call(
        _emb_kernel,
        out_shape=jax.ShapeDtypeStruct((N, nOutp), jnp.float32),
        grid=grid,
        in_specs=[
            pl.BlockSpec((RT, Hp), lambda i: (i, 0)),
            pl.BlockSpec((RT, Hp), lambda i: (i, 0)),
            pl.BlockSpec((2 * Hp, nOutp), lambda i: (0, 0),
                         pipeline_mode=pl.Buffered(1)),
            pl.BlockSpec((1, nOutp), lambda i: (0, 0),
                         pipeline_mode=pl.Buffered(1)),
        ],
        out_specs=pl.BlockSpec((RT, nOutp), lambda i: (i, 0)),
        compiler_params=pltpu.CompilerParams(
            dimension_semantics=("parallel",),
            vmem_limit_bytes=_vmem_limit(footprint)),
        cost_estimate=pl.CostEstimate(flops=flops, transcendentals=0,
                                      bytes_accessed=bytes_accessed),
    )(hf, hb, w_cat, b)


# ----------------------------------------------------------------------------
# Full module forward (padding / glue in plain JAX).
# ----------------------------------------------------------------------------
def bidirectional_lstm_module(x, params):
    T, B, nIn = x.shape
    H = params["whh_f"].shape[0]
    nOut = params["w_emb"].shape[1]

    Hp = _round_up(H, 128)        # lane-dense hidden (per gate block)
    Bp = _round_up(B, 8)          # sublane-dense batch
    nOutp = _round_up(nOut, 128)  # lane-dense linear output
    Tt, T_pad = _choose_time_block(T, Bp)

    # Pad input (time + batch), flatten to 2D (time-major rows).
    x_p = jnp.pad(x, ((0, T_pad - T), (0, Bp - B), (0, 0)))
    x2d = x_p.reshape(T_pad * Bp, nIn)

    # Pad LSTM weights/biases per gate block (pad columns/rows are zero so padded
    # hidden/cell lanes stay exactly zero through the recurrence; relies on zero
    # initial h/c).
    wih_f = _pad_gate_cols(params["wih_f"], H, Hp)                                  # (nIn, 4Hp)
    whh_f = _pad_gate_cols(jnp.pad(params["whh_f"], ((0, Hp - H), (0, 0))), H, Hp)  # (Hp, 4Hp)
    b_f = _pad_gate_cols(params["b_f"], H, Hp)                                      # (1, 4Hp)
    wih_b = _pad_gate_cols(params["wih_b"], H, Hp)
    whh_b = _pad_gate_cols(jnp.pad(params["whh_b"], ((0, Hp - H), (0, 0))), H, Hp)
    b_b = _pad_gate_cols(params["b_b"], H, Hp)

    # Embedding Linear: split, pad, and re-stack so the kernel does a single
    # (RT, 2Hp) x (2Hp, nOutp) matmul over concat(h_f, h_b) without an HBM concat.
    w_emb = params["w_emb"]
    w_f = jnp.pad(w_emb[:H], ((0, Hp - H), (0, nOutp - nOut)))
    w_b = jnp.pad(w_emb[H:], ((0, Hp - H), (0, nOutp - nOut)))
    w_cat = jnp.concatenate([w_f, w_b], axis=0)                  # (2Hp, nOutp)
    b_e = jnp.pad(params["b_emb"], ((0, 0), (0, nOutp - nOut)))

    out_f, out_b = bidirectional_lstm_pallas(
        x2d, wih_f, whh_f, b_f, wih_b, whh_b, b_b,
        T_pad=T_pad, T_real=T, Tt=Tt, Bp=Bp, Hp=Hp, nIn=nIn)

    out2d = embedding_pallas(out_f, out_b, w_cat, b_e)           # (T_pad*Bp, nOutp)
    out = out2d.reshape(T_pad, Bp, nOutp)[:T, :B, :nOut]         # strip padding
    return out


# ----------------------------------------------------------------------------
# Pure-JAX reference (lax.scan) for correctness checking.
# ----------------------------------------------------------------------------
def _lstm_ref(x, wih, whh, bias, reverse):
    T, B, _ = x.shape
    H = whh.shape[0]

    def step(carry, xt):
        h, c = carry
        gates = xt @ wih + h @ whh + bias
        i = jax.nn.sigmoid(gates[:, :H])
        f = jax.nn.sigmoid(gates[:, H:2 * H])
        g = jnp.tanh(gates[:, 2 * H:3 * H])
        o = jax.nn.sigmoid(gates[:, 3 * H:])
        c = f * c + i * g
        h = o * jnp.tanh(c)
        return (h, c), h

    init = (jnp.zeros((B, H), jnp.float32), jnp.zeros((B, H), jnp.float32))
    _, hs = jax.lax.scan(step, init, x, reverse=reverse)
    return hs


def reference_module(x, params):
    T, B, _ = x.shape
    hf = _lstm_ref(x, params["wih_f"], params["whh_f"], params["b_f"][0], False)
    hb = _lstm_ref(x, params["wih_b"], params["whh_b"], params["b_b"][0], True)
    rec = jnp.concatenate([hf, hb], axis=-1)
    out = rec.reshape(T * B, -1) @ params["w_emb"] + params["b_emb"][0]
    return out.reshape(T, B, -1)


# ----------------------------------------------------------------------------
# Deterministic parameter init (PyTorch-style uniform(-1/sqrt(H), 1/sqrt(H))).
# Weights stored transposed vs. PyTorch: W_ih (nIn, 4H), W_hh (H, 4H), gates [i,f,g,o].
# ----------------------------------------------------------------------------
def init_params(key, nIn, nHidden, nOut):
    H = nHidden
    k = 1.0 / np.sqrt(H)
    keys = jax.random.split(key, 11)

    def u(kk, shape, scale):
        return jax.random.uniform(kk, shape, jnp.float32, -scale, scale)

    params = {
        "wih_f": u(keys[0], (nIn, 4 * H), k),
        "whh_f": u(keys[1], (H, 4 * H), k),
        "b_f": (u(keys[2], (1, 4 * H), k) + u(keys[3], (1, 4 * H), k)),  # b_ih + b_hh
        "wih_b": u(keys[4], (nIn, 4 * H), k),
        "whh_b": u(keys[5], (H, 4 * H), k),
        "b_b": (u(keys[6], (1, 4 * H), k) + u(keys[7], (1, 4 * H), k)),
        "w_emb": u(keys[8], (2 * H, nOut), 1.0 / np.sqrt(2 * H)),
        "b_emb": u(keys[9], (1, nOut), 1.0 / np.sqrt(2 * H)),
    }
    return params


if __name__ == "__main__":
    T, B, nIn, nHidden, nOut = 8, 2, 32, 32, 16

    key = jax.random.PRNGKey(0)
    kx, kp = jax.random.split(key)
    x = jax.random.normal(kx, (T, B, nIn), jnp.float32)
    params = init_params(kp, nIn, nHidden, nOut)

    fwd = jax.jit(bidirectional_lstm_module)
    out = jax.block_until_ready(fwd(x, params))
    ref = jax.block_until_ready(reference_module(x, params))

    assert out.shape == (T, B, nOut), out.shape
    np.testing.assert_allclose(np.asarray(out), np.asarray(ref),
                               rtol=1e-4, atol=1e-5)
    print("KERNEL_OK")
</pallas_src>

<mosaic_0001>
module attributes {stable_mosaic.version = 11 : i64} {
  func.func @_emb_kernel(%arg0: i32, %arg1: memref<64x128xf32, #tpu.memory_space<vmem>>, %arg2: memref<64x128xf32, #tpu.memory_space<vmem>>, %arg3: memref<256x128xf32, #tpu.memory_space<vmem>>, %arg4: memref<1x128xf32, #tpu.memory_space<vmem>>, %arg5: memref<64x128xf32, #tpu.memory_space<vmem>>) attributes {dimension_semantics = [#tpu.dimension_semantics<parallel>], iteration_bounds = array<i64: 1>, scalar_prefetch = 0 : i64, scratch_operands = 0 : i64, tpu.core_type = #tpu.core_type<tc>, window_params = [{transform_indices = @transform_0, window_bounds = array<i64: 64, 128>}, {transform_indices = @transform_1, window_bounds = array<i64: 64, 128>}, {pipeline_mode = #tpu.pipeline_mode<synchronous>, transform_indices = @transform_2, window_bounds = array<i64: 256, 128>}, {pipeline_mode = #tpu.pipeline_mode<synchronous>, transform_indices = @transform_3, window_bounds = array<i64: 1, 128>}, {transform_indices = @transform_4, window_bounds = array<i64: 64, 128>}]} {
    %c0 = arith.constant 0 : index
    %c0_0 = arith.constant 0 : index
    %0 = vector.load %arg1[%c0, %c0_0] : memref<64x128xf32, #tpu.memory_space<vmem>>, vector<64x128xf32>
    %c0_1 = arith.constant 0 : index
    %c0_2 = arith.constant 0 : index
    %1 = vector.load %arg2[%c0_1, %c0_2] : memref<64x128xf32, #tpu.memory_space<vmem>>, vector<64x128xf32>
    %2 = tpu.concatenate %0, %1 in 1 : vector<64x128xf32>, vector<64x128xf32> -> vector<64x256xf32>
    %c0_3 = arith.constant 0 : index
    %c0_4 = arith.constant 0 : index
    %3 = vector.load %arg3[%c0_3, %c0_4] : memref<256x128xf32, #tpu.memory_space<vmem>>, vector<256x128xf32>
    %cst = arith.constant dense<0.000000e+00> : vector<64x128xf32>
    %4 = tpu.matmul %2, %3, %cst {dimension_numbers = #tpu.dot_dimension_numbers<[1], [0], [0], [1], [0, 0, 1, 1], [], []>} : vector<64x256xf32>, vector<256x128xf32>, vector<64x128xf32> -> vector<64x128xf32>
    %c0_5 = arith.constant 0 : index
    %c0_6 = arith.constant 0 : index
    %5 = vector.load %arg4[%c0_5, %c0_6] : memref<1x128xf32, #tpu.memory_space<vmem>>, vector<1x128xf32>
    %6 = vector.broadcast %5 : vector<1x128xf32> to vector<64x128xf32>
    %7 = arith.addf %4, %6 : vector<64x128xf32>
    %c0_7 = arith.constant 0 : index
    %c0_8 = arith.constant 0 : index
    %8 = vector.load %arg5[%c0_7, %c0_8] : memref<64x128xf32, #tpu.memory_space<vmem>>, vector<64x128xf32>
    tpu.vector_store %arg5[%c0_7, %c0_8], %7 {strides = array<i32>} : memref<64x128xf32, #tpu.memory_space<vmem>>, vector<64x128xf32>,
    return
  }
  func.func @transform_0(%arg0: i32) -> (i32, i32) {
    %c0_i32 = arith.constant 0 : i32
    %c0_i32_0 = arith.constant 0 : i32
    return %arg0, %c0_i32 : i32, i32
  }
  func.func @transform_1(%arg0: i32) -> (i32, i32) {
    %c0_i32 = arith.constant 0 : i32
    %c0_i32_0 = arith.constant 0 : i32
    return %arg0, %c0_i32 : i32, i32
  }
  func.func @transform_2(%arg0: i32) -> (i32, i32) {
    %c0_i32 = arith.constant 0 : i32
    %c0_i32_0 = arith.constant 0 : i32
    %c0_i32_1 = arith.constant 0 : i32
    return %c0_i32, %c0_i32_0 : i32, i32
  }
  func.func @transform_3(%arg0: i32) -> (i32, i32) {
    %c0_i32 = arith.constant 0 : i32
    %c0_i32_0 = arith.constant 0 : i32
    %c0_i32_1 = arith.constant 0 : i32
    return %c0_i32, %c0_i32_0 : i32, i32
  }
  func.func @transform_4(%arg0: i32) -> (i32, i32) {
    %c0_i32 = arith.constant 0 : i32
    %c0_i32_0 = arith.constant 0 : i32
    return %arg0, %c0_i32 : i32, i32
  }
}

module attributes {stable_mosaic.version = 11 : i64} {
  func.func @_bilstm_kernel(%arg0: i32, %arg1: memref<64x32xf32, #tpu.memory_space<vmem>>, %arg2: memref<64x32xf32, #tpu.memory_space<vmem>>, %arg3: memref<32x512xf32, #tpu.memory_space<vmem>>, %arg4: memref<128x512xf32, #tpu.memory_space<vmem>>, %arg5: memref<1x512xf32, #tpu.memory_space<vmem>>, %arg6: memref<32x512xf32, #tpu.memory_space<vmem>>, %arg7: memref<128x512xf32, #tpu.memory_space<vmem>>, %arg8: memref<1x512xf32, #tpu.memory_space<vmem>>, %arg9: memref<64x128xf32, #tpu.memory_space<vmem>>, %arg10: memref<64x128xf32, #tpu.memory_space<vmem>>, %arg11: memref<8x128xf32, #tpu.memory_space<vmem>>, %arg12: memref<8x128xf32, #tpu.memory_space<vmem>>, %arg13: memref<8x128xf32, #tpu.memory_space<vmem>>, %arg14: memref<8x128xf32, #tpu.memory_space<vmem>>, %arg15: memref<64x512xf32, #tpu.memory_space<vmem>>, %arg16: memref<64x512xf32, #tpu.memory_space<vmem>>) attributes {dimension_semantics = [#tpu.dimension_semantics<arbitrary>], iteration_bounds = array<i64: 1>, scalar_prefetch = 0 : i64, scratch_operands = 6 : i64, tpu.core_type = #tpu.core_type<tc>, window_params = [{transform_indices = @transform_0, window_bounds = array<i64: 64, 32>}, {transform_indices = @transform_1, window_bounds = array<i64: 64, 32>}, {pipeline_mode = #tpu.pipeline_mode<synchronous>, transform_indices = @transform_2, window_bounds = array<i64: 32, 512>}, {pipeline_mode = #tpu.pipeline_mode<synchronous>, transform_indices = @transform_3, window_bounds = array<i64: 128, 512>}, {pipeline_mode = #tpu.pipeline_mode<synchronous>, transform_indices = @transform_4, window_bounds = array<i64: 1, 512>}, {pipeline_mode = #tpu.pipeline_mode<synchronous>, transform_indices = @transform_5, window_bounds = array<i64: 32, 512>}, {pipeline_mode = #tpu.pipeline_mode<synchronous>, transform_indices = @transform_6, window_bounds = array<i64: 128, 512>}, {pipeline_mode = #tpu.pipeline_mode<synchronous>, transform_indices = @transform_7, window_bounds = array<i64: 1, 512>}, {transform_indices = @transform_8, window_bounds = array<i64: 64, 128>}, {transform_indices = @transform_9, window_bounds = array<i64: 64, 128>}]} {
    %c0_i32 = arith.constant 0 : i32
    %0 = arith.cmpi eq, %arg0, %c0_i32 : i32
    %1 = arith.extui %0 : i1 to i32
    %c0_i32_0 = arith.constant 0 : i32
    %2 = arith.cmpi ne, %1, %c0_i32_0 : i32
    scf.if %2 {
      %cst_186 = arith.constant 0.000000e+00 : f32
      %577 = vector.broadcast %cst_186 : f32 to vector<8x128xf32>
      %c0_187 = arith.constant 0 : index
      %c0_188 = arith.constant 0 : index
      %578 = vector.load %arg11[%c0_187, %c0_188] : memref<8x128xf32, #tpu.memory_space<vmem>>, vector<8x128xf32>
      tpu.vector_store %arg11[%c0_187, %c0_188], %577 {strides = array<i32>} : memref<8x128xf32, #tpu.memory_space<vmem>>, vector<8x128xf32>,
      %cst_189 = arith.constant 0.000000e+00 : f32
      %579 = vector.broadcast %cst_189 : f32 to vector<8x128xf32>
      %c0_190 = arith.constant 0 : index
      %c0_191 = arith.constant 0 : index
      %580 = vector.load %arg12[%c0_190, %c0_191] : memref<8x128xf32, #tpu.memory_space<vmem>>, vector<8x128xf32>
      tpu.vector_store %arg12[%c0_190, %c0_191], %579 {strides = array<i32>} : memref<8x128xf32, #tpu.memory_space<vmem>>, vector<8x128xf32>,
      %cst_192 = arith.constant 0.000000e+00 : f32
      %581 = vector.broadcast %cst_192 : f32 to vector<8x128xf32>
      %c0_193 = arith.constant 0 : index
      %c0_194 = arith.constant 0 : index
      %582 = vector.load %arg13[%c0_193, %c0_194] : memref<8x128xf32, #tpu.memory_space<vmem>>, vector<8x128xf32>
      tpu.vector_store %arg13[%c0_193, %c0_194], %581 {strides = array<i32>} : memref<8x128xf32, #tpu.memory_space<vmem>>, vector<8x128xf32>,
      %cst_195 = arith.constant 0.000000e+00 : f32
      %583 = vector.broadcast %cst_195 : f32 to vector<8x128xf32>
      %c0_196 = arith.constant 0 : index
      %c0_197 = arith.constant 0 : index
      %584 = vector.load %arg14[%c0_196, %c0_197] : memref<8x128xf32, #tpu.memory_space<vmem>>, vector<8x128xf32>
      tpu.vector_store %arg14[%c0_196, %c0_197], %583 {strides = array<i32>} : memref<8x128xf32, #tpu.memory_space<vmem>>, vector<8x128xf32>,
    } else {
    }
    %c0 = arith.constant 0 : index
    %c0_1 = arith.constant 0 : index
    %3 = vector.load %arg1[%c0, %c0_1] : memref<64x32xf32, #tpu.memory_space<vmem>>, vector<64x32xf32>
    %c0_2 = arith.constant 0 : index
    %c0_3 = arith.constant 0 : index
    %4 = vector.load %arg3[%c0_2, %c0_3] : memref<32x512xf32, #tpu.memory_space<vmem>>, vector<32x512xf32>
    %cst = arith.constant dense<0.000000e+00> : vector<64x512xf32>
    %5 = tpu.matmul %3, %4, %cst {dimension_numbers = #tpu.dot_dimension_numbers<[1], [0], [0], [1], [0, 0, 1, 1], [], []>} : vector<64x32xf32>, vector<32x512xf32>, vector<64x512xf32> -> vector<64x512xf32>
    %c0_4 = arith.constant 0 : index
    %c0_5 = arith.constant 0 : index
    %6 = vector.load %arg5[%c0_4, %c0_5] : memref<1x512xf32, #tpu.memory_space<vmem>>, vector<1x512xf32>
    %7 = vector.broadcast %6 : vector<1x512xf32> to vector<64x512xf32>
    %8 = arith.addf %5, %7 : vector<64x512xf32>
    %c0_6 = arith.constant 0 : index
    %c0_7 = arith.constant 0 : index
    %9 = vector.load %arg15[%c0_6, %c0_7] : memref<64x512xf32, #tpu.memory_space<vmem>>, vector<64x512xf32>
    tpu.vector_store %arg15[%c0_6, %c0_7], %8 {strides = array<i32>} : memref<64x512xf32, #tpu.memory_space<vmem>>, vector<64x512xf32>,
    %c0_8 = arith.constant 0 : index
    %c0_9 = arith.constant 0 : index
    %10 = vector.load %arg2[%c0_8, %c0_9] : memref<64x32xf32, #tpu.memory_space<vmem>>, vector<64x32xf32>
    %c0_10 = arith.constant 0 : index
    %c0_11 = arith.constant 0 : index
    %11 = vector.load %arg6[%c0_10, %c0_11] : memref<32x512xf32, #tpu.memory_space<vmem>>, vector<32x512xf32>
    %cst_12 = arith.constant dense<0.000000e+00> : vector<64x512xf32>
    %12 = tpu.matmul %10, %11, %cst_12 {dimension_numbers = #tpu.dot_dimension_numbers<[1], [0], [0], [1], [0, 0, 1, 1], [], []>} : vector<64x32xf32>, vector<32x512xf32>, vector<64x512xf32> -> vector<64x512xf32>
    %c0_13 = arith.constant 0 : index
    %c0_14 = arith.constant 0 : index
    %13 = vector.load %arg8[%c0_13, %c0_14] : memref<1x512xf32, #tpu.memory_space<vmem>>, vector<1x512xf32>
    %14 = vector.broadcast %13 : vector<1x512xf32> to vector<64x512xf32>
    %15 = arith.addf %12, %14 : vector<64x512xf32>
    %c0_15 = arith.constant 0 : index
    %c0_16 = arith.constant 0 : index
    %16 = vector.load %arg16[%c0_15, %c0_16] : memref<64x512xf32, #tpu.memory_space<vmem>>, vector<64x512xf32>
    tpu.vector_store %arg16[%c0_15, %c0_16], %15 {strides = array<i32>} : memref<64x512xf32, #tpu.memory_space<vmem>>, vector<64x512xf32>,
    %c0_17 = arith.constant 0 : index
    %c0_18 = arith.constant 0 : index
    %17 = vector.load %arg11[%c0_17, %c0_18] : memref<8x128xf32, #tpu.memory_space<vmem>>, vector<8x128xf32>
    %c0_19 = arith.constant 0 : index
    %c0_20 = arith.constant 0 : index
    %18 = vector.load %arg12[%c0_19, %c0_20] : memref<8x128xf32, #tpu.memory_space<vmem>>, vector<8x128xf32>
    %c0_21 = arith.constant 0 : index
    %c0_22 = arith.constant 0 : index
    %19 = vector.load %arg13[%c0_21, %c0_22] : memref<8x128xf32, #tpu.memory_space<vmem>>, vector<8x128xf32>
    %c0_23 = arith.constant 0 : index
    %c0_24 = arith.constant 0 : index
    %20 = vector.load %arg14[%c0_23, %c0_24] : memref<8x128xf32, #tpu.memory_space<vmem>>, vector<8x128xf32>
    %c0_i32_25 = arith.constant 0 : i32
    %c7_i32 = arith.constant 7 : i32
    %21 = arith.subi %c7_i32, %c0_i32_25 : i32
    %c8_i32 = arith.constant 8 : i32
    %22 = arith.muli %c0_i32_25, %c8_i32 : i32
    %23 = tpu.assume_multiple %22, 8 : i32
    %c8_i32_26 = arith.constant 8 : i32
    %24 = arith.muli %21, %c8_i32_26 : i32
    %25 = tpu.assume_multiple %24, 8 : i32
    %26 = arith.index_cast %23 : i32 to index
    %c0_27 = arith.constant 0 : index
    %27 = vector.load %arg15[%26, %c0_27] : memref<64x512xf32, #tpu.memory_space<vmem>>, vector<8x512xf32>
    %c0_28 = arith.constant 0 : index
    %c0_29 = arith.constant 0 : index
    %28 = vector.load %arg4[%c0_28, %c0_29] : memref<128x512xf32, #tpu.memory_space<vmem>>, vector<128x512xf32>
    %cst_30 = arith.constant dense<0.000000e+00> : vector<8x512xf32>
    %29 = tpu.matmul %17, %28, %cst_30 {dimension_numbers = #tpu.dot_dimension_numbers<[1], [0], [0], [1], [0, 0, 1, 1], [], []>} : vector<8x128xf32>, vector<128x512xf32>, vector<8x512xf32> -> vector<8x512xf32>
    %30 = arith.addf %27, %29 : vector<8x512xf32>
    %31 = arith.index_cast %25 : i32 to index
    %c0_31 = arith.constant 0 : index
    %32 = vector.load %arg16[%31, %c0_31] : memref<64x512xf32, #tpu.memory_space<vmem>>, vector<8x512xf32>
    %c0_32 = arith.constant 0 : index
    %c0_33 = arith.constant 0 : index
    %33 = vector.load %arg7[%c0_32, %c0_33] : memref<128x512xf32, #tpu.memory_space<vmem>>, vector<128x512xf32>
    %cst_34 = arith.constant dense<0.000000e+00> : vector<8x512xf32>
    %34 = tpu.matmul %19, %33, %cst_34 {dimension_numbers = #tpu.dot_dimension_numbers<[1], [0], [0], [1], [0, 0, 1, 1], [], []>} : vector<8x128xf32>, vector<128x512xf32>, vector<8x512xf32> -> vector<8x512xf32>
    %35 = arith.addf %32, %34 : vector<8x512xf32>
    %36 = vector.extract_strided_slice %30 {offsets = [0, 0], sizes = [8, 128], strides = [1, 1]} : vector<8x512xf32> to vector<8x128xf32>
    %37 = arith.negf %36 : vector<8x128xf32>
    %38 = math.exp %37 : vector<8x128xf32>
    %cst_35 = arith.constant 1.000000e+00 : f32
    %39 = vector.broadcast %cst_35 : f32 to vector<8x128xf32>
    %40 = arith.addf %39, %38 : vector<8x128xf32>
    %41 = arith.divf %39, %40 : vector<8x128xf32>
    %42 = vector.extract_strided_slice %30 {offsets = [0, 128], sizes = [8, 128], strides = [1, 1]} : vector<8x512xf32> to vector<8x128xf32>
    %43 = arith.negf %42 : vector<8x128xf32>
    %44 = math.exp %43 : vector<8x128xf32>
    %cst_36 = arith.constant 1.000000e+00 : f32
    %45 = vector.broadcast %cst_36 : f32 to vector<8x128xf32>
    %46 = arith.addf %45, %44 : vector<8x128xf32>
    %47 = arith.divf %45, %46 : vector<8x128xf32>
    %48 = vector.extract_strided_slice %30 {offsets = [0, 256], sizes = [8, 128], strides = [1, 1]} : vector<8x512xf32> to vector<8x128xf32>
    %49 = math.tanh %48 : vector<8x128xf32>
    %50 = vector.extract_strided_slice %30 {offsets = [0, 384], sizes = [8, 128], strides = [1, 1]} : vector<8x512xf32> to vector<8x128xf32>
    %51 = arith.negf %50 : vector<8x128xf32>
    %52 = math.exp %51 : vector<8x128xf32>
    %cst_37 = arith.constant 1.000000e+00 : f32
    %53 = vector.broadcast %cst_37 : f32 to vector<8x128xf32>
    %54 = arith.addf %53, %52 : vector<8x128xf32>
    %55 = arith.divf %53, %54 : vector<8x128xf32>
    %56 = arith.mulf %47, %18 : vector<8x128xf32>
    %57 = arith.mulf %41, %49 : vector<8x128xf32>
    %58 = arith.addf %56, %57 : vector<8x128xf32>
    %59 = math.tanh %58 : vector<8x128xf32>
    %60 = arith.mulf %55, %59 : vector<8x128xf32>
    %61 = vector.extract_strided_slice %35 {offsets = [0, 0], sizes = [8, 128], strides = [1, 1]} : vector<8x512xf32> to vector<8x128xf32>
    %62 = arith.negf %61 : vector<8x128xf32>
    %63 = math.exp %62 : vector<8x128xf32>
    %cst_38 = arith.constant 1.000000e+00 : f32
    %64 = vector.broadcast %cst_38 : f32 to vector<8x128xf32>
    %65 = arith.addf %64, %63 : vector<8x128xf32>
    %66 = arith.divf %64, %65 : vector<8x128xf32>
    %67 = vector.extract_strided_slice %35 {offsets = [0, 128], sizes = [8, 128], strides = [1, 1]} : vector<8x512xf32> to vector<8x128xf32>
    %68 = arith.negf %67 : vector<8x128xf32>
    %69 = math.exp %68 : vector<8x128xf32>
    %cst_39 = arith.constant 1.000000e+00 : f32
    %70 = vector.broadcast %cst_39 : f32 to vector<8x128xf32>
    %71 = arith.addf %70, %69 : vector<8x128xf32>
    %72 = arith.divf %70, %71 : vector<8x128xf32>
    %73 = vector.extract_strided_slice %35 {offsets = [0, 256], sizes = [8, 128], strides = [1, 1]} : vector<8x512xf32> to vector<8x128xf32>
    %74 = math.tanh %73 : vector<8x128xf32>
    %75 = vector.extract_strided_slice %35 {offsets = [0, 384], sizes = [8, 128], strides = [1, 1]} : vector<8x512xf32> to vector<8x128xf32>
    %76 = arith.negf %75 : vector<8x128xf32>
    %77 = math.exp %76 : vector<8x128xf32>
    %cst_40 = arith.constant 1.000000e+00 : f32
    %78 = vector.broadcast %cst_40 : f32 to vector<8x128xf32>
    %79 = arith.addf %78, %77 : vector<8x128xf32>
    %80 = arith.divf %78, %79 : vector<8x128xf32>
    %81 = arith.mulf %72, %20 : vector<8x128xf32>
    %82 = arith.mulf %66, %74 : vector<8x128xf32>
    %83 = arith.addf %81, %82 : vector<8x128xf32>
    %84 = math.tanh %83 : vector<8x128xf32>
    %85 = arith.mulf %80, %84 : vector<8x128xf32>
    %86 = arith.index_cast %23 : i32 to index
    %c0_41 = arith.constant 0 : index
    %87 = vector.load %arg9[%86, %c0_41] : memref<64x128xf32, #tpu.memory_space<vmem>>, vector<8x128xf32>
    tpu.vector_store %arg9[%86, %c0_41], %60 {strides = array<i32>} : memref<64x128xf32, #tpu.memory_space<vmem>>, vector<8x128xf32>,
    %88 = arith.index_cast %25 : i32 to index
    %c0_42 = arith.constant 0 : index
    %89 = vector.load %arg10[%88, %c0_42] : memref<64x128xf32, #tpu.memory_space<vmem>>, vector<8x128xf32>
    tpu.vector_store %arg10[%88, %c0_42], %85 {strides = array<i32>} : memref<64x128xf32, #tpu.memory_space<vmem>>, vector<8x128xf32>,
    %c1_i32 = arith.constant 1 : i32
    %c7_i32_43 = arith.constant 7 : i32
    %90 = arith.subi %c7_i32_43, %c1_i32 : i32
    %c8_i32_44 = arith.constant 8 : i32
    %91 = arith.muli %c1_i32, %c8_i32_44 : i32
    %92 = tpu.assume_multiple %91, 8 : i32
    %c8_i32_45 = arith.constant 8 : i32
    %93 = arith.muli %90, %c8_i32_45 : i32
    %94 = tpu.assume_multiple %93, 8 : i32
    %95 = arith.index_cast %92 : i32 to index
    %c0_46 = arith.constant 0 : index
    %96 = vector.load %arg15[%95, %c0_46] : memref<64x512xf32, #tpu.memory_space<vmem>>, vector<8x512xf32>
    %c0_47 = arith.constant 0 : index
    %c0_48 = arith.constant 0 : index
    %97 = vector.load %arg4[%c0_47, %c0_48] : memref<128x512xf32, #tpu.memory_space<vmem>>, vector<128x512xf32>
    %cst_49 = arith.constant dense<0.000000e+00> : vector<8x512xf32>
    %98 = tpu.matmul %60, %97, %cst_49 {dimension_numbers = #tpu.dot_dimension_numbers<[1], [0], [0], [1], [0, 0, 1, 1], [], []>} : vector<8x128xf32>, vector<128x512xf32>, vector<8x512xf32> -> vector<8x512xf32>
    %99 = arith.addf %96, %98 : vector<8x512xf32>
    %100 = arith.index_cast %94 : i32 to index
    %c0_50 = arith.constant 0 : index
    %101 = vector.load %arg16[%100, %c0_50] : memref<64x512xf32, #tpu.memory_space<vmem>>, vector<8x512xf32>
    %c0_51 = arith.constant 0 : index
    %c0_52 = arith.constant 0 : index
    %102 = vector.load %arg7[%c0_51, %c0_52] : memref<128x512xf32, #tpu.memory_space<vmem>>, vector<128x512xf32>
    %cst_53 = arith.constant dense<0.000000e+00> : vector<8x512xf32>
    %103 = tpu.matmul %85, %102, %cst_53 {dimension_numbers = #tpu.dot_dimension_numbers<[1], [0], [0], [1], [0, 0, 1, 1], [], []>} : vector<8x128xf32>, vector<128x512xf32>, vector<8x512xf32> -> vector<8x512xf32>
    %104 = arith.addf %101, %103 : vector<8x512xf32>
    %105 = vector.extract_strided_slice %99 {offsets = [0, 0], sizes = [8, 128], strides = [1, 1]} : vector<8x512xf32> to vector<8x128xf32>
    %106 = arith.negf %105 : vector<8x128xf32>
    %107 = math.exp %106 : vector<8x128xf32>
    %cst_54 = arith.constant 1.000000e+00 : f32
    %108 = vector.broadcast %cst_54 : f32 to vector<8x128xf32>
    %109 = arith.addf %108, %107 : vector<8x128xf32>
    %110 = arith.divf %108, %109 : vector<8x128xf32>
    %111 = vector.extract_strided_slice %99 {offsets = [0, 128], sizes = [8, 128], strides = [1, 1]} : vector<8x512xf32> to vector<8x128xf32>
    %112 = arith.negf %111 : vector<8x128xf32>
    %113 = math.exp %112 : vector<8x128xf32>
    %cst_55 = arith.constant 1.000000e+00 : f32
    %114 = vector.broadcast %cst_55 : f32 to vector<8x128xf32>
    %115 = arith.addf %114, %113 : vector<8x128xf32>
    %116 = arith.divf %114, %115 : vector<8x128xf32>
    %117 = vector.extract_strided_slice %99 {offsets = [0, 256], sizes = [8, 128], strides = [1, 1]} : vector<8x512xf32> to vector<8x128xf32>
    %118 = math.tanh %117 : vector<8x128xf32>
    %119 = vector.extract_strided_slice %99 {offsets = [0, 384], sizes = [8, 128], strides = [1, 1]} : vector<8x512xf32> to vector<8x128xf32>
    %120 = arith.negf %119 : vector<8x128xf32>
    %121 = math.exp %120 : vector<8x128xf32>
    %cst_56 = arith.constant 1.000000e+00 : f32
    %122 = vector.broadcast %cst_56 : f32 to vector<8x128xf32>
    %123 = arith.addf %122, %121 : vector<8x128xf32>
    %124 = arith.divf %122, %123 : vector<8x128xf32>
    %125 = arith.mulf %116, %58 : vector<8x128xf32>
    %126 = arith.mulf %110, %118 : vector<8x128xf32>
    %127 = arith.addf %125, %126 : vector<8x128xf32>
    %128 = math.tanh %127 : vector<8x128xf32>
    %129 = arith.mulf %124, %128 : vector<8x128xf32>
    %130 = vector.extract_strided_slice %104 {offsets = [0, 0], sizes = [8, 128], strides = [1, 1]} : vector<8x512xf32> to vector<8x128xf32>
    %131 = arith.negf %130 : vector<8x128xf32>
    %132 = math.exp %131 : vector<8x128xf32>
    %cst_57 = arith.constant 1.000000e+00 : f32
    %133 = vector.broadcast %cst_57 : f32 to vector<8x128xf32>
    %134 = arith.addf %133, %132 : vector<8x128xf32>
    %135 = arith.divf %133, %134 : vector<8x128xf32>
    %136 = vector.extract_strided_slice %104 {offsets = [0, 128], sizes = [8, 128], strides = [1, 1]} : vector<8x512xf32> to vector<8x128xf32>
    %137 = arith.negf %136 : vector<8x128xf32>
    %138 = math.exp %137 : vector<8x128xf32>
    %cst_58 = arith.constant 1.000000e+00 : f32
    %139 = vector.broadcast %cst_58 : f32 to vector<8x128xf32>
    %140 = arith.addf %139, %138 : vector<8x128xf32>
    %141 = arith.divf %139, %140 : vector<8x128xf32>
    %142 = vector.extract_strided_slice %104 {offsets = [0, 256], sizes = [8, 128], strides = [1, 1]} : vector<8x512xf32> to vector<8x128xf32>
    %143 = math.tanh %142 : vector<8x128xf32>
    %144 = vector.extract_strided_slice %104 {offsets = [0, 384], sizes = [8, 128], strides = [1, 1]} : vector<8x512xf32> to vector<8x128xf32>
    %145 = arith.negf %144 : vector<8x128xf32>
    %146 = math.exp %145 : vector<8x128xf32>
    %cst_59 = arith.constant 1.000000e+00 : f32
    %147 = vector.broadcast %cst_59 : f32 to vector<8x128xf32>
    %148 = arith.addf %147, %146 : vector<8x128xf32>
    %149 = arith.divf %147, %148 : vector<8x128xf32>
    %150 = arith.mulf %141, %83 : vector<8x128xf32>
    %151 = arith.mulf %135, %143 : vector<8x128xf32>
    %152 = arith.addf %150, %151 : vector<8x128xf32>
    %153 = math.tanh %152 : vector<8x128xf32>
    %154 = arith.mulf %149, %153 : vector<8x128xf32>
    %155 = arith.index_cast %92 : i32 to index
    %c0_60 = arith.constant 0 : index
    %156 = vector.load %arg9[%155, %c0_60] : memref<64x128xf32, #tpu.memory_space<vmem>>, vector<8x128xf32>
    tpu.vector_store %arg9[%155, %c0_60], %129 {strides = array<i32>} : memref<64x128xf32, #tpu.memory_space<vmem>>, vector<8x128xf32>,
    %157 = arith.index_cast %94 : i32 to index
    %c0_61 = arith.constant 0 : index
    %158 = vector.load %arg10[%157, %c0_61] : memref<64x128xf32, #tpu.memory_space<vmem>>, vector<8x128xf32>
    tpu.vector_store %arg10[%157, %c0_61], %154 {strides = array<i32>} : memref<64x128xf32, #tpu.memory_space<vmem>>, vector<8x128xf32>,
    %c2_i32 = arith.constant 2 : i32
    %c7_i32_62 = arith.constant 7 : i32
    %159 = arith.subi %c7_i32_62, %c2_i32 : i32
    %c8_i32_63 = arith.constant 8 : i32
    %160 = arith.muli %c2_i32, %c8_i32_63 : i32
    %161 = tpu.assume_multiple %160, 8 : i32
    %c8_i32_64 = arith.constant 8 : i32
    %162 = arith.muli %159, %c8_i32_64 : i32
    %163 = tpu.assume_multiple %162, 8 : i32
    %164 = arith.index_cast %161 : i32 to index
    %c0_65 = arith.constant 0 : index
    %165 = vector.load %arg15[%164, %c0_65] : memref<64x512xf32, #tpu.memory_space<vmem>>, vector<8x512xf32>
    %c0_66 = arith.constant 0 : index
    %c0_67 = arith.constant 0 : index
    %166 = vector.load %arg4[%c0_66, %c0_67] : memref<128x512xf32, #tpu.memory_space<vmem>>, vector<128x512xf32>
    %cst_68 = arith.constant dense<0.000000e+00> : vector<8x512xf32>
    %167 = tpu.matmul %129, %166, %cst_68 {dimension_numbers = #tpu.dot_dimension_numbers<[1], [0], [0], [1], [0, 0, 1, 1], [], []>} : vector<8x128xf32>, vector<128x512xf32>, vector<8x512xf32> -> vector<8x512xf32>
    %168 = arith.addf %165, %167 : vector<8x512xf32>
    %169 = arith.index_cast %163 : i32 to index
    %c0_69 = arith.constant 0 : index
    %170 = vector.load %arg16[%169, %c0_69] : memref<64x512xf32, #tpu.memory_space<vmem>>, vector<8x512xf32>
    %c0_70 = arith.constant 0 : index
    %c0_71 = arith.constant 0 : index
    %171 = vector.load %arg7[%c0_70, %c0_71] : memref<128x512xf32, #tpu.memory_space<vmem>>, vector<128x512xf32>
    %cst_72 = arith.constant dense<0.000000e+00> : vector<8x512xf32>
    %172 = tpu.matmul %154, %171, %cst_72 {dimension_numbers = #tpu.dot_dimension_numbers<[1], [0], [0], [1], [0, 0, 1, 1], [], []>} : vector<8x128xf32>, vector<128x512xf32>, vector<8x512xf32> -> vector<8x512xf32>
    %173 = arith.addf %170, %172 : vector<8x512xf32>
    %174 = vector.extract_strided_slice %168 {offsets = [0, 0], sizes = [8, 128], strides = [1, 1]} : vector<8x512xf32> to vector<8x128xf32>
    %175 = arith.negf %174 : vector<8x128xf32>
    %176 = math.exp %175 : vector<8x128xf32>
    %cst_73 = arith.constant 1.000000e+00 : f32
    %177 = vector.broadcast %cst_73 : f32 to vector<8x128xf32>
    %178 = arith.addf %177, %176 : vector<8x128xf32>
    %179 = arith.divf %177, %178 : vector<8x128xf32>
    %180 = vector.extract_strided_slice %168 {offsets = [0, 128], sizes = [8, 128], strides = [1, 1]} : vector<8x512xf32> to vector<8x128xf32>
    %181 = arith.negf %180 : vector<8x128xf32>
    %182 = math.exp %181 : vector<8x128xf32>
    %cst_74 = arith.constant 1.000000e+00 : f32
    %183 = vector.broadcast %cst_74 : f32 to vector<8x128xf32>
    %184 = arith.addf %183, %182 : vector<8x128xf32>
    %185 = arith.divf %183, %184 : vector<8x128xf32>
    %186 = vector.extract_strided_slice %168 {offsets = [0, 256], sizes = [8, 128], strides = [1, 1]} : vector<8x512xf32> to vector<8x128xf32>
    %187 = math.tanh %186 : vector<8x128xf32>
    %188 = vector.extract_strided_slice %168 {offsets = [0, 384], sizes = [8, 128], strides = [1, 1]} : vector<8x512xf32> to vector<8x128xf32>
    %189 = arith.negf %188 : vector<8x128xf32>
    %190 = math.exp %189 : vector<8x128xf32>
    %cst_75 = arith.constant 1.000000e+00 : f32
    %191 = vector.broadcast %cst_75 : f32 to vector<8x128xf32>
    %192 = arith.addf %191, %190 : vector<8x128xf32>
    %193 = arith.divf %191, %192 : vector<8x128xf32>
    %194 = arith.mulf %185, %127 : vector<8x128xf32>
    %195 = arith.mulf %179, %187 : vector<8x128xf32>
    %196 = arith.addf %194, %195 : vector<8x128xf32>
    %197 = math.tanh %196 : vector<8x128xf32>
    %198 = arith.mulf %193, %197 : vector<8x128xf32>
    %199 = vector.extract_strided_slice %173 {offsets = [0, 0], sizes = [8, 128], strides = [1, 1]} : vector<8x512xf32> to vector<8x128xf32>
    %200 = arith.negf %199 : vector<8x128xf32>
    %201 = math.exp %200 : vector<8x128xf32>
    %cst_76 = arith.constant 1.000000e+00 : f32
    %202 = vector.broadcast %cst_76 : f32 to vector<8x128xf32>
    %203 = arith.addf %202, %201 : vector<8x128xf32>
    %204 = arith.divf %202, %203 : vector<8x128xf32>
    %205 = vector.extract_strided_slice %173 {offsets = [0, 128], sizes = [8, 128], strides = [1, 1]} : vector<8x512xf32> to vector<8x128xf32>
    %206 = arith.negf %205 : vector<8x128xf32>
    %207 = math.exp %206 : vector<8x128xf32>
    %cst_77 = arith.constant 1.000000e+00 : f32
    %208 = vector.broadcast %cst_77 : f32 to vector<8x128xf32>
    %209 = arith.addf %208, %207 : vector<8x128xf32>
    %210 = arith.divf %208, %209 : vector<8x128xf32>
    %211 = vector.extract_strided_slice %173 {offsets = [0, 256], sizes = [8, 128], strides = [1, 1]} : vector<8x512xf32> to vector<8x128xf32>
    %212 = math.tanh %211 : vector<8x128xf32>
    %213 = vector.extract_strided_slice %173 {offsets = [0, 384], sizes = [8, 128], strides = [1, 1]} : vector<8x512xf32> to vector<8x128xf32>
    %214 = arith.negf %213 : vector<8x128xf32>
    %215 = math.exp %214 : vector<8x128xf32>
    %cst_78 = arith.constant 1.000000e+00 : f32
    %216 = vector.broadcast %cst_78 : f32 to vector<8x128xf32>
    %217 = arith.addf %216, %215 : vector<8x128xf32>
    %218 = arith.divf %216, %217 : vector<8x128xf32>
    %219 = arith.mulf %210, %152 : vector<8x128xf32>
    %220 = arith.mulf %204, %212 : vector<8x128xf32>
    %221 = arith.addf %219, %220 : vector<8x128xf32>
    %222 = math.tanh %221 : vector<8x128xf32>
    %223 = arith.mulf %218, %222 : vector<8x128xf32>
    %224 = arith.index_cast %161 : i32 to index
    %c0_79 = arith.constant 0 : index
    %225 = vector.load %arg9[%224, %c0_79] : memref<64x128xf32, #tpu.memory_space<vmem>>, vector<8x128xf32>
    tpu.vector_store %arg9[%224, %c0_79], %198 {strides = array<i32>} : memref<64x128xf32, #tpu.memory_space<vmem>>, vector<8x128xf32>,
    %226 = arith.index_cast %163 : i32 to index
    %c0_80 = arith.constant 0 : index
    %227 = vector.load %arg10[%226, %c0_80] : memref<64x128xf32, #tpu.memory_space<vmem>>, vector<8x128xf32>
    tpu.vector_store %arg10[%226, %c0_80], %223 {strides = array<i32>} : memref<64x128xf32, #tpu.memory_space<vmem>>, vector<8x128xf32>,
    %c3_i32 = arith.constant 3 : i32
    %c7_i32_81 = arith.constant 7 : i32
    %228 = arith.subi %c7_i32_81, %c3_i32 : i32
    %c8_i32_82 = arith.constant 8 : i32
    %229 = arith.muli %c3_i32, %c8_i32_82 : i32
    %230 = tpu.assume_multiple %229, 8 : i32
    %c8_i32_83 = arith.constant 8 : i32
    %231 = arith.muli %228, %c8_i32_83 : i32
    %232 = tpu.assume_multiple %231, 8 : i32
    %233 = arith.index_cast %230 : i32 to index
    %c0_84 = arith.constant 0 : index
    %234 = vector.load %arg15[%233, %c0_84] : memref<64x512xf32, #tpu.memory_space<vmem>>, vector<8x512xf32>
    %c0_85 = arith.constant 0 : index
    %c0_86 = arith.constant 0 : index
    %235 = vector.load %arg4[%c0_85, %c0_86] : memref<128x512xf32, #tpu.memory_space<vmem>>, vector<128x512xf32>
    %cst_87 = arith.constant dense<0.000000e+00> : vector<8x512xf32>
    %236 = tpu.matmul %198, %235, %cst_87 {dimension_numbers = #tpu.dot_dimension_numbers<[1], [0], [0], [1], [0, 0, 1, 1], [], []>} : vector<8x128xf32>, vector<128x512xf32>, vector<8x512xf32> -> vector<8x512xf32>
    %237 = arith.addf %234, %236 : vector<8x512xf32>
    %238 = arith.index_cast %232 : i32 to index
    %c0_88 = arith.constant 0 : index
    %239 = vector.load %arg16[%238, %c0_88] : memref<64x512xf32, #tpu.memory_space<vmem>>, vector<8x512xf32>
    %c0_89 = arith.constant 0 : index
    %c0_90 = arith.constant 0 : index
    %240 = vector.load %arg7[%c0_89, %c0_90] : memref<128x512xf32, #tpu.memory_space<vmem>>, vector<128x512xf32>
    %cst_91 = arith.constant dense<0.000000e+00> : vector<8x512xf32>
    %241 = tpu.matmul %223, %240, %cst_91 {dimension_numbers = #tpu.dot_dimension_numbers<[1], [0], [0], [1], [0, 0, 1, 1], [], []>} : vector<8x128xf32>, vector<128x512xf32>, vector<8x512xf32> -> vector<8x512xf32>
    %242 = arith.addf %239, %241 : vector<8x512xf32>
    %243 = vector.extract_strided_slice %237 {offsets = [0, 0], sizes = [8, 128], strides = [1, 1]} : vector<8x512xf32> to vector<8x128xf32>
    %244 = arith.negf %243 : vector<8x128xf32>
    %245 = math.exp %244 : vector<8x128xf32>
    %cst_92 = arith.constant 1.000000e+00 : f32
    %246 = vector.broadcast %cst_92 : f32 to vector<8x128xf32>
    %247 = arith.addf %246, %245 : vector<8x128xf32>
    %248 = arith.divf %246, %247 : vector<8x128xf32>
    %249 = vector.extract_strided_slice %237 {offsets = [0, 128], sizes = [8, 128], strides = [1, 1]} : vector<8x512xf32> to vector<8x128xf32>
    %250 = arith.negf %249 : vector<8x128xf32>
    %251 = math.exp %250 : vector<8x128xf32>
    %cst_93 = arith.constant 1.000000e+00 : f32
    %252 = vector.broadcast %cst_93 : f32 to vector<8x128xf32>
    %253 = arith.addf %252, %251 : vector<8x128xf32>
    %254 = arith.divf %252, %253 : vector<8x128xf32>
    %255 = vector.extract_strided_slice %237 {offsets = [0, 256], sizes = [8, 128], strides = [1, 1]} : vector<8x512xf32> to vector<8x128xf32>
    %256 = math.tanh %255 : vector<8x128xf32>
    %257 = vector.extract_strided_slice %237 {offsets = [0, 384], sizes = [8, 128], strides = [1, 1]} : vector<8x512xf32> to vector<8x128xf32>
    %258 = arith.negf %257 : vector<8x128xf32>
    %259 = math.exp %258 : vector<8x128xf32>
    %cst_94 = arith.constant 1.000000e+00 : f32
    %260 = vector.broadcast %cst_94 : f32 to vector<8x128xf32>
    %261 = arith.addf %260, %259 : vector<8x128xf32>
    %262 = arith.divf %260, %261 : vector<8x128xf32>
    %263 = arith.mulf %254, %196 : vector<8x128xf32>
    %264 = arith.mulf %248, %256 : vector<8x128xf32>
    %265 = arith.addf %263, %264 : vector<8x128xf32>
    %266 = math.tanh %265 : vector<8x128xf32>
    %267 = arith.mulf %262, %266 : vector<8x128xf32>
    %268 = vector.extract_strided_slice %242 {offsets = [0, 0], sizes = [8, 128], strides = [1, 1]} : vector<8x512xf32> to vector<8x128xf32>
    %269 = arith.negf %268 : vector<8x128xf32>
    %270 = math.exp %269 : vector<8x128xf32>
    %cst_95 = arith.constant 1.000000e+00 : f32
    %271 = vector.broadcast %cst_95 : f32 to vector<8x128xf32>
    %272 = arith.addf %271, %270 : vector<8x128xf32>
    %273 = arith.divf %271, %272 : vector<8x128xf32>
    %274 = vector.extract_strided_slice %242 {offsets = [0, 128], sizes = [8, 128], strides = [1, 1]} : vector<8x512xf32> to vector<8x128xf32>
    %275 = arith.negf %274 : vector<8x128xf32>
    %276 = math.exp %275 : vector<8x128xf32>
    %cst_96 = arith.constant 1.000000e+00 : f32
    %277 = vector.broadcast %cst_96 : f32 to vector<8x128xf32>
    %278 = arith.addf %277, %276 : vector<8x128xf32>
    %279 = arith.divf %277, %278 : vector<8x128xf32>
    %280 = vector.extract_strided_slice %242 {offsets = [0, 256], sizes = [8, 128], strides = [1, 1]} : vector<8x512xf32> to vector<8x128xf32>
    %281 = math.tanh %280 : vector<8x128xf32>
    %282 = vector.extract_strided_slice %242 {offsets = [0, 384], sizes = [8, 128], strides = [1, 1]} : vector<8x512xf32> to vector<8x128xf32>
    %283 = arith.negf %282 : vector<8x128xf32>
    %284 = math.exp %283 : vector<8x128xf32>
    %cst_97 = arith.constant 1.000000e+00 : f32
    %285 = vector.broadcast %cst_97 : f32 to vector<8x128xf32>
    %286 = arith.addf %285, %284 : vector<8x128xf32>
    %287 = arith.divf %285, %286 : vector<8x128xf32>
    %288 = arith.mulf %279, %221 : vector<8x128xf32>
    %289 = arith.mulf %273, %281 : vector<8x128xf32>
    %290 = arith.addf %288, %289 : vector<8x128xf32>
    %291 = math.tanh %290 : vector<8x128xf32>
    %292 = arith.mulf %287, %291 : vector<8x128xf32>
    %293 = arith.index_cast %230 : i32 to index
    %c0_98 = arith.constant 0 : index
    %294 = vector.load %arg9[%293, %c0_98] : memref<64x128xf32, #tpu.memory_space<vmem>>, vector<8x128xf32>
    tpu.vector_store %arg9[%293, %c0_98], %267 {strides = array<i32>} : memref<64x128xf32, #tpu.memory_space<vmem>>, vector<8x128xf32>,
    %295 = arith.index_cast %232 : i32 to index
    %c0_99 = arith.constant 0 : index
    %296 = vector.load %arg10[%295, %c0_99] : memref<64x128xf32, #tpu.memory_space<vmem>>, vector<8x128xf32>
    tpu.vector_store %arg10[%295, %c0_99], %292 {strides = array<i32>} : memref<64x128xf32, #tpu.memory_space<vmem>>, vector<8x128xf32>,
    %c4_i32 = arith.constant 4 : i32
    %c7_i32_100 = arith.constant 7 : i32
    %297 = arith.subi %c7_i32_100, %c4_i32 : i32
    %c8_i32_101 = arith.constant 8 : i32
    %298 = arith.muli %c4_i32, %c8_i32_101 : i32
    %299 = tpu.assume_multiple %298, 8 : i32
    %c8_i32_102 = arith.constant 8 : i32
    %300 = arith.muli %297, %c8_i32_102 : i32
    %301 = tpu.assume_multiple %300, 8 : i32
    %302 = arith.index_cast %299 : i32 to index
    %c0_103 = arith.constant 0 : index
    %303 = vector.load %arg15[%302, %c0_103] : memref<64x512xf32, #tpu.memory_space<vmem>>, vector<8x512xf32>
    %c0_104 = arith.constant 0 : index
    %c0_105 = arith.constant 0 : index
    %304 = vector.load %arg4[%c0_104, %c0_105] : memref<128x512xf32, #tpu.memory_space<vmem>>, vector<128x512xf32>
    %cst_106 = arith.constant dense<0.000000e+00> : vector<8x512xf32>
    %305 = tpu.matmul %267, %304, %cst_106 {dimension_numbers = #tpu.dot_dimension_numbers<[1], [0], [0], [1], [0, 0, 1, 1], [], []>} : vector<8x128xf32>, vector<128x512xf32>, vector<8x512xf32> -> vector<8x512xf32>
    %306 = arith.addf %303, %305 : vector<8x512xf32>
    %307 = arith.index_cast %301 : i32 to index
    %c0_107 = arith.constant 0 : index
    %308 = vector.load %arg16[%307, %c0_107] : memref<64x512xf32, #tpu.memory_space<vmem>>, vector<8x512xf32>
    %c0_108 = arith.constant 0 : index
    %c0_109 = arith.constant 0 : index
    %309 = vector.load %arg7[%c0_108, %c0_109] : memref<128x512xf32, #tpu.memory_space<vmem>>, vector<128x512xf32>
    %cst_110 = arith.constant dense<0.000000e+00> : vector<8x512xf32>
    %310 = tpu.matmul %292, %309, %cst_110 {dimension_numbers = #tpu.dot_dimension_numbers<[1], [0], [0], [1], [0, 0, 1, 1], [], []>} : vector<8x128xf32>, vector<128x512xf32>, vector<8x512xf32> -> vector<8x512xf32>
    %311 = arith.addf %308, %310 : vector<8x512xf32>
    %312 = vector.extract_strided_slice %306 {offsets = [0, 0], sizes = [8, 128], strides = [1, 1]} : vector<8x512xf32> to vector<8x128xf32>
    %313 = arith.negf %312 : vector<8x128xf32>
    %314 = math.exp %313 : vector<8x128xf32>
    %cst_111 = arith.constant 1.000000e+00 : f32
    %315 = vector.broadcast %cst_111 : f32 to vector<8x128xf32>
    %316 = arith.addf %315, %314 : vector<8x128xf32>
    %317 = arith.divf %315, %316 : vector<8x128xf32>
    %318 = vector.extract_strided_slice %306 {offsets = [0, 128], sizes = [8, 128], strides = [1, 1]} : vector<8x512xf32> to vector<8x128xf32>
    %319 = arith.negf %318 : vector<8x128xf32>
    %320 = math.exp %319 : vector<8x128xf32>
    %cst_112 = arith.constant 1.000000e+00 : f32
    %321 = vector.broadcast %cst_112 : f32 to vector<8x128xf32>
    %322 = arith.addf %321, %320 : vector<8x128xf32>
    %323 = arith.divf %321, %322 : vector<8x128xf32>
    %324 = vector.extract_strided_slice %306 {offsets = [0, 256], sizes = [8, 128], strides = [1, 1]} : vector<8x512xf32> to vector<8x128xf32>
    %325 = math.tanh %324 : vector<8x128xf32>
    %326 = vector.extract_strided_slice %306 {offsets = [0, 384], sizes = [8, 128], strides = [1, 1]} : vector<8x512xf32> to vector<8x128xf32>
    %327 = arith.negf %326 : vector<8x128xf32>
    %328 = math.exp %327 : vector<8x128xf32>
    %cst_113 = arith.constant 1.000000e+00 : f32
    %329 = vector.broadcast %cst_113 : f32 to vector<8x128xf32>
    %330 = arith.addf %329, %328 : vector<8x128xf32>
    %331 = arith.divf %329, %330 : vector<8x128xf32>
    %332 = arith.mulf %323, %265 : vector<8x128xf32>
    %333 = arith.mulf %317, %325 : vector<8x128xf32>
    %334 = arith.addf %332, %333 : vector<8x128xf32>
    %335 = math.tanh %334 : vector<8x128xf32>
    %336 = arith.mulf %331, %335 : vector<8x128xf32>
    %337 = vector.extract_strided_slice %311 {offsets = [0, 0], sizes = [8, 128], strides = [1, 1]} : vector<8x512xf32> to vector<8x128xf32>
    %338 = arith.negf %337 : vector<8x128xf32>
    %339 = math.exp %338 : vector<8x128xf32>
    %cst_114 = arith.constant 1.000000e+00 : f32
    %340 = vector.broadcast %cst_114 : f32 to vector<8x128xf32>
    %341 = arith.addf %340, %339 : vector<8x128xf32>
    %342 = arith.divf %340, %341 : vector<8x128xf32>
    %343 = vector.extract_strided_slice %311 {offsets = [0, 128], sizes = [8, 128], strides = [1, 1]} : vector<8x512xf32> to vector<8x128xf32>
    %344 = arith.negf %343 : vector<8x128xf32>
    %345 = math.exp %344 : vector<8x128xf32>
    %cst_115 = arith.constant 1.000000e+00 : f32
    %346 = vector.broadcast %cst_115 : f32 to vector<8x128xf32>
    %347 = arith.addf %346, %345 : vector<8x128xf32>
    %348 = arith.divf %346, %347 : vector<8x128xf32>
    %349 = vector.extract_strided_slice %311 {offsets = [0, 256], sizes = [8, 128], strides = [1, 1]} : vector<8x512xf32> to vector<8x128xf32>
    %350 = math.tanh %349 : vector<8x128xf32>
    %351 = vector.extract_strided_slice %311 {offsets = [0, 384], sizes = [8, 128], strides = [1, 1]} : vector<8x512xf32> to vector<8x128xf32>
    %352 = arith.negf %351 : vector<8x128xf32>
    %353 = math.exp %352 : vector<8x128xf32>
    %cst_116 = arith.constant 1.000000e+00 : f32
    %354 = vector.broadcast %cst_116 : f32 to vector<8x128xf32>
    %355 = arith.addf %354, %353 : vector<8x128xf32>
    %356 = arith.divf %354, %355 : vector<8x128xf32>
    %357 = arith.mulf %348, %290 : vector<8x128xf32>
    %358 = arith.mulf %342, %350 : vector<8x128xf32>
    %359 = arith.addf %357, %358 : vector<8x128xf32>
    %360 = math.tanh %359 : vector<8x128xf32>
    %361 = arith.mulf %356, %360 : vector<8x128xf32>
    %362 = arith.index_cast %299 : i32 to index
    %c0_117 = arith.constant 0 : index
    %363 = vector.load %arg9[%362, %c0_117] : memref<64x128xf32, #tpu.memory_space<vmem>>, vector<8x128xf32>
    tpu.vector_store %arg9[%362, %c0_117], %336 {strides = array<i32>} : memref<64x128xf32, #tpu.memory_space<vmem>>, vector<8x128xf32>,
    %364 = arith.index_cast %301 : i32 to index
    %c0_118 = arith.constant 0 : index
    %365 = vector.load %arg10[%364, %c0_118] : memref<64x128xf32, #tpu.memory_space<vmem>>, vector<8x128xf32>
    tpu.vector_store %arg10[%364, %c0_118], %361 {strides = array<i32>} : memref<64x128xf32, #tpu.memory_space<vmem>>, vector<8x128xf32>,
    %c5_i32 = arith.constant 5 : i32
    %c7_i32_119 = arith.constant 7 : i32
    %366 = arith.subi %c7_i32_119, %c5_i32 : i32
    %c8_i32_120 = arith.constant 8 : i32
    %367 = arith.muli %c5_i32, %c8_i32_120 : i32
    %368 = tpu.assume_multiple %367, 8 : i32
    %c8_i32_121 = arith.constant 8 : i32
    %369 = arith.muli %366, %c8_i32_121 : i32
    %370 = tpu.assume_multiple %369, 8 : i32
    %371 = arith.index_cast %368 : i32 to index
    %c0_122 = arith.constant 0 : index
    %372 = vector.load %arg15[%371, %c0_122] : memref<64x512xf32, #tpu.memory_space<vmem>>, vector<8x512xf32>
    %c0_123 = arith.constant 0 : index
    %c0_124 = arith.constant 0 : index
    %373 = vector.load %arg4[%c0_123, %c0_124] : memref<128x512xf32, #tpu.memory_space<vmem>>, vector<128x512xf32>
    %cst_125 = arith.constant dense<0.000000e+00> : vector<8x512xf32>
    %374 = tpu.matmul %336, %373, %cst_125 {dimension_numbers = #tpu.dot_dimension_numbers<[1], [0], [0], [1], [0, 0, 1, 1], [], []>} : vector<8x128xf32>, vector<128x512xf32>, vector<8x512xf32> -> vector<8x512xf32>
    %375 = arith.addf %372, %374 : vector<8x512xf32>
    %376 = arith.index_cast %370 : i32 to index
    %c0_126 = arith.constant 0 : index
    %377 = vector.load %arg16[%376, %c0_126] : memref<64x512xf32, #tpu.memory_space<vmem>>, vector<8x512xf32>
    %c0_127 = arith.constant 0 : index
    %c0_128 = arith.constant 0 : index
    %378 = vector.load %arg7[%c0_127, %c0_128] : memref<128x512xf32, #tpu.memory_space<vmem>>, vector<128x512xf32>
    %cst_129 = arith.constant dense<0.000000e+00> : vector<8x512xf32>
    %379 = tpu.matmul %361, %378, %cst_129 {dimension_numbers = #tpu.dot_dimension_numbers<[1], [0], [0], [1], [0, 0, 1, 1], [], []>} : vector<8x128xf32>, vector<128x512xf32>, vector<8x512xf32> -> vector<8x512xf32>
    %380 = arith.addf %377, %379 : vector<8x512xf32>
    %381 = vector.extract_strided_slice %375 {offsets = [0, 0], sizes = [8, 128], strides = [1, 1]} : vector<8x512xf32> to vector<8x128xf32>
    %382 = arith.negf %381 : vector<8x128xf32>
    %383 = math.exp %382 : vector<8x128xf32>
    %cst_130 = arith.constant 1.000000e+00 : f32
    %384 = vector.broadcast %cst_130 : f32 to vector<8x128xf32>
    %385 = arith.addf %384, %383 : vector<8x128xf32>
    %386 = arith.divf %384, %385 : vector<8x128xf32>
    %387 = vector.extract_strided_slice %375 {offsets = [0, 128], sizes = [8, 128], strides = [1, 1]} : vector<8x512xf32> to vector<8x128xf32>
    %388 = arith.negf %387 : vector<8x128xf32>
    %389 = math.exp %388 : vector<8x128xf32>
    %cst_131 = arith.constant 1.000000e+00 : f32
    %390 = vector.broadcast %cst_131 : f32 to vector<8x128xf32>
    %391 = arith.addf %390, %389 : vector<8x128xf32>
    %392 = arith.divf %390, %391 : vector<8x128xf32>
    %393 = vector.extract_strided_slice %375 {offsets = [0, 256], sizes = [8, 128], strides = [1, 1]} : vector<8x512xf32> to vector<8x128xf32>
    %394 = math.tanh %393 : vector<8x128xf32>
    %395 = vector.extract_strided_slice %375 {offsets = [0, 384], sizes = [8, 128], strides = [1, 1]} : vector<8x512xf32> to vector<8x128xf32>
    %396 = arith.negf %395 : vector<8x128xf32>
    %397 = math.exp %396 : vector<8x128xf32>
    %cst_132 = arith.constant 1.000000e+00 : f32
    %398 = vector.broadcast %cst_132 : f32 to vector<8x128xf32>
    %399 = arith.addf %398, %397 : vector<8x128xf32>
    %400 = arith.divf %398, %399 : vector<8x128xf32>
    %401 = arith.mulf %392, %334 : vector<8x128xf32>
    %402 = arith.mulf %386, %394 : vector<8x128xf32>
    %403 = arith.addf %401, %402 : vector<8x128xf32>
    %404 = math.tanh %403 : vector<8x128xf32>
    %405 = arith.mulf %400, %404 : vector<8x128xf32>
    %406 = vector.extract_strided_slice %380 {offsets = [0, 0], sizes = [8, 128], strides = [1, 1]} : vector<8x512xf32> to vector<8x128xf32>
    %407 = arith.negf %406 : vector<8x128xf32>
    %408 = math.exp %407 : vector<8x128xf32>
    %cst_133 = arith.constant 1.000000e+00 : f32
    %409 = vector.broadcast %cst_133 : f32 to vector<8x128xf32>
    %410 = arith.addf %409, %408 : vector<8x128xf32>
    %411 = arith.divf %409, %410 : vector<8x128xf32>
    %412 = vector.extract_strided_slice %380 {offsets = [0, 128], sizes = [8, 128], strides = [1, 1]} : vector<8x512xf32> to vector<8x128xf32>
    %413 = arith.negf %412 : vector<8x128xf32>
    %414 = math.exp %413 : vector<8x128xf32>
    %cst_134 = arith.constant 1.000000e+00 : f32
    %415 = vector.broadcast %cst_134 : f32 to vector<8x128xf32>
    %416 = arith.addf %415, %414 : vector<8x128xf32>
    %417 = arith.divf %415, %416 : vector<8x128xf32>
    %418 = vector.extract_strided_slice %380 {offsets = [0, 256], sizes = [8, 128], strides = [1, 1]} : vector<8x512xf32> to vector<8x128xf32>
    %419 = math.tanh %418 : vector<8x128xf32>
    %420 = vector.extract_strided_slice %380 {offsets = [0, 384], sizes = [8, 128], strides = [1, 1]} : vector<8x512xf32> to vector<8x128xf32>
    %421 = arith.negf %420 : vector<8x128xf32>
    %422 = math.exp %421 : vector<8x128xf32>
    %cst_135 = arith.constant 1.000000e+00 : f32
    %423 = vector.broadcast %cst_135 : f32 to vector<8x128xf32>
    %424 = arith.addf %423, %422 : vector<8x128xf32>
    %425 = arith.divf %423, %424 : vector<8x128xf32>
    %426 = arith.mulf %417, %359 : vector<8x128xf32>
    %427 = arith.mulf %411, %419 : vector<8x128xf32>
    %428 = arith.addf %426, %427 : vector<8x128xf32>
    %429 = math.tanh %428 : vector<8x128xf32>
    %430 = arith.mulf %425, %429 : vector<8x128xf32>
    %431 = arith.index_cast %368 : i32 to index
    %c0_136 = arith.constant 0 : index
    %432 = vector.load %arg9[%431, %c0_136] : memref<64x128xf32, #tpu.memory_space<vmem>>, vector<8x128xf32>
    tpu.vector_store %arg9[%431, %c0_136], %405 {strides = array<i32>} : memref<64x128xf32, #tpu.memory_space<vmem>>, vector<8x128xf32>,
    %433 = arith.index_cast %370 : i32 to index
    %c0_137 = arith.constant 0 : index
    %434 = vector.load %arg10[%433, %c0_137] : memref<64x128xf32, #tpu.memory_space<vmem>>, vector<8x128xf32>
    tpu.vector_store %arg10[%433, %c0_137], %430 {strides = array<i32>} : memref<64x128xf32, #tpu.memory_space<vmem>>, vector<8x128xf32>,
    %c6_i32 = arith.constant 6 : i32
    %c7_i32_138 = arith.constant 7 : i32
    %435 = arith.subi %c7_i32_138, %c6_i32 : i32
    %c8_i32_139 = arith.constant 8 : i32
    %436 = arith.muli %c6_i32, %c8_i32_139 : i32
    %437 = tpu.assume_multiple %436, 8 : i32
    %c8_i32_140 = arith.constant 8 : i32
    %438 = arith.muli %435, %c8_i32_140 : i32
    %439 = tpu.assume_multiple %438, 8 : i32
    %440 = arith.index_cast %437 : i32 to index
    %c0_141 = arith.constant 0 : index
    %441 = vector.load %arg15[%440, %c0_141] : memref<64x512xf32, #tpu.memory_space<vmem>>, vector<8x512xf32>
    %c0_142 = arith.constant 0 : index
    %c0_143 = arith.constant 0 : index
    %442 = vector.load %arg4[%c0_142, %c0_143] : memref<128x512xf32, #tpu.memory_space<vmem>>, vector<128x512xf32>
    %cst_144 = arith.constant dense<0.000000e+00> : vector<8x512xf32>
    %443 = tpu.matmul %405, %442, %cst_144 {dimension_numbers = #tpu.dot_dimension_numbers<[1], [0], [0], [1], [0, 0, 1, 1], [], []>} : vector<8x128xf32>, vector<128x512xf32>, vector<8x512xf32> -> vector<8x512xf32>
    %444 = arith.addf %441, %443 : vector<8x512xf32>
    %445 = arith.index_cast %439 : i32 to index
    %c0_145 = arith.constant 0 : index
    %446 = vector.load %arg16[%445, %c0_145] : memref<64x512xf32, #tpu.memory_space<vmem>>, vector<8x512xf32>
    %c0_146 = arith.constant 0 : index
    %c0_147 = arith.constant 0 : index
    %447 = vector.load %arg7[%c0_146, %c0_147] : memref<128x512xf32, #tpu.memory_space<vmem>>, vector<128x512xf32>
    %cst_148 = arith.constant dense<0.000000e+00> : vector<8x512xf32>
    %448 = tpu.matmul %430, %447, %cst_148 {dimension_numbers = #tpu.dot_dimension_numbers<[1], [0], [0], [1], [0, 0, 1, 1], [], []>} : vector<8x128xf32>, vector<128x512xf32>, vector<8x512xf32> -> vector<8x512xf32>
    %449 = arith.addf %446, %448 : vector<8x512xf32>
    %450 = vector.extract_strided_slice %444 {offsets = [0, 0], sizes = [8, 128], strides = [1, 1]} : vector<8x512xf32> to vector<8x128xf32>
    %451 = arith.negf %450 : vector<8x128xf32>
    %452 = math.exp %451 : vector<8x128xf32>
    %cst_149 = arith.constant 1.000000e+00 : f32
    %453 = vector.broadcast %cst_149 : f32 to vector<8x128xf32>
    %454 = arith.addf %453, %452 : vector<8x128xf32>
    %455 = arith.divf %453, %454 : vector<8x128xf32>
    %456 = vector.extract_strided_slice %444 {offsets = [0, 128], sizes = [8, 128], strides = [1, 1]} : vector<8x512xf32> to vector<8x128xf32>
    %457 = arith.negf %456 : vector<8x128xf32>
    %458 = math.exp %457 : vector<8x128xf32>
    %cst_150 = arith.constant 1.000000e+00 : f32
    %459 = vector.broadcast %cst_150 : f32 to vector<8x128xf32>
    %460 = arith.addf %459, %458 : vector<8x128xf32>
    %461 = arith.divf %459, %460 : vector<8x128xf32>
    %462 = vector.extract_strided_slice %444 {offsets = [0, 256], sizes = [8, 128], strides = [1, 1]} : vector<8x512xf32> to vector<8x128xf32>
    %463 = math.tanh %462 : vector<8x128xf32>
    %464 = vector.extract_strided_slice %444 {offsets = [0, 384], sizes = [8, 128], strides = [1, 1]} : vector<8x512xf32> to vector<8x128xf32>
    %465 = arith.negf %464 : vector<8x128xf32>
    %466 = math.exp %465 : vector<8x128xf32>
    %cst_151 = arith.constant 1.000000e+00 : f32
    %467 = vector.broadcast %cst_151 : f32 to vector<8x128xf32>
    %468 = arith.addf %467, %466 : vector<8x128xf32>
    %469 = arith.divf %467, %468 : vector<8x128xf32>
    %470 = arith.mulf %461, %403 : vector<8x128xf32>
    %471 = arith.mulf %455, %463 : vector<8x128xf32>
    %472 = arith.addf %470, %471 : vector<8x128xf32>
    %473 = math.tanh %472 : vector<8x128xf32>
    %474 = arith.mulf %469, %473 : vector<8x128xf32>
    %475 = vector.extract_strided_slice %449 {offsets = [0, 0], sizes = [8, 128], strides = [1, 1]} : vector<8x512xf32> to vector<8x128xf32>
    %476 = arith.negf %475 : vector<8x128xf32>
    %477 = math.exp %476 : vector<8x128xf32>
    %cst_152 = arith.constant 1.000000e+00 : f32
    %478 = vector.broadcast %cst_152 : f32 to vector<8x128xf32>
    %479 = arith.addf %478, %477 : vector<8x128xf32>
    %480 = arith.divf %478, %479 : vector<8x128xf32>
    %481 = vector.extract_strided_slice %449 {offsets = [0, 128], sizes = [8, 128], strides = [1, 1]} : vector<8x512xf32> to vector<8x128xf32>
    %482 = arith.negf %481 : vector<8x128xf32>
    %483 = math.exp %482 : vector<8x128xf32>
    %cst_153 = arith.constant 1.000000e+00 : f32
    %484 = vector.broadcast %cst_153 : f32 to vector<8x128xf32>
    %485 = arith.addf %484, %483 : vector<8x128xf32>
    %486 = arith.divf %484, %485 : vector<8x128xf32>
    %487 = vector.extract_strided_slice %449 {offsets = [0, 256], sizes = [8, 128], strides = [1, 1]} : vector<8x512xf32> to vector<8x128xf32>
    %488 = math.tanh %487 : vector<8x128xf32>
    %489 = vector.extract_strided_slice %449 {offsets = [0, 384], sizes = [8, 128], strides = [1, 1]} : vector<8x512xf32> to vector<8x128xf32>
    %490 = arith.negf %489 : vector<8x128xf32>
    %491 = math.exp %490 : vector<8x128xf32>
    %cst_154 = arith.constant 1.000000e+00 : f32
    %492 = vector.broadcast %cst_154 : f32 to vector<8x128xf32>
    %493 = arith.addf %492, %491 : vector<8x128xf32>
    %494 = arith.divf %492, %493 : vector<8x128xf32>
    %495 = arith.mulf %486, %428 : vector<8x128xf32>
    %496 = arith.mulf %480, %488 : vector<8x128xf32>
    %497 = arith.addf %495, %496 : vector<8x128xf32>
    %498 = math.tanh %497 : vector<8x128xf32>
    %499 = arith.mulf %494, %498 : vector<8x128xf32>
    %500 = arith.index_cast %437 : i32 to index
    %c0_155 = arith.constant 0 : index
    %501 = vector.load %arg9[%500, %c0_155] : memref<64x128xf32, #tpu.memory_space<vmem>>, vector<8x128xf32>
    tpu.vector_store %arg9[%500, %c0_155], %474 {strides = array<i32>} : memref<64x128xf32, #tpu.memory_space<vmem>>, vector<8x128xf32>,
    %502 = arith.index_cast %439 : i32 to index
    %c0_156 = arith.constant 0 : index
    %503 = vector.load %arg10[%502, %c0_156] : memref<64x128xf32, #tpu.memory_space<vmem>>, vector<8x128xf32>
    tpu.vector_store %arg10[%502, %c0_156], %499 {strides = array<i32>} : memref<64x128xf32, #tpu.memory_space<vmem>>, vector<8x128xf32>,
    %c7_i32_157 = arith.constant 7 : i32
    %c7_i32_158 = arith.constant 7 : i32
    %504 = arith.subi %c7_i32_158, %c7_i32_157 : i32
    %c8_i32_159 = arith.constant 8 : i32
    %505 = arith.muli %c7_i32_157, %c8_i32_159 : i32
    %506 = tpu.assume_multiple %505, 8 : i32
    %c8_i32_160 = arith.constant 8 : i32
    %507 = arith.muli %504, %c8_i32_160 : i32
    %508 = tpu.assume_multiple %507, 8 : i32
    %509 = arith.index_cast %506 : i32 to index
    %c0_161 = arith.constant 0 : index
    %510 = vector.load %arg15[%509, %c0_161] : memref<64x512xf32, #tpu.memory_space<vmem>>, vector<8x512xf32>
    %c0_162 = arith.constant 0 : index
    %c0_163 = arith.constant 0 : index
    %511 = vector.load %arg4[%c0_162, %c0_163] : memref<128x512xf32, #tpu.memory_space<vmem>>, vector<128x512xf32>
    %cst_164 = arith.constant dense<0.000000e+00> : vector<8x512xf32>
    %512 = tpu.matmul %474, %511, %cst_164 {dimension_numbers = #tpu.dot_dimension_numbers<[1], [0], [0], [1], [0, 0, 1, 1], [], []>} : vector<8x128xf32>, vector<128x512xf32>, vector<8x512xf32> -> vector<8x512xf32>
    %513 = arith.addf %510, %512 : vector<8x512xf32>
    %514 = arith.index_cast %508 : i32 to index
    %c0_165 = arith.constant 0 : index
    %515 = vector.load %arg16[%514, %c0_165] : memref<64x512xf32, #tpu.memory_space<vmem>>, vector<8x512xf32>
    %c0_166 = arith.constant 0 : index
    %c0_167 = arith.constant 0 : index
    %516 = vector.load %arg7[%c0_166, %c0_167] : memref<128x512xf32, #tpu.memory_space<vmem>>, vector<128x512xf32>
    %cst_168 = arith.constant dense<0.000000e+00> : vector<8x512xf32>
    %517 = tpu.matmul %499, %516, %cst_168 {dimension_numbers = #tpu.dot_dimension_numbers<[1], [0], [0], [1], [0, 0, 1, 1], [], []>} : vector<8x128xf32>, vector<128x512xf32>, vector<8x512xf32> -> vector<8x512xf32>
    %518 = arith.addf %515, %517 : vector<8x512xf32>
    %519 = vector.extract_strided_slice %513 {offsets = [0, 0], sizes = [8, 128], strides = [1, 1]} : vector<8x512xf32> to vector<8x128xf32>
    %520 = arith.negf %519 : vector<8x128xf32>
    %521 = math.exp %520 : vector<8x128xf32>
    %cst_169 = arith.constant 1.000000e+00 : f32
    %522 = vector.broadcast %cst_169 : f32 to vector<8x128xf32>
    %523 = arith.addf %522, %521 : vector<8x128xf32>
    %524 = arith.divf %522, %523 : vector<8x128xf32>
    %525 = vector.extract_strided_slice %513 {offsets = [0, 128], sizes = [8, 128], strides = [1, 1]} : vector<8x512xf32> to vector<8x128xf32>
    %526 = arith.negf %525 : vector<8x128xf32>
    %527 = math.exp %526 : vector<8x128xf32>
    %cst_170 = arith.constant 1.000000e+00 : f32
    %528 = vector.broadcast %cst_170 : f32 to vector<8x128xf32>
    %529 = arith.addf %528, %527 : vector<8x128xf32>
    %530 = arith.divf %528, %529 : vector<8x128xf32>
    %531 = vector.extract_strided_slice %513 {offsets = [0, 256], sizes = [8, 128], strides = [1, 1]} : vector<8x512xf32> to vector<8x128xf32>
    %532 = math.tanh %531 : vector<8x128xf32>
    %533 = vector.extract_strided_slice %513 {offsets = [0, 384], sizes = [8, 128], strides = [1, 1]} : vector<8x512xf32> to vector<8x128xf32>
    %534 = arith.negf %533 : vector<8x128xf32>
    %535 = math.exp %534 : vector<8x128xf32>
    %cst_171 = arith.constant 1.000000e+00 : f32
    %536 = vector.broadcast %cst_171 : f32 to vector<8x128xf32>
    %537 = arith.addf %536, %535 : vector<8x128xf32>
    %538 = arith.divf %536, %537 : vector<8x128xf32>
    %539 = arith.mulf %530, %472 : vector<8x128xf32>
    %540 = arith.mulf %524, %532 : vector<8x128xf32>
    %541 = arith.addf %539, %540 : vector<8x128xf32>
    %542 = math.tanh %541 : vector<8x128xf32>
    %543 = arith.mulf %538, %542 : vector<8x128xf32>
    %544 = vector.extract_strided_slice %518 {offsets = [0, 0], sizes = [8, 128], strides = [1, 1]} : vector<8x512xf32> to vector<8x128xf32>
    %545 = arith.negf %544 : vector<8x128xf32>
    %546 = math.exp %545 : vector<8x128xf32>
    %cst_172 = arith.constant 1.000000e+00 : f32
    %547 = vector.broadcast %cst_172 : f32 to vector<8x128xf32>
    %548 = arith.addf %547, %546 : vector<8x128xf32>
    %549 = arith.divf %547, %548 : vector<8x128xf32>
    %550 = vector.extract_strided_slice %518 {offsets = [0, 128], sizes = [8, 128], strides = [1, 1]} : vector<8x512xf32> to vector<8x128xf32>
    %551 = arith.negf %550 : vector<8x128xf32>
    %552 = math.exp %551 : vector<8x128xf32>
    %cst_173 = arith.constant 1.000000e+00 : f32
    %553 = vector.broadcast %cst_173 : f32 to vector<8x128xf32>
    %554 = arith.addf %553, %552 : vector<8x128xf32>
    %555 = arith.divf %553, %554 : vector<8x128xf32>
    %556 = vector.extract_strided_slice %518 {offsets = [0, 256], sizes = [8, 128], strides = [1, 1]} : vector<8x512xf32> to vector<8x128xf32>
    %557 = math.tanh %556 : vector<8x128xf32>
    %558 = vector.extract_strided_slice %518 {offsets = [0, 384], sizes = [8, 128], strides = [1, 1]} : vector<8x512xf32> to vector<8x128xf32>
    %559 = arith.negf %558 : vector<8x128xf32>
    %560 = math.exp %559 : vector<8x128xf32>
    %cst_174 = arith.constant 1.000000e+00 : f32
    %561 = vector.broadcast %cst_174 : f32 to vector<8x128xf32>
    %562 = arith.addf %561, %560 : vector<8x128xf32>
    %563 = arith.divf %561, %562 : vector<8x128xf32>
    %564 = arith.mulf %555, %497 : vector<8x128xf32>
    %565 = arith.mulf %549, %557 : vector<8x128xf32>
    %566 = arith.addf %564, %565 : vector<8x128xf32>
    %567 = math.tanh %566 : vector<8x128xf32>
    %568 = arith.mulf %563, %567 : vector<8x128xf32>
    %569 = arith.index_cast %506 : i32 to index
    %c0_175 = arith.constant 0 : index
    %570 = vector.load %arg9[%569, %c0_175] : memref<64x128xf32, #tpu.memory_space<vmem>>, vector<8x128xf32>
    tpu.vector_store %arg9[%569, %c0_175], %543 {strides = array<i32>} : memref<64x128xf32, #tpu.memory_space<vmem>>, vector<8x128xf32>,
    %571 = arith.index_cast %508 : i32 to index
    %c0_176 = arith.constant 0 : index
    %572 = vector.load %arg10[%571, %c0_176] : memref<64x128xf32, #tpu.memory_space<vmem>>, vector<8x128xf32>
    tpu.vector_store %arg10[%571, %c0_176], %568 {strides = array<i32>} : memref<64x128xf32, #tpu.memory_space<vmem>>, vector<8x128xf32>,
    %c8_i32_177 = arith.constant 8 : i32
    %c0_178 = arith.constant 0 : index
    %c0_179 = arith.constant 0 : index
    %573 = vector.load %arg11[%c0_178, %c0_179] : memref<8x128xf32, #tpu.memory_space<vmem>>, vector<8x128xf32>
    tpu.vector_store %arg11[%c0_178, %c0_179], %543 {strides = array<i32>} : memref<8x128xf32, #tpu.memory_space<vmem>>, vector<8x128xf32>,
    %c0_180 = arith.constant 0 : index
    %c0_181 = arith.constant 0 : index
    %574 = vector.load %arg12[%c0_180, %c0_181] : memref<8x128xf32, #tpu.memory_space<vmem>>, vector<8x128xf32>
    tpu.vector_store %arg12[%c0_180, %c0_181], %541 {strides = array<i32>} : memref<8x128xf32, #tpu.memory_space<vmem>>, vector<8x128xf32>,
    %c0_182 = arith.constant 0 : index
    %c0_183 = arith.constant 0 : index
    %575 = vector.load %arg13[%c0_182, %c0_183] : memref<8x128xf32, #tpu.memory_space<vmem>>, vector<8x128xf32>
    tpu.vector_store %arg13[%c0_182, %c0_183], %568 {strides = array<i32>} : memref<8x128xf32, #tpu.memory_space<vmem>>, vector<8x128xf32>,
    %c0_184 = arith.constant 0 : index
    %c0_185 = arith.constant 0 : index
    %576 = vector.load %arg14[%c0_184, %c0_185] : memref<8x128xf32, #tpu.memory_space<vmem>>, vector<8x128xf32>
    tpu.vector_store %arg14[%c0_184, %c0_185], %566 {strides = array<i32>} : memref<8x128xf32, #tpu.memory_space<vmem>>, vector<8x128xf32>,
    return
  }
  func.func @transform_0(%arg0: i32) -> (i32, i32) {
    %c0_i32 = arith.constant 0 : i32
    %c0_i32_0 = arith.constant 0 : i32
    return %arg0, %c0_i32 : i32, i32
  }
  func.func @transform_1(%arg0: i32) -> (i32, i32) {
    %c0_i32 = arith.constant 0 : i32
    %0 = arith.subi %c0_i32, %arg0 : i32
    %c0_i32_0 = arith.constant 0 : i32
    %c0_i32_1 = arith.constant 0 : i32
    return %0, %c0_i32_0 : i32, i32
  }
  func.func @transform_2(%arg0: i32) -> (i32, i32) {
    %c0_i32 = arith.constant 0 : i32
    %c0_i32_0 = arith.constant 0 : i32
    %c0_i32_1 = arith.constant 0 : i32
    return %c0_i32, %c0_i32_0 : i32, i32
  }
  func.func @transform_3(%arg0: i32) -> (i32, i32) {
    %c0_i32 = arith.constant 0 : i32
    %c0_i32_0 = arith.constant 0 : i32
    %c0_i32_1 = arith.constant 0 : i32
    return %c0_i32, %c0_i32_0 : i32, i32
  }
  func.func @transform_4(%arg0: i32) -> (i32, i32) {
    %c0_i32 = arith.constant 0 : i32
    %c0_i32_0 = arith.constant 0 : i32
    %c0_i32_1 = arith.constant 0 : i32
    return %c0_i32, %c0_i32_0 : i32, i32
  }
  func.func @transform_5(%arg0: i32) -> (i32, i32) {
    %c0_i32 = arith.constant 0 : i32
    %c0_i32_0 = arith.constant 0 : i32
    %c0_i32_1 = arith.constant 0 : i32
    return %c0_i32, %c0_i32_0 : i32, i32
  }
  func.func @transform_6(%arg0: i32) -> (i32, i32) {
    %c0_i32 = arith.constant 0 : i32
    %c0_i32_0 = arith.constant 0 : i32
    %c0_i32_1 = arith.constant 0 : i32
    return %c0_i32, %c0_i32_0 : i32, i32
  }
  func.func @transform_7(%arg0: i32) -> (i32, i32) {
    %c0_i32 = arith.constant 0 : i32
    %c0_i32_0 = arith.constant 0 : i32
    %c0_i32_1 = arith.constant 0 : i32
    return %c0_i32, %c0_i32_0 : i32, i32
  }
  func.func @transform_8(%arg0: i32) -> (i32, i32) {
    %c0_i32 = arith.constant 0 : i32
    %c0_i32_0 = arith.constant 0 : i32
    return %arg0, %c0_i32 : i32, i32
  }
  func.func @transform_9(%arg0: i32) -> (i32, i32) {
    %c0_i32 = arith.constant 0 : i32
    %0 = arith.subi %c0_i32, %arg0 : i32
    %c0_i32_0 = arith.constant 0 : i32
    %c0_i32_1 = arith.constant 0 : i32
    return %0, %c0_i32_0 : i32, i32
  }
}

</mosaic_0001>

<bundles_post_ra>
// kernel: bidirectional_lstm_module.3
= control target key start
LH: loop header
LB: loop body
LE: loop exit
PB: predicated region body
PF: predicated region fallthrough
CT: control target
= control target key end

     0   :  { %s490_s2 = inlined_call_operand.vmem [shape: f32[256,128], index: 2, kind: input, shape index: {}]   ;;  %s491_s1 = inlined_call_operand.vmem [shape: f32[64,128], index: 1, kind: input, shape index: {}]   ;;  %s492_s0 = inlined_call_operand.vmem [shape: f32[64,128], index: 0, kind: input, shape index: {}]   ;;  %s493_s3 = inlined_call_operand.vmem [shape: f32[1,128], index: 3, kind: input, shape index: {}]   ;;  %s494_s4 = inlined_call_operand.vmem [shape: f32[64,128], index: 4, kind: output, shape index: {}]  }
   0x1   :  { %v49_v0 = vld [vmem:[%s490_s2 + $0x80] sm:$0xff]  ;;  %v50_v1 = vld [vmem:[%s490_s2 + $0x88] sm:$0xff]  ;;  %v51_v5 = vld [vmem:[%s490_s2 + $0x90] sm:$0xff] }
   0x2   :  { %v33_v2 = vld [vmem:[%s490_s2] sm:$0xff]  ;;  %v246_v3 = vpack.c.bf16 %v50_v1, %v49_v0  ;;  %v34_v4 = vld [vmem:[%s490_s2 + $0x8] sm:$0xff]  ;;  %v52_v6 = vld [vmem:[%s490_s2 + $0x98] sm:$0xff] }
   0x3   :  { %v248_v7 = vpack.c.bf16 %v34_v4, %v33_v2  ;;  %v250_v8 = vpack.c.bf16 %v52_v6, %v51_v5  ;;  %v35_v9 = vld [vmem:[%s490_s2 + $0x10] sm:$0xff]  ;;  %v36_v10 = vld [vmem:[%s490_s2 + $0x18] sm:$0xff]  ;;  %v53_v11 = vld [vmem:[%s490_s2 + $0xa0] sm:$0xff] }
   0x4   :  { %247 = vmatprep.subr.bf16.mxu0 %v246_v3  ;;  %278 = vmatprep.subr.bf16.mxu1 %v246_v3  ;;  %v54_v12 = vld [vmem:[%s490_s2 + $0xa8] sm:$0xff]  ;;  %v252_v13 = vpack.c.bf16 %v36_v10, %v35_v9  ;;  %v37_v15 = vld [vmem:[%s490_s2 + $0x20] sm:$0xff]  ;;  %v55_v17 = vld [vmem:[%s490_s2 + $0xb0] sm:$0xff] }
   0x5   :  { %249 = vmatpush3.bf16.msra.mxu0 %v248_v7  ;;  %286 = vmatpush3.bf16.msra.mxu1 %v248_v7  ;;  %v254_v14 = vpack.c.bf16 %v54_v12, %v53_v11  ;;  %v38_v16 = vld [vmem:[%s490_s2 + $0x28] sm:$0xff]  ;;  %v56_v18 = vld [vmem:[%s490_s2 + $0xb8] sm:$0xff]  ;;  %v39_v21 = vld [vmem:[%s490_s2 + $0x30] sm:$0xff] }
   0x6   :  { %251 = vmatprep.subr.bf16.mxu0 %v250_v8  ;;  %279 = vmatprep.subr.bf16.mxu1 %v250_v8  ;;  %v256_v19 = vpack.c.bf16 %v38_v16, %v37_v15  ;;  %v258_v20 = vpack.c.bf16 %v56_v18, %v55_v17  ;;  %v40_v22 = vld [vmem:[%s490_s2 + $0x38] sm:$0xff]  ;;  %v57_v23 = vld [vmem:[%s490_s2 + $0xc0] sm:$0xff]  ;;  %v58_v24 = vld [vmem:[%s490_s2 + $0xc8] sm:$0xff] }
   0x7   :  { %v25_v25 = vld [vmem:[%s491_s1] sm:$0xff]  ;;  %v260_v27 = vpack.c.bf16 %v40_v22, %v39_v21  ;;  %v262_v28 = vpack.c.bf16 %v58_v24, %v57_v23  ;;  %v42_v30 = vld [vmem:[%s490_s2 + $0x48] sm:$0xff]  ;;  %v59_v31 = vld [vmem:[%s490_s2 + $0xd0] sm:$0xff] }
   0x8   :  { %136 = vmatprep.mubr.f32.mxu0 %v25_v25  ;;  %v29_v26 = vld [vmem:[%s491_s1 + $0x20] sm:$0xff]  ;;  %v60_v32 = vld [vmem:[%s490_s2 + $0xd8] sm:$0xff]  ;;  %v43_v35 = vld [vmem:[%s490_s2 + $0x50] sm:$0xff] }
   0x9   :  { %253 = vmatpush3.bf16.msra.mxu0 %v252_v13  ;;  %287 = vmatpush3.bf16.msra.mxu1 %v252_v13  ;;  %v41_v29 = vld [vmem:[%s490_s2 + $0x40] sm:$0xff]  ;;  %v266_v34 = vpack.c.bf16 %v60_v32, %v59_v31  ;;  %v44_v36 = vld [vmem:[%s490_s2 + $0x58] sm:$0xff]  ;;  %v62_v38 = vld [vmem:[%s490_s2 + $0xe8] sm:$0xff] }
   0xa   :  { %255 = vmatprep.subr.bf16.mxu0 %v254_v14  ;;  %280 = vmatprep.subr.bf16.mxu1 %v254_v14  ;;  %v264_v33 = vpack.c.bf16 %v42_v30, %v41_v29  ;;  %v61_v37 = vld [vmem:[%s490_s2 + $0xe0] sm:$0xff]  ;;  %v268_v39 = vpack.c.bf16 %v44_v36, %v43_v35  ;;  %v46_v42 = vld [vmem:[%s490_s2 + $0x68] sm:$0xff]  ;;  %v63_v43 = vld [vmem:[%s490_s2 + $0xf0] sm:$0xff] }
   0xb   :  { %156 = vmatprep.mubr.f32.mxu1 %v29_v26  ;;  %v270_v40 = vpack.c.bf16 %v62_v38, %v61_v37  ;;  %v45_v41 = vld [vmem:[%s490_s2 + $0x60] sm:$0xff]  ;;  %v64_v44 = vld [vmem:[%s490_s2 + $0xf8] sm:$0xff]  ;;  %v47_v47 = vld [vmem:[%s490_s2 + $0x70] sm:$0xff] }
   0xc   :  { %v272_v45 = vpack.c.bf16 %v46_v42, %v45_v41  ;;  %v274_v46 = vpack.c.bf16 %v64_v44, %v63_v43  ;;  %v48_v48 = vld [vmem:[%s490_s2 + $0x78] sm:$0xff]  ;;  %v17_v50 = vld [vmem:[%s492_s0] sm:$0xff]  ;;  %v26_v52 = vld [vmem:[%s491_s1 + $0x8] sm:$0xff] }
   0xd   :  { %257 = vmatpush3.bf16.msra.mxu0 %v256_v19  ;;  %288 = vmatpush3.bf16.msra.mxu1 %v256_v19  ;;  %v276_v49 = vpack.c.bf16 %v48_v48, %v47_v47  ;;  %v21_v51 = vld [vmem:[%s492_s0 + $0x20] sm:$0xff]  ;;  %v30_v53 = vld [vmem:[%s491_s1 + $0x28] sm:$0xff]  ;;  %v27_v56 = vld [vmem:[%s491_s1 + $0x10] sm:$0xff] }
   0xe   :  { %259 = vmatprep.subr.bf16.mxu0 %v258_v20  ;;  %281 = vmatprep.subr.bf16.mxu1 %v258_v20  ;;  %v18_v54 = vld [vmem:[%s492_s0 + $0x8] sm:$0xff]  ;;  %v31_v57 = vld [vmem:[%s491_s1 + $0x30] sm:$0xff]  ;;  %v28_v60 = vld [vmem:[%s491_s1 + $0x18] sm:$0xff] }
   0xf   :  { %v22_v55 = vld [vmem:[%s492_s0 + $0x28] sm:$0xff]  ;;  %v19_v58 = vld [vmem:[%s492_s0 + $0x10] sm:$0xff]  ;;  %v32_v61 = vld [vmem:[%s491_s1 + $0x38] sm:$0xff] }
  0x10   :  { %v23_v59 = vld [vmem:[%s492_s0 + $0x30] sm:$0xff]  ;;  %v20_v62 = vld [vmem:[%s492_s0 + $0x18] sm:$0xff]  ;;  %v189_v2 = vld [vmem:[%s493_s3] ss:$0 sm:$0xff] }
  0x11   :  { %261 = vmatpush3.bf16.msra.mxu0 %v260_v27  ;;  %289 = vmatpush3.bf16.msra.mxu1 %v260_v27  ;;  %v24_v63 = vld [vmem:[%s492_s0 + $0x38] sm:$0xff] }
  0x12   :  { %263 = vmatprep.subr.bf16.mxu0 %v262_v28  ;;  %282 = vmatprep.subr.bf16.mxu1 %v262_v28 }
  0x15   :  { %265 = vmatpush3.bf16.msra.mxu0 %v264_v33  ;;  %290 = vmatpush3.bf16.msra.mxu1 %v264_v33 }
  0x16   :  { %267 = vmatprep.subr.bf16.mxu0 %v266_v34  ;;  %283 = vmatprep.subr.bf16.mxu1 %v266_v34 }
  0x19   :  { %269 = vmatpush3.bf16.msra.mxu0 %v268_v39  ;;  %291 = vmatpush3.bf16.msra.mxu1 %v268_v39 }
  0x1a   :  { %271 = vmatprep.subr.bf16.mxu0 %v270_v40  ;;  %284 = vmatprep.subr.bf16.mxu1 %v270_v40 }
  0x1d   :  { %273 = vmatpush3.bf16.msra.mxu0 %v272_v45  ;;  %292 = vmatpush3.bf16.msra.mxu1 %v272_v45 }
  0x1e   :  { %275 = vmatprep.subr.bf16.mxu0 %v274_v46  ;;  %285 = vmatprep.subr.bf16.mxu1 %v274_v46 }
  0x21   :  { %277 = vmatpush3.bf16.msra.mxu0 %v276_v49  ;;  %293 = vmatpush3.bf16.msra.mxu1 %v276_v49 }
  0x24   :  { %137 = vmatmul.mubr.f32.vlgmr.msra.gmra.mrb[0].mxu0 %v17_v50  ;;  %157 = vmatmul.mubr.f32.vlgmr.msra.gmra.mrb[0].mxu1 %v21_v51 }
  0x25   :  { %141 = vmatprep.mubr.f32.mxu0 %v26_v52  ;;  %161 = vmatprep.mubr.f32.mxu1 %v30_v53 }
  0x28   :  { %142 = vmatmul.mubr.f32.gmra.mrb[2].mxu0 %v18_v54  ;;  %162 = vmatmul.mubr.f32.gmra.mrb[2].mxu1 %v22_v55 }
  0x29   :  { %146 = vmatprep.mubr.f32.mxu0 %v27_v56  ;;  %166 = vmatprep.mubr.f32.mxu1 %v31_v57 }
  0x2c   :  { %147 = vmatmul.mubr.f32.gmra.mrb[4].mxu0 %v19_v58  ;;  %167 = vmatmul.mubr.f32.gmra.mrb[4].mxu1 %v23_v59 }
  0x2d   :  { %151 = vmatprep.mubr.f32.mxu0 %v28_v60  ;;  %171 = vmatprep.mubr.f32.mxu1 %v32_v61 }
  0x30   :  { %152 = vmatmul.mubr.f32.gmra.mrb[6].mxu0 %v20_v62  ;;  %172 = vmatmul.mubr.f32.gmra.mrb[6].mxu1 %v24_v63 }
  0xf7   :  { %v222_v0 = vpop.f32.mrb[0].mxu0  ;;  %v234_v1 = vpop.f32.mrb[0].mxu1 }
  0xf8   :  { %v223_v3 = vpop.f32.mrb[1].mxu0  ;;  %v235_v4 = vpop.f32.mrb[1].mxu1 }
  0xf9   :  { %v224_v5 = vadd.f32 %v223_v3, %v222_v0  ;;  %v236_v6 = vadd.f32 %v235_v4, %v234_v1 }
  0xfb   :  { %v139_v7 = vadd.f32 %v224_v5, %v189_v2  ;;  %v159_v8 = vadd.f32 %v236_v6, %v189_v2  ;;  %v225_v9 = vpop.f32.mrb[2].mxu0  ;;  %v237_v10 = vpop.f32.mrb[2].mxu1 }
  0xfc   :  { %v226_v11 = vpop.f32.mrb[3].mxu0  ;;  %v238_v12 = vpop.f32.mrb[3].mxu1 }
  0xfd   :  { %177 = vst [vmem:[%s494_s4] sm:$0xff] %v139_v7  ;;  %181 = vst [vmem:[%s494_s4 + $0x20] sm:$0xff] %v159_v8  ;;  %v227_v13 = vadd.f32 %v226_v11, %v225_v9  ;;  %v239_v14 = vadd.f32 %v238_v12, %v237_v10 }
  0xff   :  { %v144_v15 = vadd.f32 %v227_v13, %v189_v2  ;;  %v164_v16 = vadd.f32 %v239_v14, %v189_v2  ;;  %v228_v17 = vpop.f32.mrb[4].mxu0  ;;  %v240_v18 = vpop.f32.mrb[4].mxu1 }
 0x100   :  { %v229_v19 = vpop.f32.mrb[5].mxu0  ;;  %v241_v20 = vpop.f32.mrb[5].mxu1 }
 0x101   :  { %178 = vst [vmem:[%s494_s4 + $0x8] sm:$0xff] %v144_v15  ;;  %182 = vst [vmem:[%s494_s4 + $0x28] sm:$0xff] %v164_v16  ;;  %v230_v21 = vadd.f32 %v229_v19, %v228_v17  ;;  %v242_v22 = vadd.f32 %v241_v20, %v240_v18 }
 0x103   :  { %v149_v23 = vadd.f32 %v230_v21, %v189_v2  ;;  %v169_v24 = vadd.f32 %v242_v22, %v189_v2  ;;  %v231_v25 = vpop.f32.mrb[6].mxu0  ;;  %v243_v26 = vpop.f32.mrb[6].mxu1 }
 0x104   :  { %v232_v27 = vpop.f32.mrb[7].mxu0  ;;  %v244_v28 = vpop.f32.mrb[7].mxu1 }
 0x105   :  { %179 = vst [vmem:[%s494_s4 + $0x10] sm:$0xff] %v149_v23  ;;  %183 = vst [vmem:[%s494_s4 + $0x30] sm:$0xff] %v169_v24  ;;  %v233_v29 = vadd.f32 %v232_v27, %v231_v25  ;;  %v245_v30 = vadd.f32 %v244_v28, %v243_v26 }
 0x107   :  { %v154_v31 = vadd.f32 %v233_v29, %v189_v2  ;;  %v174_v32 = vadd.f32 %v245_v30, %v189_v2 }
 0x109   :  { %180 = vst [vmem:[%s494_s4 + $0x18] sm:$0xff] %v154_v31  ;;  %184 = vst [vmem:[%s494_s4 + $0x38] sm:$0xff] %v174_v32 }

// kernel: bidirectional_lstm_module.2
= control target key start
LH: loop header
LB: loop body
LE: loop exit
PB: predicated region body
PF: predicated region fallthrough
CT: control target
= control target key end

     0   :  { %v9258_v3 = vmov 0.0   ;;  %vm121_vm0 = vcmask 261120   ;;  %s9248_s2 = inlined_call_operand.vmem [shape: f32[32,512], index: 2, kind: input, shape index: {}]   ;;  %s9249_s5 = inlined_call_operand.vmem [shape: f32[32,512], index: 5, kind: input, shape index: {}]   ;;  %s9250_s0 = inlined_call_operand.vmem [shape: f32[64,32], index: 0, kind: input, shape index: {}, may-alias: {0,1}]   ;;  %s9251_s3 = inlined_call_operand.vmem [shape: f32[128,512], index: 3, kind: input, shape index: {}]   ;;  %s9252_s1 = inlined_call_operand.vmem [shape: f32[64,32], index: 1, kind: input, shape index: {}, may-alias: {0,1}]   ;;  %s9253_s6 = inlined_call_operand.vmem [shape: f32[128,512], index: 6, kind: input, shape index: {}]   ;;  %s9254_s4 = inlined_call_operand.vmem [shape: f32[1,512], index: 4, kind: input, shape index: {}]   ;;  %s9255_s7 = inlined_call_operand.vmem [shape: f32[1,512], index: 7, kind: input, shape index: {}]   ;;  %s9256_s8 = inlined_call_operand.vmem [shape: f32[64,128], index: 8, kind: output, shape index: {0}]   ;;  %s9257_s9 = inlined_call_operand.vmem [shape: f32[64,128], index: 9, kind: output, shape index: {1}]  }
   0x1   :  { %v84_v0 = vld [vmem:[%s9248_s2 + $0x8] sm:$0xff]  ;;  %v86_v2 = vld [vmem:[%s9248_s2 + $0x18] sm:$0xff]  ;;  %210 = vmatprep.mubr.f32.mxu0 %v9258_v3  ;;  %323 = vmatprep.mubr.f32.mxu1 %v9258_v3  ;;  %v83_v6 = vld [vmem:[%s9248_s2] sm:$0xff] }
   0x2   :  { %v88_v1 = vld [vmem:[%s9248_s2 + $0x28] sm:$0xff]  ;;  %v90_v5 = vld [vmem:[%s9248_s2 + $0x38] sm:$0xff]  ;;  %v87_v7 = vld [vmem:[%s9248_s2 + $0x20] sm:$0xff] }
   0x3   :  { %v4762_v4 = vpack.c.bf16 %v88_v1, %v84_v0  ;;  %v4770_v8 = vpack.c.bf16 %v90_v5, %v86_v2  ;;  %v4764_v9 = vpack.c.bf16 %v87_v7, %v83_v6  ;;  %v85_v10 = vld [vmem:[%s9248_s2 + $0x10] sm:$0xff]  ;;  %v92_v12 = vld [vmem:[%s9248_s2 + $0x48] sm:$0xff]  ;;  %v94_v15 = vld [vmem:[%s9248_s2 + $0x58] sm:$0xff] }
   0x4   :  { %v89_v11 = vld [vmem:[%s9248_s2 + $0x30] sm:$0xff]  ;;  %v96_v14 = vld [vmem:[%s9248_s2 + $0x68] sm:$0xff]  ;;  %v98_v16 = vld [vmem:[%s9248_s2 + $0x78] sm:$0xff] }
   0x5   :  { %4763 = vmatprep.subr.bf16.mxu0 %v4762_v4  ;;  %v4772_v13 = vpack.c.bf16 %v89_v11, %v85_v10  ;;  %4771 = vmatprep.subr.bf16.mxu1 %v4770_v8  ;;  %v4766_v17 = vpack.c.bf16 %v96_v14, %v92_v12  ;;  %v4774_v18 = vpack.c.bf16 %v98_v16, %v94_v15  ;;  %v91_v19 = vld [vmem:[%s9248_s2 + $0x40] sm:$0xff]  ;;  %v93_v21 = vld [vmem:[%s9248_s2 + $0x50] sm:$0xff]  ;;  %v413_v24 = vld [vmem:[%s9249_s5 + $0x8] sm:$0xff] }
   0x6   :  { %4765 = vmatpush1.bf16.msra.mxu0 %v4764_v9  ;;  %v95_v20 = vld [vmem:[%s9248_s2 + $0x60] sm:$0xff]  ;;  %v97_v23 = vld [vmem:[%s9248_s2 + $0x70] sm:$0xff]  ;;  %v417_v26 = vld [vmem:[%s9249_s5 + $0x28] sm:$0xff] }
   0x7   :  { %4773 = vmatpush1.bf16.msra.mxu1 %v4772_v13  ;;  %v4768_v22 = vpack.c.bf16 %v95_v20, %v91_v19  ;;  %4767 = vmatprep.subr.bf16.mxu0 %v4766_v17  ;;  %v4776_v25 = vpack.c.bf16 %v97_v23, %v93_v21  ;;  %v412_v27 = vld [vmem:[%s9249_s5] sm:$0xff]  ;;  %v4778_v29 = vpack.c.bf16 %v417_v26, %v413_v24  ;;  %v415_v32 = vld [vmem:[%s9249_s5 + $0x18] sm:$0xff]  ;;  %v421_v35 = vld [vmem:[%s9249_s5 + $0x48] sm:$0xff] }
   0x8   :  { %4775 = vmatprep.subr.bf16.mxu1 %v4774_v18  ;;  %v416_v28 = vld [vmem:[%s9249_s5 + $0x20] sm:$0xff]  ;;  %v419_v33 = vld [vmem:[%s9249_s5 + $0x38] sm:$0xff]  ;;  %v425_v36 = vld [vmem:[%s9249_s5 + $0x68] sm:$0xff] }
   0x9   :  { %v75_v30 = vld [vmem:[%s9250_s0] sm:$0xff]  ;;  %v4780_v31 = vpack.c.bf16 %v416_v28, %v412_v27  ;;  %v4786_v34 = vpack.c.bf16 %v419_v33, %v415_v32  ;;  %v414_v37 = vld [vmem:[%s9249_s5 + $0x10] sm:$0xff]  ;;  %v4782_v38 = vpack.c.bf16 %v425_v36, %v421_v35  ;;  %v423_v43 = vld [vmem:[%s9249_s5 + $0x58] sm:$0xff] }
   0xa   :  { %4769 = vmatpush1.bf16.msra.mxu0 %v4768_v22  ;;  %v418_v39 = vld [vmem:[%s9249_s5 + $0x30] sm:$0xff]  ;;  %v420_v40 = vld [vmem:[%s9249_s5 + $0x40] sm:$0xff]  ;;  %v76_v44 = vld [vmem:[%s9250_s0 + $0x8] sm:$0xff] }
   0xb   :  { %4777 = vmatpush1.bf16.msra.mxu1 %v4776_v25  ;;  %4779 = vmatprep.subr.bf16.mxu0 %v4778_v29  ;;  %v424_v41 = vld [vmem:[%s9249_s5 + $0x60] sm:$0xff]  ;;  %v4788_v42 = vpack.c.bf16 %v418_v39, %v414_v37  ;;  %v427_v45 = vld [vmem:[%s9249_s5 + $0x78] sm:$0xff]  ;;  %v422_v46 = vld [vmem:[%s9249_s5 + $0x50] sm:$0xff] }
   0xc   :  { %4787 = vmatprep.subr.bf16.mxu1 %v4786_v34  ;;  %v4784_v47 = vpack.c.bf16 %v424_v41, %v420_v40  ;;  %v4790_v48 = vpack.c.bf16 %v427_v45, %v423_v43  ;;  %v426_v49 = vld [vmem:[%s9249_s5 + $0x70] sm:$0xff]  ;;  %v744_v50 = vld [vmem:[%s9251_s3 + $0x8] sm:$0xff]  ;;  %v746_v54 = vld [vmem:[%s9251_s3 + $0x18] sm:$0xff] }
   0xd   :  { %4668 = vmatmul.mubr.msk.f32.vlgmr.msra.gmra.mrb[0].mxu0 %vm121_vm0, %v75_v30  ;;  %v748_v51 = vld [vmem:[%s9251_s3 + $0x28] sm:$0xff]  ;;  %v4792_v52 = vpack.c.bf16 %v426_v49, %v422_v46  ;;  %v750_v55 = vld [vmem:[%s9251_s3 + $0x38] sm:$0xff]  ;;  %v77_v57 = vld [vmem:[%s9250_s0 + $0x10] sm:$0xff] }
   0xe   :  { %4676 = vmatmul.mubr.msk.f32.vlgmr.msra.gmra.mrb[0].mxu1 %vm121_vm0, %v75_v30  ;;  %4781 = vmatpush1.bf16.msra.mxu0 %v4780_v31  ;;  %v6368_v53 = vpack.c.bf16 %v748_v51, %v744_v50  ;;  %v6377_v56 = vpack.c.bf16 %v750_v55, %v746_v54  ;;  %v78_v58 = vld [vmem:[%s9250_s0 + $0x18] sm:$0xff]  ;;  %v79_v59 = vld [vmem:[%s9250_s0 + $0x20] sm:$0xff]  ;;  %v80_v60 = vld [vmem:[%s9250_s0 + $0x28] sm:$0xff] }
   0xf   :  { %216 = vmatprep.mubr.f32.mxu0 %v9258_v3  ;;  %329 = vmatprep.mubr.f32.mxu1 %v9258_v3  ;;  %v81_v61 = vld [vmem:[%s9250_s0 + $0x30] sm:$0xff]  ;;  %v82_v62 = vld [vmem:[%s9250_s0 + $0x38] sm:$0xff]  ;;  %v743_v63 = vld [vmem:[%s9251_s3] sm:$0xff] }
  0x10   :  { %4783 = vmatprep.subr.bf16.mxu0 %v4782_v38  ;;  %4789 = vmatpush1.bf16.msra.mxu1 %v4788_v42  ;;  %v747_v0 = vld [vmem:[%s9251_s3 + $0x20] sm:$0xff]  ;;  %v745_v1 = vld [vmem:[%s9251_s3 + $0x10] sm:$0xff]  ;;  %v752_v4 = vld [vmem:[%s9251_s3 + $0x48] sm:$0xff] }
  0x11   :  { %4669 = vmatmul.mubr.msk.f32.gmra.mrb[2].mxu0 %vm121_vm0, %v76_v44  ;;  %4791 = vmatprep.subr.bf16.mxu1 %v4790_v48  ;;  %v749_v2 = vld [vmem:[%s9251_s3 + $0x30] sm:$0xff]  ;;  %v756_v5 = vld [vmem:[%s9251_s3 + $0x68] sm:$0xff]  ;;  %v404_v6 = vld [vmem:[%s9252_s1] sm:$0xff]  ;;  %v6446_v7 = vpack.c.bf16 %v747_v0, %v743_v63 }
  0x12   :  { %4677 = vmatmul.mubr.msk.f32.gmra.mrb[2].mxu1 %vm121_vm0, %v76_v44  ;;  %222 = vmatprep.mubr.f32.mxu0 %v9258_v3  ;;  %v754_v8 = vld [vmem:[%s9251_s3 + $0x58] sm:$0xff]  ;;  %v6455_v10 = vpack.c.bf16 %v749_v2, %v745_v1  ;;  %v751_v11 = vld [vmem:[%s9251_s3 + $0x40] sm:$0xff]  ;;  %v6463_v13 = vpack.c.bf16 %v756_v5, %v752_v4  ;;  %v753_v14 = vld [vmem:[%s9251_s3 + $0x50] sm:$0xff] }
  0x13   :  { %335 = vmatprep.mubr.f32.mxu1 %v9258_v3  ;;  %4785 = vmatpush1.bf16.msra.mxu0 %v4784_v47  ;;  %v758_v9 = vld [vmem:[%s9251_s3 + $0x78] sm:$0xff]  ;;  %v755_v12 = vld [vmem:[%s9251_s3 + $0x60] sm:$0xff]  ;;  %v757_v15 = vld [vmem:[%s9251_s3 + $0x70] sm:$0xff] }
  0x14   :  { %4793 = vmatpush1.bf16.msra.mxu1 %v4792_v52  ;;  %4795 = vmatprep.subr.bf16.mxu0 %v6368_v53  ;;  %v6472_v16 = vpack.c.bf16 %v758_v9, %v754_v8  ;;  %v760_v17 = vld [vmem:[%s9251_s3 + $0x88] sm:$0xff]  ;;  %v6485_v20 = vpack.c.bf16 %v755_v12, %v751_v11  ;;  %v762_v21 = vld [vmem:[%s9251_s3 + $0x98] sm:$0xff]  ;;  %v6495_v23 = vpack.c.bf16 %v757_v15, %v753_v14  ;;  %v759_v24 = vld [vmem:[%s9251_s3 + $0x80] sm:$0xff] }
  0x15   :  { %4670 = vmatmul.mubr.msk.f32.gmra.mrb[4].mxu0 %vm121_vm0, %v77_v57  ;;  %4827 = vmatprep.subr.bf16.mxu1 %v6377_v56  ;;  %v764_v18 = vld [vmem:[%s9251_s3 + $0xa8] sm:$0xff]  ;;  %v766_v22 = vld [vmem:[%s9251_s3 + $0xb8] sm:$0xff]  ;;  %v763_v25 = vld [vmem:[%s9251_s3 + $0xa0] sm:$0xff] }
  0x16   :  { %4678 = vmatmul.mubr.msk.f32.gmra.mrb[4].mxu1 %vm121_vm0, %v77_v57  ;;  %228 = vmatprep.mubr.f32.mxu0 %v9258_v3  ;;  %v405_v19 = vld [vmem:[%s9252_s1 + $0x8] sm:$0xff]  ;;  %v6505_v26 = vpack.c.bf16 %v764_v18, %v760_v17  ;;  %v761_v27 = vld [vmem:[%s9251_s3 + $0x90] sm:$0xff]  ;;  %v6515_v29 = vpack.c.bf16 %v766_v22, %v762_v21  ;;  %v6528_v33 = vpack.c.bf16 %v763_v25, %v759_v24  ;;  %v770_v34 = vld [vmem:[%s9251_s3 + $0xd8] sm:$0xff] }
  0x17   :  { %341 = vmatprep.mubr.f32.mxu1 %v9258_v3  ;;  %v765_v28 = vld [vmem:[%s9251_s3 + $0xb0] sm:$0xff]  ;;  %v768_v30 = vld [vmem:[%s9251_s3 + $0xc8] sm:$0xff]  ;;  %v774_v35 = vld [vmem:[%s9251_s3 + $0xf8] sm:$0xff] }
  0x18   :  { %v772_v31 = vld [vmem:[%s9251_s3 + $0xe8] sm:$0xff]  ;;  %v406_v32 = vld [vmem:[%s9252_s1 + $0x10] sm:$0xff]  ;;  %v6538_v36 = vpack.c.bf16 %v765_v28, %v761_v27  ;;  %v767_v37 = vld [vmem:[%s9251_s3 + $0xc0] sm:$0xff]  ;;  %v6558_v42 = vpack.c.bf16 %v774_v35, %v770_v34 }
  0x19   :  { %4671 = vmatmul.mubr.msk.f32.gmra.mrb[6].mxu0 %vm121_vm0, %v78_v58  ;;  %v771_v38 = vld [vmem:[%s9251_s3 + $0xe0] sm:$0xff]  ;;  %v6548_v39 = vpack.c.bf16 %v772_v31, %v768_v30  ;;  %v769_v40 = vld [vmem:[%s9251_s3 + $0xd0] sm:$0xff]  ;;  %v776_v43 = vld [vmem:[%s9251_s3 + $0x108] sm:$0xff] }
  0x1a   :  { %4679 = vmatmul.mubr.msk.f32.gmra.mrb[6].mxu1 %vm121_vm0, %v78_v58  ;;  %234 = vmatprep.mubr.f32.mxu0 %v9258_v3  ;;  %v773_v41 = vld [vmem:[%s9251_s3 + $0xf0] sm:$0xff]  ;;  %v780_v44 = vld [vmem:[%s9251_s3 + $0x128] sm:$0xff]  ;;  %v407_v45 = vld [vmem:[%s9252_s1 + $0x18] sm:$0xff]  ;;  %v6571_v46 = vpack.c.bf16 %v771_v38, %v767_v37 }
  0x1b   :  { %347 = vmatprep.mubr.f32.mxu1 %v9258_v3  ;;  %v778_v47 = vld [vmem:[%s9251_s3 + $0x118] sm:$0xff]  ;;  %v6581_v49 = vpack.c.bf16 %v773_v41, %v769_v40  ;;  %v775_v50 = vld [vmem:[%s9251_s3 + $0x100] sm:$0xff]  ;;  %v6591_v52 = vpack.c.bf16 %v780_v44, %v776_v43  ;;  %v777_v54 = vld [vmem:[%s9251_s3 + $0x110] sm:$0xff] }
  0x1c   :  { %v782_v48 = vld [vmem:[%s9251_s3 + $0x138] sm:$0xff]  ;;  %v779_v51 = vld [vmem:[%s9251_s3 + $0x120] sm:$0xff]  ;;  %v781_v55 = vld [vmem:[%s9251_s3 + $0x130] sm:$0xff] }
  0x1d   :  { %4672 = vmatmul.mubr.msk.f32.gmra.mrb[8].mxu0 %vm121_vm0, %v79_v59  ;;  %v6601_v57 = vpack.c.bf16 %v782_v48, %v778_v47  ;;  %v784_v58 = vld [vmem:[%s9251_s3 + $0x148] sm:$0xff]  ;;  %v790_v63 = vld [vmem:[%s9251_s3 + $0x178] sm:$0xff]  ;;  %v6624_v0 = vpack.c.bf16 %v781_v55, %v777_v54  ;;  %v783_v1 = vld [vmem:[%s9251_s3 + $0x140] sm:$0xff] }
  0x1e   :  { %4680 = vmatmul.mubr.msk.f32.gmra.mrb[8].mxu1 %vm121_vm0, %v79_v59  ;;  %240 = vmatprep.mubr.f32.mxu0 %v9258_v3  ;;  %v788_v59 = vld [vmem:[%s9251_s3 + $0x168] sm:$0xff]  ;;  %v787_v2 = vld [vmem:[%s9251_s3 + $0x160] sm:$0xff]  ;;  %v785_v5 = vld [vmem:[%s9251_s3 + $0x150] sm:$0xff] }
  0x1f   :  { %353 = vmatprep.mubr.f32.mxu1 %v9258_v3  ;;  %v6634_v4 = vpack.c.bf16 %v788_v59, %v784_v58  ;;  %v792_v9 = vld [vmem:[%s9251_s3 + $0x188] sm:$0xff]  ;;  %v6657_v14 = vpack.c.bf16 %v787_v2, %v783_v1  ;;  %v794_v15 = vld [vmem:[%s9251_s3 + $0x198] sm:$0xff]  ;;  %v795_v21 = vld [vmem:[%s9251_s3 + $0x1a0] sm:$0xff] }
  0x20   :  { %v796_v11 = vld [vmem:[%s9251_s3 + $0x1a8] sm:$0xff]  ;;  %v798_v17 = vld [vmem:[%s9251_s3 + $0x1b8] sm:$0xff]  ;;  %v793_v24 = vld [vmem:[%s9251_s3 + $0x190] sm:$0xff] }
  0x21   :  { %4673 = vmatmul.mubr.msk.f32.gmra.mrb[10].mxu0 %vm121_vm0, %v80_v60  ;;  %v409_v12 = vld [vmem:[%s9252_s1 + $0x28] sm:$0xff]  ;;  %v6677_v22 = vpack.c.bf16 %v796_v11, %v792_v9  ;;  %v797_v25 = vld [vmem:[%s9251_s3 + $0x1b0] sm:$0xff]  ;;  %v6687_v27 = vpack.c.bf16 %v798_v17, %v794_v15  ;;  %v802_v34 = vld [vmem:[%s9251_s3 + $0x1d8] sm:$0xff] }
  0x22   :  { %4681 = vmatmul.mubr.msk.f32.gmra.mrb[10].mxu1 %vm121_vm0, %v80_v60  ;;  %246 = vmatprep.mubr.f32.mxu0 %v9258_v3  ;;  %v408_v60 = vld [vmem:[%s9252_s1 + $0x20] sm:$0xff]  ;;  %v800_v28 = vld [vmem:[%s9251_s3 + $0x1c8] sm:$0xff]  ;;  %v410_v31 = vld [vmem:[%s9252_s1 + $0x30] sm:$0xff]  ;;  %v6710_v37 = vpack.c.bf16 %v797_v25, %v793_v24 }
  0x23   :  { %359 = vmatprep.mubr.f32.mxu1 %v9258_v3  ;;  %v804_v30 = vld [vmem:[%s9251_s3 + $0x1e8] sm:$0xff]  ;;  %v806_v35 = vld [vmem:[%s9251_s3 + $0x1f8] sm:$0xff]  ;;  %v799_v38 = vld [vmem:[%s9251_s3 + $0x1c0] sm:$0xff] }
  0x24   :  { %v803_v40 = vld [vmem:[%s9251_s3 + $0x1e0] sm:$0xff]  ;;  %v6720_v41 = vpack.c.bf16 %v804_v30, %v800_v28  ;;  %v801_v43 = vld [vmem:[%s9251_s3 + $0x1d0] sm:$0xff]  ;;  %v961_v47 = vld [vmem:[%s9253_s6 + $0x8] sm:$0xff] }
  0x25   :  { %4674 = vmatmul.mubr.msk.f32.gmra.mrb[12].mxu0 %vm121_vm0, %v81_v61  ;;  %v805_v44 = vld [vmem:[%s9251_s3 + $0x1f0] sm:$0xff]  ;;  %v965_v48 = vld [vmem:[%s9253_s6 + $0x28] sm:$0xff]  ;;  %v963_v54 = vld [vmem:[%s9253_s6 + $0x18] sm:$0xff] }
  0x26   :  { %4682 = vmatmul.mubr.msk.f32.gmra.mrb[12].mxu1 %vm121_vm0, %v81_v61  ;;  %252 = vmatprep.mubr.f32.mxu0 %v9258_v3  ;;  %v6614_v61 = vpack.c.bf16 %v779_v51, %v775_v50  ;;  %v411_v50 = vld [vmem:[%s9252_s1 + $0x38] sm:$0xff]  ;;  %v6743_v51 = vpack.c.bf16 %v803_v40, %v799_v38  ;;  %v6753_v58 = vpack.c.bf16 %v805_v44, %v801_v43  ;;  %v960_v59 = vld [vmem:[%s9253_s6] sm:$0xff]  ;;  %v966_v1 = vld [vmem:[%s9253_s6 + $0x30] sm:$0xff] }
  0x27   :  { %365 = vmatprep.mubr.f32.mxu1 %v9258_v3  ;;  %v967_v55 = vld [vmem:[%s9253_s6 + $0x38] sm:$0xff]  ;;  %v969_v2 = vld [vmem:[%s9253_s6 + $0x48] sm:$0xff]  ;;  %v970_v24 = vld [vmem:[%s9253_s6 + $0x50] sm:$0xff] }
  0x28   :  { %v971_v9 = vld [vmem:[%s9253_s6 + $0x58] sm:$0xff]  ;;  %v974_v28 = vld [vmem:[%s9253_s6 + $0x70] sm:$0xff]  ;;  %v977_v30 = vld [vmem:[%s9253_s6 + $0x88] sm:$0xff] }
  0x29   :  { %4675 = vmatmul.mubr.msk.f32.gmra.mrb[14].mxu0 %vm121_vm0, %v82_v62  ;;  %v975_v11 = vld [vmem:[%s9253_s6 + $0x78] sm:$0xff]  ;;  %v6833_v40 = vpack.c.bf16 %v974_v28, %v970_v24  ;;  %v976_v44 = vld [vmem:[%s9253_s6 + $0x80] sm:$0xff]  ;;  %v990_v24 = vld [vmem:[%s9253_s6 + $0xf0] sm:$0xff] }
  0x2a   :  { %4683 = vmatmul.mubr.msk.f32.gmra.mrb[14].mxu1 %vm121_vm0, %v82_v62  ;;  %538 = vmatprep.mubr.f32.mxu0 %v9258_v3  ;;  %v786_v62 = vld [vmem:[%s9251_s3 + $0x158] sm:$0xff]  ;;  %v6808_v25 = vpack.c.bf16 %v975_v11, %v971_v9  ;;  %v984_v9 = vld [vmem:[%s9253_s6 + $0xc0] sm:$0xff]  ;;  %v993_v28 = vld [vmem:[%s9253_s6 + $0x108] sm:$0xff] }
  0x2b   :  { %651 = vmatprep.mubr.f32.mxu1 %v9258_v3  ;;  %v6644_v8 = vpack.c.bf16 %v790_v63, %v786_v62  ;;  %v962_v62 = vld [vmem:[%s9253_s6 + $0x10] sm:$0xff]  ;;  %v6766_v63 = vpack.c.bf16 %v965_v48, %v961_v47  ;;  %v980_v47 = vld [vmem:[%s9253_s6 + $0xa0] sm:$0xff] }
  0x2c   :  { %v6793_v15 = vpack.c.bf16 %v966_v1, %v962_v62  ;;  %v978_v48 = vld [vmem:[%s9253_s6 + $0x90] sm:$0xff]  ;;  %v991_v62 = vld [vmem:[%s9253_s6 + $0xf8] sm:$0xff]  ;;  %v6867_v1 = vpack.c.bf16 %v980_v47, %v976_v44  ;;  %v988_v11 = vld [vmem:[%s9253_s6 + $0xe0] sm:$0xff] }
  0x2d   :  { %4684 = vmatmul.mubr.msk.f32.vlgmr.msra.gmra.mrb[16].mxu0 %vm121_vm0, %v404_v6 }
  0x2e   :  { %4692 = vmatmul.mubr.msk.f32.vlgmr.msra.gmra.mrb[16].mxu1 %vm121_vm0, %v404_v6  ;;  %4797 = vmatpush1.bf16.msra.mxu0 %v6446_v7  ;;  %v789_v6 = vld [vmem:[%s9251_s3 + $0x170] sm:$0xff] }
  0x2f   :  { %4829 = vmatpush1.bf16.msra.mxu1 %v6455_v10  ;;  %544 = vmatprep.mubr.f32.mxu0 %v9258_v3  ;;  %v6667_v18 = vpack.c.bf16 %v789_v6, %v785_v5  ;;  %v973_v5 = vld [vmem:[%s9253_s6 + $0x68] sm:$0xff]  ;;  %v6779_v6 = vpack.c.bf16 %v967_v55, %v963_v54  ;;  %v982_v54 = vld [vmem:[%s9253_s6 + $0xb0] sm:$0xff] }
  0x30   :  { %657 = vmatprep.mubr.f32.mxu1 %v9258_v3  ;;  %4799 = vmatprep.subr.bf16.mxu0 %v6463_v13  ;;  %v6795_v17 = vpack.c.bf16 %v973_v5, %v969_v2  ;;  %v985_v55 = vld [vmem:[%s9253_s6 + $0xc8] sm:$0xff]  ;;  %v6871_v2 = vpack.c.bf16 %v982_v54, %v978_v48  ;;  %v992_v48 = vld [vmem:[%s9253_s6 + $0x100] sm:$0xff] }
  0x31   :  { %4831 = vmatprep.subr.bf16.mxu1 %v6472_v16  ;;  %4685 = vmatmul.mubr.msk.f32.gmra.mrb[18].mxu0 %vm121_vm0, %v405_v19  ;;  %v996_v54 = vld [vmem:[%s9253_s6 + $0x120] sm:$0xff] }
  0x32   :  { %4693 = vmatmul.mubr.msk.f32.gmra.mrb[18].mxu1 %vm121_vm0, %v405_v19  ;;  %4801 = vmatpush1.bf16.msra.mxu0 %v6485_v20  ;;  %v791_v19 = vld [vmem:[%s9251_s3 + $0x180] sm:$0xff] }
  0x33   :  { %4833 = vmatpush1.bf16.msra.mxu1 %v6495_v23  ;;  %550 = vmatprep.mubr.f32.mxu0 %v9258_v3 }
  0x34   :  { %663 = vmatprep.mubr.f32.mxu1 %v9258_v3  ;;  %4803 = vmatprep.subr.bf16.mxu0 %v6505_v26 }
  0x35   :  { %4835 = vmatprep.subr.bf16.mxu1 %v6515_v29  ;;  %4686 = vmatmul.mubr.msk.f32.gmra.mrb[20].mxu0 %vm121_vm0, %v406_v32 }
  0x36   :  { %4694 = vmatmul.mubr.msk.f32.gmra.mrb[20].mxu1 %vm121_vm0, %v406_v32  ;;  %4805 = vmatpush1.bf16.msra.mxu0 %v6528_v33  ;;  %v6700_v32 = vpack.c.bf16 %v795_v21, %v791_v19  ;;  %v968_v19 = vld [vmem:[%s9253_s6 + $0x40] sm:$0xff] }
  0x37   :  { %4837 = vmatpush1.bf16.msra.mxu1 %v6538_v36  ;;  %556 = vmatprep.mubr.f32.mxu0 %v9258_v3  ;;  %v972_v21 = vld [vmem:[%s9253_s6 + $0x60] sm:$0xff] }
  0x38   :  { %669 = vmatprep.mubr.f32.mxu1 %v9258_v3  ;;  %4807 = vmatprep.subr.bf16.mxu0 %v6548_v39  ;;  %v6829_v38 = vpack.c.bf16 %v972_v21, %v968_v19  ;;  %v986_v19 = vld [vmem:[%s9253_s6 + $0xd0] sm:$0xff] }
  0x39   :  { %4839 = vmatprep.subr.bf16.mxu1 %v6558_v42  ;;  %4687 = vmatmul.mubr.msk.f32.gmra.mrb[22].mxu0 %vm121_vm0, %v407_v45  ;;  %v6907_v44 = vpack.c.bf16 %v990_v24, %v986_v19  ;;  %v1007_v19 = vld [vmem:[%s9253_s6 + $0x178] sm:$0xff]  ;;  %v6939_v24 = vpack.c.bf16 %v996_v54, %v992_v48  ;;  %v1002_v48 = vld [vmem:[%s9253_s6 + $0x150] sm:$0xff] }
  0x3a   :  { %4695 = vmatmul.mubr.msk.f32.gmra.mrb[22].mxu1 %vm121_vm0, %v407_v45  ;;  %4809 = vmatpush1.bf16.msra.mxu0 %v6571_v46  ;;  %v6730_v45 = vpack.c.bf16 %v806_v35, %v802_v34  ;;  %v979_v34 = vld [vmem:[%s9253_s6 + $0x98] sm:$0xff] }
  0x3b   :  { %4841 = vmatpush1.bf16.msra.mxu1 %v6581_v49  ;;  %562 = vmatprep.mubr.f32.mxu0 %v9258_v3  ;;  %v983_v35 = vld [vmem:[%s9253_s6 + $0xb8] sm:$0xff]  ;;  %9327 = vst [vmem:[#allocation8_spill] sm:$0xff] %v6907_v44  ;;  %9330 = vst [vmem:[#allocation11_spill] sm:$0xff] %v6939_v24 }
  0x3c   :  { %675 = vmatprep.mubr.f32.mxu1 %v9258_v3  ;;  %4811 = vmatprep.subr.bf16.mxu0 %v6591_v52 }
  0x3d   :  { %4843 = vmatprep.subr.bf16.mxu1 %v6601_v57  ;;  %4688 = vmatmul.mubr.msk.f32.gmra.mrb[24].mxu0 %vm121_vm0, %v408_v60 }
  0x3e   :  { %4696 = vmatmul.mubr.msk.f32.gmra.mrb[24].mxu1 %vm121_vm0, %v408_v60  ;;  %4813 = vmatpush1.bf16.msra.mxu0 %v6614_v61  ;;  %v964_v60 = vld [vmem:[%s9253_s6 + $0x20] sm:$0xff] }
  0x3f   :  { %4845 = vmatpush1.bf16.msra.mxu1 %v6624_v0  ;;  %568 = vmatprep.mubr.f32.mxu0 %v9258_v3 }
  0x40   :  { %681 = vmatprep.mubr.f32.mxu1 %v9258_v3  ;;  %4815 = vmatprep.subr.bf16.mxu0 %v6634_v4 }
  0x41   :  { %4847 = vmatprep.subr.bf16.mxu1 %v6644_v8  ;;  %4689 = vmatmul.mubr.msk.f32.gmra.mrb[26].mxu0 %vm121_vm0, %v409_v12 }
  0x42   :  { %4697 = vmatmul.mubr.msk.f32.gmra.mrb[26].mxu1 %vm121_vm0, %v409_v12  ;;  %4817 = vmatpush1.bf16.msra.mxu0 %v6657_v14  ;;  %v6789_v12 = vpack.c.bf16 %v964_v60, %v960_v59  ;;  %v989_v59 = vld [vmem:[%s9253_s6 + $0xe8] sm:$0xff]  ;;  %v987_v60 = vld [vmem:[%s9253_s6 + $0xd8] sm:$0xff] }
  0x43   :  { %4849 = vmatpush1.bf16.msra.mxu1 %v6667_v18  ;;  %574 = vmatprep.mubr.f32.mxu0 %v9258_v3  ;;  %v6873_v5 = vpack.c.bf16 %v989_v59, %v985_v55  ;;  %v6885_v21 = vpack.c.bf16 %v991_v62, %v987_v60  ;;  %v994_v55 = vld [vmem:[%s9253_s6 + $0x110] sm:$0xff]  ;;  %v1001_v62 = vld [vmem:[%s9253_s6 + $0x148] sm:$0xff] }
  0x44   :  { %687 = vmatprep.mubr.f32.mxu1 %v9258_v3  ;;  %4819 = vmatprep.subr.bf16.mxu0 %v6677_v22  ;;  %v998_v60 = vld [vmem:[%s9253_s6 + $0x130] sm:$0xff] }
  0x45   :  { %4851 = vmatprep.subr.bf16.mxu1 %v6687_v27  ;;  %4690 = vmatmul.mubr.msk.f32.gmra.mrb[28].mxu0 %vm121_vm0, %v410_v31 }
  0x46   :  { %4698 = vmatmul.mubr.msk.f32.gmra.mrb[28].mxu1 %vm121_vm0, %v410_v31  ;;  %4821 = vmatpush1.bf16.msra.mxu0 %v6700_v32  ;;  %v981_v31 = vld [vmem:[%s9253_s6 + $0xa8] sm:$0xff] }
  0x47   :  { %4853 = vmatpush1.bf16.msra.mxu1 %v6710_v37  ;;  %580 = vmatprep.mubr.f32.mxu0 %v9258_v3  ;;  %v6835_v43 = vpack.c.bf16 %v981_v31, %v977_v30  ;;  %v997_v30 = vld [vmem:[%s9253_s6 + $0x128] sm:$0xff]  ;;  %v995_v31 = vld [vmem:[%s9253_s6 + $0x118] sm:$0xff] }
  0x48   :  { %693 = vmatprep.mubr.f32.mxu1 %v9258_v3  ;;  %4823 = vmatprep.subr.bf16.mxu0 %v6720_v41  ;;  %v6909_v47 = vpack.c.bf16 %v997_v30, %v993_v28  ;;  %v6943_v28 = vpack.c.bf16 %v998_v60, %v994_v55  ;;  %v1006_v55 = vld [vmem:[%s9253_s6 + $0x170] sm:$0xff]  ;;  %v1009_v60 = vld [vmem:[%s9253_s6 + $0x188] sm:$0xff] }
  0x49   :  { %4855 = vmatprep.subr.bf16.mxu1 %v6730_v45  ;;  %4691 = vmatmul.mubr.msk.f32.gmra.mrb[30].mxu0 %vm121_vm0, %v411_v50 }
  0x4a   :  { %4699 = vmatmul.mubr.msk.f32.gmra.mrb[30].mxu1 %vm121_vm0, %v411_v50  ;;  %4825 = vmatpush1.bf16.msra.mxu0 %v6743_v51  ;;  %v6847_v50 = vpack.c.bf16 %v983_v35, %v979_v34  ;;  %v999_v34 = vld [vmem:[%s9253_s6 + $0x138] sm:$0xff]  ;;  %v6903_v35 = vpack.c.bf16 %v988_v11, %v984_v9  ;;  %9328 = vst [vmem:[#allocation9_spill] sm:$0xff] %v6909_v47  ;;  %v1005_v9 = vld [vmem:[%s9253_s6 + $0x168] sm:$0xff]  ;;  %9331 = vst [vmem:[#allocation12_spill] sm:$0xff] %v6943_v28 }
  0x4b   :  { %4857 = vmatpush1.bf16.msra.mxu1 %v6753_v58  ;;  %871 = vmatprep.mubr.f32.mxu0 %v9258_v3  ;;  %v6921_v59 = vpack.c.bf16 %v999_v34, %v995_v31  ;;  %v1003_v11 = vld [vmem:[%s9253_s6 + $0x158] sm:$0xff]  ;;  %v6945_v30 = vpack.c.bf16 %v1005_v9, %v1001_v62  ;;  %v1000_v31 = vld [vmem:[%s9253_s6 + $0x140] sm:$0xff]  ;;  %v1013_v62 = vld [vmem:[%s9253_s6 + $0x1a8] sm:$0xff] }
  0x4c   :  { %942 = vmatprep.mubr.f32.mxu1 %v9258_v3  ;;  %4859 = vmatprep.subr.bf16.mxu0 %v6766_v63  ;;  %v1004_v34 = vld [vmem:[%s9253_s6 + $0x160] sm:$0xff]  ;;  %v6957_v54 = vpack.c.bf16 %v1007_v19, %v1003_v11  ;;  %v1011_v9 = vld [vmem:[%s9253_s6 + $0x198] sm:$0xff] }
  0x4d   :  { %4891 = vmatprep.subr.bf16.mxu1 %v6779_v6  ;;  %872 = vmatmul.mubr.f32.vlgmr.msra.gmra.mrb[0].mxu0 %v9258_v3  ;;  %9329 = vst [vmem:[#allocation10_spill] sm:$0xff] %v6921_v59  ;;  %9332 = vst [vmem:[#allocation13_spill] sm:$0xff] %v6945_v30  ;;  %v1015_v11 = vld [vmem:[%s9253_s6 + $0x1b8] sm:$0xff]  ;;  %v6975_v19 = vpack.c.bf16 %v1004_v34, %v1000_v31  ;;  %v1010_v31 = vld [vmem:[%s9253_s6 + $0x190] sm:$0xff] }
  0x4e   :  { %943 = vmatmul.mubr.f32.vlgmr.msra.gmra.mrb[0].mxu1 %v9258_v3  ;;  %4861 = vmatpush1.bf16.msra.mxu0 %v6789_v12  ;;  %9333 = vst [vmem:[#allocation14_spill] sm:$0xff] %v6957_v54  ;;  %v6993_v34 = vpack.c.bf16 %v1015_v11, %v1011_v9  ;;  %v1023_v9 = vld [vmem:[%s9253_s6 + $0x1f8] sm:$0xff] }
  0x4f   :  { %4893 = vmatpush1.bf16.msra.mxu1 %v6793_v15  ;;  %4863 = vmatprep.subr.bf16.mxu0 %v6795_v17 }
  0x50   :  { %4895 = vmatprep.subr.bf16.mxu1 %v6808_v25  ;;  %1088 = vmatprep.mubr.f32.mxu0 %v9258_v3 }
  0x51   :  { %1159 = vmatprep.mubr.f32.mxu1 %v9258_v3  ;;  %v6979_v3 = vpack.c.bf16 %v1006_v55, %v1002_v48  ;;  %v1014_v48 = vld [vmem:[%s9253_s6 + $0x1b0] sm:$0xff]  ;;  %v1017_v55 = vld [vmem:[%s9253_s6 + $0x1c8] sm:$0xff] }
  0x52   :  { %4865 = vmatpush1.bf16.msra.mxu0 %v6829_v38 }
  0x53   :  { %4897 = vmatpush1.bf16.msra.mxu1 %v6833_v40  ;;  %4867 = vmatprep.subr.bf16.mxu0 %v6835_v43 }
  0x54   :  { %4899 = vmatprep.subr.bf16.mxu1 %v6847_v50 }
  0x56   :  { %4869 = vmatpush1.bf16.msra.mxu0 %v6867_v1 }
  0x57   :  { %4901 = vmatpush1.bf16.msra.mxu1 %v6871_v2  ;;  %4871 = vmatprep.subr.bf16.mxu0 %v6873_v5 }
  0x58   :  { %4903 = vmatprep.subr.bf16.mxu1 %v6885_v21 }
  0x5a   :  { %4873 = vmatpush1.bf16.msra.mxu0 %v6903_v35 }
  0x5b   :  { %4905 = vmatpush1.bf16.msra.mxu1 %v6907_v44  ;;  %4875 = vmatprep.subr.bf16.mxu0 %v6909_v47  ;;  %v1008_v47 = vld [vmem:[%s9253_s6 + $0x180] sm:$0xff] }
  0x5c   :  { %4907 = vmatprep.subr.bf16.mxu1 %v6921_v59  ;;  %v6981_v59 = vpack.c.bf16 %v1013_v62, %v1009_v60  ;;  %v1012_v44 = vld [vmem:[%s9253_s6 + $0x1a0] sm:$0xff]  ;;  %v1021_v60 = vld [vmem:[%s9253_s6 + $0x1e8] sm:$0xff]  ;;  %v1019_v62 = vld [vmem:[%s9253_s6 + $0x1d8] sm:$0xff] }
  0x5d   :  { %v7011_v11 = vpack.c.bf16 %v1012_v44, %v1008_v47  ;;  %v7026_v44 = vpack.c.bf16 %v1023_v9, %v1019_v62  ;;  %v1018_v47 = vld [vmem:[%s9253_s6 + $0x1d0] sm:$0xff] }
  0x5e   :  { %4877 = vmatpush1.bf16.msra.mxu0 %v6939_v24  ;;  %v1020_v24 = vld [vmem:[%s9253_s6 + $0x1e0] sm:$0xff] }
  0x5f   :  { %4909 = vmatpush1.bf16.msra.mxu1 %v6943_v28  ;;  %4879 = vmatprep.subr.bf16.mxu0 %v6945_v30  ;;  %v7017_v30 = vpack.c.bf16 %v1021_v60, %v1017_v55  ;;  %v1016_v28 = vld [vmem:[%s9253_s6 + $0x1c0] sm:$0xff]  ;;  %v9334_v60 = vmov 0.0  }
  0x60   :  { %4911 = vmatprep.subr.bf16.mxu1 %v6957_v54  ;;  %v7015_v54 = vpack.c.bf16 %v1014_v48, %v1010_v31  ;;  %v1022_v31 = vld [vmem:[%s9253_s6 + $0x1f0] sm:$0xff]  ;;  %v7035_v48 = vpack.c.bf16 %v1020_v24, %v1016_v28 }
  0x61   :  { %v7039_v55 = vpack.c.bf16 %v1022_v31, %v1018_v47 }
  0x62   :  { %4881 = vmatpush1.bf16.msra.mxu0 %v6975_v19 }
  0x63   :  { %4913 = vmatpush1.bf16.msra.mxu1 %v6979_v3  ;;  %4883 = vmatprep.subr.bf16.mxu0 %v6981_v59 }
  0x64   :  { %4915 = vmatprep.subr.bf16.mxu1 %v6993_v34 }
  0x66   :  { %4885 = vmatpush1.bf16.msra.mxu0 %v7011_v11 }
  0x67   :  { %4917 = vmatpush1.bf16.msra.mxu1 %v7015_v54  ;;  %4887 = vmatprep.subr.bf16.mxu0 %v7017_v30 }
  0x68   :  { %4919 = vmatprep.subr.bf16.mxu1 %v7026_v44 }
  0x6a   :  { %4889 = vmatpush1.bf16.msra.mxu0 %v7035_v48 }
  0x6b   :  { %4921 = vmatpush1.bf16.msra.mxu1 %v7039_v55  ;;  %4923 = vmatprep.subr.bf16.mxu0 %v6368_v53  ;;  %v101_v53 = vlaneseq }
  0x6c   :  { %4955 = vmatprep.subr.bf16.mxu1 %v6377_v56 }
  0x6d   :  { %1089 = vmatmul.mubr.f32.vlgmr.msra.gmra.mrb[30].mxu0 %v9334_v60  ;;  %v102_v56 = vshrl.u32 %v101_v53, 7 }
  0x6e   :  { %1160 = vmatmul.mubr.f32.vlgmr.msra.gmra.mrb[30].mxu1 %v9334_v60  ;;  %4925 = vmatpush1.bf16.msra.mxu0 %v6446_v7 }
  0x6f   :  { %4957 = vmatpush1.bf16.msra.mxu1 %v6455_v10  ;;  %4927 = vmatprep.subr.bf16.mxu0 %v6463_v13  ;;  %v103_v7 = vsub.s32 0, %v102_v56  ;;  %v99_v10 = vld [vmem:[%s9254_s4] sm:$0xf]  ;;  %v107_v13 = vsub.s32 1, %v102_v56 }
  0x70   :  { %4959 = vmatprep.subr.bf16.mxu1 %v6472_v16  ;;  %1356 = vmatprep.mubr.f32.mxu0 %v9334_v60 }
  0x71   :  { %1427 = vmatprep.mubr.f32.mxu1 %v9334_v60  ;;  %v7085_v16 = vrot.slane %v99_v10, %v103_v7 }
  0x72   :  { %4929 = vmatpush1.bf16.msra.mxu0 %v6485_v20  ;;  %v7087_v20 = vrot.slane %v99_v10, %v107_v13 }
  0x73   :  { %4961 = vmatpush1.bf16.msra.mxu1 %v6495_v23  ;;  %4931 = vmatprep.subr.bf16.mxu0 %v6505_v26  ;;  %v115_v26 = vsub.s32 3, %v102_v56 }
  0x74   :  { %4963 = vmatprep.subr.bf16.mxu1 %v6515_v29 }
  0x76   :  { %4933 = vmatpush1.bf16.msra.mxu0 %v6528_v33 }
  0x77   :  { %4965 = vmatpush1.bf16.msra.mxu1 %v6538_v36  ;;  %4935 = vmatprep.subr.bf16.mxu0 %v6548_v39 }
  0x78   :  { %4967 = vmatprep.subr.bf16.mxu1 %v6558_v42 }
  0x7a   :  { %4937 = vmatpush1.bf16.msra.mxu0 %v6571_v46 }
  0x7b   :  { %4969 = vmatpush1.bf16.msra.mxu1 %v6581_v49  ;;  %4939 = vmatprep.subr.bf16.mxu0 %v6591_v52  ;;  %v7091_v52 = vrot.slane %v99_v10, %v115_v26 }
  0x7c   :  { %4971 = vmatprep.subr.bf16.mxu1 %v6601_v57  ;;  %v111_v57 = vsub.s32 2, %v102_v56 }
  0x7e   :  { %4941 = vmatpush1.bf16.msra.mxu0 %v6614_v61 }
  0x7f   :  { %4973 = vmatpush1.bf16.msra.mxu1 %v6624_v0  ;;  %4943 = vmatprep.subr.bf16.mxu0 %v6634_v4  ;;  %v7094_v0 = vrot.slane %v99_v10, %v111_v57 }
  0x80   :  { %4975 = vmatprep.subr.bf16.mxu1 %v6644_v8 }
  0x82   :  { %4945 = vmatpush1.bf16.msra.mxu0 %v6657_v14 }
  0x83   :  { %4977 = vmatpush1.bf16.msra.mxu1 %v6667_v18  ;;  %4947 = vmatprep.subr.bf16.mxu0 %v6677_v22 }
  0x84   :  { %4979 = vmatprep.subr.bf16.mxu1 %v6687_v27 }
  0x86   :  { %4949 = vmatpush1.bf16.msra.mxu0 %v6700_v32 }
  0x87   :  { %4981 = vmatpush1.bf16.msra.mxu1 %v6710_v37  ;;  %4951 = vmatprep.subr.bf16.mxu0 %v6720_v41  ;;  %v428_v37 = vld [vmem:[%s9255_s7] sm:$0xf] }
  0x88   :  { %4983 = vmatprep.subr.bf16.mxu1 %v6730_v45  ;;  %v7102_v28 = vrot.slane %v428_v37, %v107_v13 }
  0x8a   :  { %4953 = vmatpush1.bf16.msra.mxu0 %v6743_v51  ;;  %9335 = vst [vmem:[#allocation15_spill] sm:$0xff] %v7102_v28 }
  0x8b   :  { %4985 = vmatpush1.bf16.msra.mxu1 %v6753_v58  ;;  %4987 = vmatprep.subr.bf16.mxu0 %v6766_v63 }
  0x8c   :  { %5019 = vmatprep.subr.bf16.mxu1 %v6779_v6  ;;  %v7100_v6 = vrot.slane %v428_v37, %v103_v7  ;;  %v7109_v7 = vrot.slane %v428_v37, %v115_v26 }
  0x8e   :  { %9336 = vst [vmem:[#allocation16_spill] sm:$0xff] %v7109_v7 }
 0x120   :  { %v873_v23 = vpop.f32.mrb[0].mxu0 }
 0x121   :  { %v5818_v29 = vadd.f32 %v873_v23, %v7085_v16  ;;  %v944_v33 = vpop.f32.mrb[0].mxu1  ;;  %v875_v36 = vpop.f32.mrb[1].mxu0 }
 0x122   :  { %v5819_v39 = vadd.f32 %v875_v36, %v7087_v20  ;;  %v946_v42 = vpop.f32.mrb[1].mxu1  ;;  %v5834_v8 = vadd.f32 %v944_v33, %v7094_v0  ;;  %v7112_v33 = vrot.slane %v428_v37, %v111_v57 }
 0x123   :  { %v4700_v46 = vmul.f32 -1.442695, %v5818_v29  ;;  %v5835_v61 = vadd.f32 %v946_v42, %v7091_v52 }
 0x124   :  { %v4701_v49 = vmul.f32 -1.442695, %v5819_v39  ;;  %9337 = vst [vmem:[#allocation17_spill] sm:$0xff] %v7112_v33 }
 0x125   :  { %5947 = vpow2.f32 %v4700_v46  ;;  %v4702_v4 = vmul.f32 -1.442695, %v5835_v61 }
 0x126   :  { %5949 = vpow2.f32 %v4701_v49 }
 0x127   :  { %5951 = vpow2.f32 %v4702_v4 }
 0x128   :  { %5953 = vtanh.f32 %v5834_v8  ;;  %v9339_v8 = vld [vmem:[#allocation9_spill] sm:$0xff] }
 0x12f   :  { %v5948_v14 = vpop.eup %5947 }
 0x130   :  { %v5950_v18 = vpop.eup %5949  ;;  %v1173_v22 = vadd.f32 1.0, %v5948_v14  ;;  %v9343_v14 = vld [vmem:[#allocation13_spill] sm:$0xff] }
 0x131   :  { %v1179_v27 = vadd.f32 1.0, %v5950_v18  ;;  %v5952_v32 = vpop.eup %5951 }
 0x132   :  { %5955 = vrcp.f32 %v1173_v22  ;;  %v5954_v41 = vpop.eup %5953  ;;  %v1186_v63 = vadd.f32 1.0, %v5952_v32  ;;  %v1720_v32 = vld [vmem:[%s9251_s3 + $0x30] sm:$0xff] }
 0x133   :  { %5957 = vrcp.f32 %v1179_v27  ;;  %v1716_v27 = vld [vmem:[%s9251_s3 + $0x10] sm:$0xff] }
 0x134   :  { %5959 = vrcp.f32 %v1186_v63  ;;  %v7189_v37 = vpack.c.bf16 %v1720_v32, %v1716_v27  ;;  %v1729_v63 = vld [vmem:[%s9251_s3 + $0x78] sm:$0xff]  ;;  %v1755_v32 = vld [vmem:[%s9251_s3 + $0x148] sm:$0xff] }
 0x13c   :  { %v5956_v45 = vpop.eup %5955 }
 0x13d   :  { %v5958_v51 = vpop.eup %5957  ;;  %v1190_v58 = vmul.f32 %v5956_v45, %v5954_v41  ;;  %v1723_v41 = vld [vmem:[%s9251_s3 + $0x48] sm:$0xff] }
 0x13e   :  { %v1189_v24 = vmul.f32 0.0, %v5958_v51  ;;  %v5960_v36 = vpop.eup %5959  ;;  %v1727_v45 = vld [vmem:[%s9251_s3 + $0x68] sm:$0xff]  ;;  %v1725_v51 = vld [vmem:[%s9251_s3 + $0x58] sm:$0xff] }
 0x140   :  { %v7104_v62 = vadd.f32 %v1190_v58, %v1189_v24  ;;  %v1090_v9 = vpop.f32.mrb[30].mxu0  ;;  %v7203_v58 = vpack.c.bf16 %v1727_v45, %v1723_v41  ;;  %v1722_v24 = vld [vmem:[%s9251_s3 + $0x40] sm:$0xff]  ;;  %v1759_v41 = vld [vmem:[%s9251_s3 + $0x168] sm:$0xff]  ;;  %v1757_v45 = vld [vmem:[%s9251_s3 + $0x158] sm:$0xff] }
 0x141   :  { %v5864_v47 = vadd.f32 %v1090_v9, %v7100_v6  ;;  %v1161_v31 = vpop.f32.mrb[30].mxu1  ;;  %v1092_v53 = vpop.f32.mrb[31].mxu0  ;;  %v1726_v9 = vld [vmem:[%s9251_s3 + $0x60] sm:$0xff] }
 0x142   :  { %5961 = vtanh.f32 %v7104_v62  ;;  %v5865_v56 = vadd.f32 %v1092_v53, %v7102_v28  ;;  %v1163_v10 = vpop.f32.mrb[31].mxu1  ;;  %v5880_v46 = vadd.f32 %v1161_v31, %v7112_v33  ;;  %v7216_v31 = vpack.c.bf16 %v1726_v9, %v1722_v24  ;;  %v1724_v53 = vld [vmem:[%s9251_s3 + $0x50] sm:$0xff]  ;;  %v1754_v24 = vld [vmem:[%s9251_s3 + $0x140] sm:$0xff] }
 0x143   :  { %v4703_v23 = vmul.f32 -1.442695, %v5864_v47  ;;  %v5881_v13 = vadd.f32 %v1163_v10, %v7109_v7  ;;  %v7214_v47 = vpack.c.bf16 %v1729_v63, %v1725_v51  ;;  %v7347_v51 = vpack.c.bf16 %v1759_v41, %v1755_v32  ;;  %v1761_v63 = vld [vmem:[%s9251_s3 + $0x178] sm:$0xff]  ;;  %v1758_v9 = vld [vmem:[%s9251_s3 + $0x160] sm:$0xff]  ;;  %v1772_v32 = vld [vmem:[%s9251_s3 + $0x1d0] sm:$0xff] }
 0x144   :  { %v4704_v29 = vmul.f32 -1.442695, %v5865_v56  ;;  %v1728_v56 = vld [vmem:[%s9251_s3 + $0x70] sm:$0xff] }
 0x145   :  { %5963 = vpow2.f32 %v4703_v23  ;;  %v4705_v42 = vmul.f32 -1.442695, %v5881_v13  ;;  %v7225_v10 = vpack.c.bf16 %v1728_v56, %v1724_v53  ;;  %v1731_v23 = vld [vmem:[%s9251_s3 + $0x88] sm:$0xff]  ;;  %v1733_v13 = vld [vmem:[%s9251_s3 + $0x98] sm:$0xff]  ;;  %v7358_v53 = vpack.c.bf16 %v1761_v63, %v1757_v45  ;;  %v1776_v41 = vld [vmem:[%s9251_s3 + $0x1f0] sm:$0xff] }
 0x146   :  { %5965 = vpow2.f32 %v4704_v29  ;;  %v1735_v29 = vld [vmem:[%s9251_s3 + $0xa8] sm:$0xff]  ;;  %v7360_v56 = vpack.c.bf16 %v1758_v9, %v1754_v24  ;;  %v7441_v45 = vpack.c.bf16 %v1776_v41, %v1772_v32  ;;  %v1934_v9 = vld [vmem:[%s9253_s6 + $0x18] sm:$0xff] }
 0x147   :  { %5967 = vpow2.f32 %v4705_v42  ;;  %v1730_v42 = vld [vmem:[%s9251_s3 + $0x80] sm:$0xff]  ;;  %v1932_v63 = vld [vmem:[%s9253_s6 + $0x8] sm:$0xff] }
 0x148   :  { %5969 = vtanh.f32 %v5880_v46  ;;  %v1734_v46 = vld [vmem:[%s9251_s3 + $0xa0] sm:$0xff]  ;;  %v1936_v24 = vld [vmem:[%s9253_s6 + $0x28] sm:$0xff] }
 0x14c   :  { %v5962_v39 = vpop.eup %5961 }
 0x14d   :  { %v1193_v49 = vmul.f32 %v5962_v39, %v5960_v36  ;;  %v7239_v36 = vpack.c.bf16 %v1735_v29, %v1731_v23  ;;  %v1737_v39 = vld [vmem:[%s9251_s3 + $0xb8] sm:$0xff]  ;;  %v1756_v23 = vld [vmem:[%s9251_s3 + $0x150] sm:$0xff] }
 0x14e   :  { %v1760_v29 = vld [vmem:[%s9251_s3 + $0x170] sm:$0xff] }
 0x14f   :  { %v5964_v61 = vpop.eup %5963  ;;  %1218 = vst [vmem:[%s9256_s8] sm:$0xff] %v1193_v49  ;;  %1357 = vmatmul.mubr.f32.vlgmr.msra.gmra.mrb[2].mxu0 %v1193_v49  ;;  %1428 = vmatmul.mubr.f32.vlgmr.msra.gmra.mrb[2].mxu1 %v1193_v49  ;;  %v7250_v49 = vpack.c.bf16 %v1737_v39, %v1733_v13  ;;  %v7369_v13 = vpack.c.bf16 %v1760_v29, %v1756_v23  ;;  %v1763_v39 = vld [vmem:[%s9251_s3 + $0x188] sm:$0xff]  ;;  %v1938_v29 = vld [vmem:[%s9253_s6 + $0x38] sm:$0xff] }
 0x150   :  { %v5966_v26 = vpop.eup %5965  ;;  %v1197_v4 = vadd.f32 1.0, %v5964_v61  ;;  %4989 = vmatpush1.bf16.msra.mxu0 %v6789_v12  ;;  %5021 = vmatpush1.bf16.msra.mxu1 %v6793_v15  ;;  %v7252_v61 = vpack.c.bf16 %v1734_v46, %v1730_v42  ;;  %v1767_v42 = vld [vmem:[%s9251_s3 + $0x1a8] sm:$0xff]  ;;  %v1765_v46 = vld [vmem:[%s9251_s3 + $0x198] sm:$0xff]  ;;  %v7455_v23 = vpack.c.bf16 %v1936_v24, %v1932_v63 }
 0x151   :  { %v1203_v57 = vadd.f32 1.0, %v5966_v26  ;;  %4991 = vmatprep.subr.bf16.mxu0 %v6795_v17  ;;  %5023 = vmatprep.subr.bf16.mxu1 %v6808_v25  ;;  %v5968_v12 = vpop.eup %5967  ;;  %v9338_v25 = vld [vmem:[#allocation8_spill] sm:$0xff]  ;;  %v1732_v26 = vld [vmem:[%s9251_s3 + $0x90] sm:$0xff] }
 0x152   :  { %5971 = vrcp.f32 %v1197_v4  ;;  %1573 = vmatprep.mubr.f32.mxu0 %v9334_v60  ;;  %1644 = vmatprep.mubr.f32.mxu1 %v9334_v60  ;;  %v5970_v15 = vpop.eup %5969  ;;  %v1736_v4 = vld [vmem:[%s9251_s3 + $0xb0] sm:$0xff] }
 0x153   :  { %5973 = vrcp.f32 %v1203_v57  ;;  %v7261_v57 = vpack.c.bf16 %v1736_v4, %v1732_v26  ;;  %v7383_v26 = vpack.c.bf16 %v1767_v42, %v1763_v39  ;;  %v1769_v4 = vld [vmem:[%s9251_s3 + $0x1b8] sm:$0xff]  ;;  %v7460_v39 = vpack.c.bf16 %v1938_v29, %v1934_v9 }
 0x154   :  { %4993 = vmatpush1.bf16.msra.mxu0 %v6829_v38  ;;  %5025 = vmatpush1.bf16.msra.mxu1 %v6833_v40 }
 0x155   :  { %4995 = vmatprep.subr.bf16.mxu0 %v6835_v43  ;;  %5027 = vmatprep.subr.bf16.mxu1 %v6847_v50  ;;  %v1210_v43 = vadd.f32 1.0, %v5968_v12  ;;  %v9340_v50 = vld [vmem:[#allocation10_spill] sm:$0xff]  ;;  %v1739_v12 = vld [vmem:[%s9251_s3 + $0xc8] sm:$0xff] }
 0x157   :  { %5975 = vrcp.f32 %v1210_v43  ;;  %v1742_v43 = vld [vmem:[%s9251_s3 + $0xe0] sm:$0xff] }
 0x158   :  { %4997 = vmatpush1.bf16.msra.mxu0 %v6867_v1  ;;  %5029 = vmatpush1.bf16.msra.mxu1 %v6871_v2 }
 0x159   :  { %4999 = vmatprep.subr.bf16.mxu0 %v6873_v5  ;;  %5031 = vmatprep.subr.bf16.mxu1 %v6885_v21  ;;  %v9341_v5 = vld [vmem:[#allocation11_spill] sm:$0xff]  ;;  %v9342_v21 = vld [vmem:[#allocation12_spill] sm:$0xff] }
 0x15c   :  { %v5972_v17 = vpop.eup %5971  ;;  %5001 = vmatpush1.bf16.msra.mxu0 %v6903_v35  ;;  %5033 = vmatpush1.bf16.msra.mxu1 %v9338_v25  ;;  %v9344_v35 = vld [vmem:[#allocation14_spill] sm:$0xff] }
 0x15d   :  { %v5974_v38 = vpop.eup %5973  ;;  %v1214_v40 = vmul.f32 %v5972_v17, %v5970_v15  ;;  %5003 = vmatprep.subr.bf16.mxu0 %v9339_v8  ;;  %5035 = vmatprep.subr.bf16.mxu1 %v9340_v50  ;;  %v1743_v15 = vld [vmem:[%s9251_s3 + $0xe8] sm:$0xff]  ;;  %v1741_v17 = vld [vmem:[%s9251_s3 + $0xd8] sm:$0xff] }
 0x15e   :  { %v1213_v1 = vmul.f32 0.0, %v5974_v38  ;;  %v7275_v25 = vpack.c.bf16 %v1743_v15, %v1739_v12  ;;  %v1745_v38 = vld [vmem:[%s9251_s3 + $0xf8] sm:$0xff]  ;;  %v1762_v12 = vld [vmem:[%s9251_s3 + $0x180] sm:$0xff] }
 0x15f   :  { %v7286_v8 = vpack.c.bf16 %v1745_v38, %v1741_v17  ;;  %v1766_v15 = vld [vmem:[%s9251_s3 + $0x1a0] sm:$0xff]  ;;  %v7394_v17 = vpack.c.bf16 %v1769_v4, %v1765_v46 }
 0x160   :  { %v7136_v2 = vadd.f32 %v1214_v40, %v1213_v1  ;;  %5005 = vmatpush1.bf16.msra.mxu0 %v9341_v5  ;;  %5037 = vmatpush1.bf16.msra.mxu1 %v9342_v21  ;;  %v1738_v40 = vld [vmem:[%s9251_s3 + $0xc0] sm:$0xff]  ;;  %v1740_v1 = vld [vmem:[%s9251_s3 + $0xd0] sm:$0xff]  ;;  %v7396_v38 = vpack.c.bf16 %v1766_v15, %v1762_v12 }
 0x161   :  { %5007 = vmatprep.subr.bf16.mxu0 %v9343_v14  ;;  %5039 = vmatprep.subr.bf16.mxu1 %v9344_v35  ;;  %v5976_v18 = vpop.eup %5975  ;;  %v7288_v50 = vpack.c.bf16 %v1742_v43, %v1738_v40  ;;  %v1744_v5 = vld [vmem:[%s9251_s3 + $0xf0] sm:$0xff]  ;;  %v1747_v14 = vld [vmem:[%s9251_s3 + $0x108] sm:$0xff] }
 0x162   :  { %5977 = vtanh.f32 %v7136_v2  ;;  %v7297_v21 = vpack.c.bf16 %v1744_v5, %v1740_v1  ;;  %v1751_v35 = vld [vmem:[%s9251_s3 + $0x128] sm:$0xff]  ;;  %v1764_v40 = vld [vmem:[%s9251_s3 + $0x190] sm:$0xff] }
 0x163   :  { %v1768_v43 = vld [vmem:[%s9251_s3 + $0x1b0] sm:$0xff]  ;;  %v1771_v5 = vld [vmem:[%s9251_s3 + $0x1c8] sm:$0xff] }
 0x164   :  { %5009 = vmatpush1.bf16.msra.mxu0 %v6975_v19  ;;  %5041 = vmatpush1.bf16.msra.mxu1 %v6979_v3  ;;  %v1715_v3 = vld [vmem:[%s9251_s3 + $0x8] sm:$0xff]  ;;  %v7405_v1 = vpack.c.bf16 %v1768_v43, %v1764_v40 }
 0x165   :  { %5011 = vmatprep.subr.bf16.mxu0 %v6981_v59  ;;  %5043 = vmatprep.subr.bf16.mxu1 %v6993_v34  ;;  %v1719_v59 = vld [vmem:[%s9251_s3 + $0x28] sm:$0xff]  ;;  %v1721_v34 = vld [vmem:[%s9251_s3 + $0x38] sm:$0xff] }
 0x168   :  { %5013 = vmatpush1.bf16.msra.mxu0 %v7011_v11  ;;  %5045 = vmatpush1.bf16.msra.mxu1 %v7015_v54  ;;  %v7167_v54 = vpack.c.bf16 %v1719_v59, %v1715_v3  ;;  %v1714_v11 = vld [vmem:[%s9251_s3] sm:$0xff] }
 0x169   :  { %5015 = vmatprep.subr.bf16.mxu0 %v7017_v30  ;;  %5047 = vmatprep.subr.bf16.mxu1 %v7026_v44  ;;  %v1717_v30 = vld [vmem:[%s9251_s3 + $0x18] sm:$0xff]  ;;  %v1718_v44 = vld [vmem:[%s9251_s3 + $0x20] sm:$0xff] }
 0x16a   :  { %v1746_v3 = vld [vmem:[%s9251_s3 + $0x100] sm:$0xff] }
 0x16b   :  { %v1750_v59 = vld [vmem:[%s9251_s3 + $0x120] sm:$0xff] }
 0x16c   :  { %v5978_v22 = vpop.eup %5977  ;;  %5017 = vmatpush1.bf16.msra.mxu0 %v7035_v48  ;;  %5049 = vmatpush1.bf16.msra.mxu1 %v7039_v55  ;;  %v7178_v48 = vpack.c.bf16 %v1721_v34, %v1717_v30  ;;  %v7180_v55 = vpack.c.bf16 %v1718_v44, %v1714_v11  ;;  %v7324_v34 = vpack.c.bf16 %v1750_v59, %v1746_v3  ;;  %v1748_v11 = vld [vmem:[%s9251_s3 + $0x110] sm:$0xff]  ;;  %v1770_v3 = vld [vmem:[%s9251_s3 + $0x1c0] sm:$0xff] }
 0x16d   :  { %v1217_v19 = vmul.f32 %v5978_v22, %v5976_v18  ;;  %5051 = vmatprep.subr.bf16.mxu0 %v7167_v54  ;;  %v1749_v18 = vld [vmem:[%s9251_s3 + $0x118] sm:$0xff]  ;;  %v7311_v22 = vpack.c.bf16 %v1751_v35, %v1747_v14  ;;  %v1752_v44 = vld [vmem:[%s9251_s3 + $0x130] sm:$0xff]  ;;  %v1775_v14 = vld [vmem:[%s9251_s3 + $0x1e8] sm:$0xff] }
 0x16e   :  { %5083 = vmatprep.subr.bf16.mxu1 %v7178_v48  ;;  %v7333_v27 = vpack.c.bf16 %v1752_v44, %v1748_v11  ;;  %v1773_v35 = vld [vmem:[%s9251_s3 + $0x1d8] sm:$0xff]  ;;  %v1774_v59 = vld [vmem:[%s9251_s3 + $0x1e0] sm:$0xff] }
 0x16f   :  { %4706 = vst [vmem:[%s9257_s9 + $0x38] sm:$0xff] %v1217_v19  ;;  %1574 = vmatmul.mubr.f32.vlgmr.msra.gmra.mrb[28].mxu0 %v1217_v19  ;;  %1645 = vmatmul.mubr.f32.vlgmr.msra.gmra.mrb[28].mxu1 %v1217_v19  ;;  %v1753_v19 = vld [vmem:[%s9251_s3 + $0x138] sm:$0xff]  ;;  %v7432_v44 = vpack.c.bf16 %v1774_v59, %v1770_v3 }
 0x170   :  { %1842 = vmatprep.mubr.f32.mxu0 %v9334_v60  ;;  %1913 = vmatprep.mubr.f32.mxu1 %v9334_v60  ;;  %v7322_v30 = vpack.c.bf16 %v1753_v19, %v1749_v18  ;;  %v7419_v18 = vpack.c.bf16 %v1775_v14, %v1771_v5  ;;  %v1777_v19 = vld [vmem:[%s9251_s3 + $0x1f8] sm:$0xff] }
 0x171   :  { %5053 = vmatpush1.bf16.msra.mxu0 %v7180_v55  ;;  %5085 = vmatpush1.bf16.msra.mxu1 %v7189_v37  ;;  %v7430_v11 = vpack.c.bf16 %v1777_v19, %v1773_v35 }
 0x172   :  { %5055 = vmatprep.subr.bf16.mxu0 %v7203_v58  ;;  %5087 = vmatprep.subr.bf16.mxu1 %v7214_v47 }
 0x175   :  { %5057 = vmatpush1.bf16.msra.mxu0 %v7216_v31  ;;  %5089 = vmatpush1.bf16.msra.mxu1 %v7225_v10 }
 0x176   :  { %5059 = vmatprep.subr.bf16.mxu0 %v7239_v36  ;;  %5091 = vmatprep.subr.bf16.mxu1 %v7250_v49 }
 0x179   :  { %5061 = vmatpush1.bf16.msra.mxu0 %v7252_v61  ;;  %5093 = vmatpush1.bf16.msra.mxu1 %v7261_v57 }
 0x17a   :  { %5063 = vmatprep.subr.bf16.mxu0 %v7275_v25  ;;  %5095 = vmatprep.subr.bf16.mxu1 %v7286_v8 }
 0x17d   :  { %5065 = vmatpush1.bf16.msra.mxu0 %v7288_v50  ;;  %5097 = vmatpush1.bf16.msra.mxu1 %v7297_v21 }
 0x17e   :  { %5067 = vmatprep.subr.bf16.mxu0 %v7311_v22  ;;  %5099 = vmatprep.subr.bf16.mxu1 %v7322_v30 }
 0x181   :  { %5069 = vmatpush1.bf16.msra.mxu0 %v7324_v34  ;;  %5101 = vmatpush1.bf16.msra.mxu1 %v7333_v27 }
 0x182   :  { %5071 = vmatprep.subr.bf16.mxu0 %v7347_v51  ;;  %5103 = vmatprep.subr.bf16.mxu1 %v7358_v53 }
 0x185   :  { %5073 = vmatpush1.bf16.msra.mxu0 %v7360_v56  ;;  %5105 = vmatpush1.bf16.msra.mxu1 %v7369_v13 }
 0x186   :  { %5075 = vmatprep.subr.bf16.mxu0 %v7383_v26  ;;  %5107 = vmatprep.subr.bf16.mxu1 %v7394_v17 }
 0x189   :  { %5077 = vmatpush1.bf16.msra.mxu0 %v7396_v38  ;;  %5109 = vmatpush1.bf16.msra.mxu1 %v7405_v1 }
 0x18a   :  { %5079 = vmatprep.subr.bf16.mxu0 %v7419_v18  ;;  %5111 = vmatprep.subr.bf16.mxu1 %v7430_v11 }
 0x18d   :  { %5081 = vmatpush1.bf16.msra.mxu0 %v7432_v44  ;;  %5113 = vmatpush1.bf16.msra.mxu1 %v7441_v45 }
 0x18e   :  { %5115 = vmatprep.subr.bf16.mxu0 %v7455_v23  ;;  %5147 = vmatprep.subr.bf16.mxu1 %v7460_v39 }
 0x222   :  { %v1358_v42 = vpop.f32.mrb[2].mxu0  ;;  %v1429_v46 = vpop.f32.mrb[2].mxu1 }
 0x223   :  { %v5820_v4 = vadd.f32 %v1358_v42, %v7085_v16  ;;  %v1360_v12 = vpop.f32.mrb[3].mxu0  ;;  %v1431_v15 = vpop.f32.mrb[3].mxu1  ;;  %v5836_v19 = vadd.f32 %v1429_v46, %v7094_v0 }
 0x224   :  { %v5821_v40 = vadd.f32 %v1360_v12, %v7087_v20  ;;  %v5837_v14 = vadd.f32 %v1431_v15, %v7091_v52 }
 0x225   :  { %v4707_v43 = vmul.f32 -1.442695, %v5820_v4 }
 0x226   :  { %v4708_v5 = vmul.f32 -1.442695, %v5821_v40  ;;  %v4709_v35 = vmul.f32 -1.442695, %v5837_v14 }
 0x227   :  { %5979 = vpow2.f32 %v4707_v43 }
 0x228   :  { %5981 = vpow2.f32 %v4708_v5 }
 0x229   :  { %5983 = vpow2.f32 %v4709_v35 }
 0x22a   :  { %5985 = vtanh.f32 %v5836_v19 }
 0x231   :  { %v5980_v3 = vpop.eup %5979 }
 0x232   :  { %v5982_v59 = vpop.eup %5981  ;;  %v1658_v32 = vadd.f32 1.0, %v5980_v3 }
 0x233   :  { %v1664_v41 = vadd.f32 1.0, %v5982_v59  ;;  %v5984_v63 = vpop.eup %5983 }
 0x234   :  { %5987 = vrcp.f32 %v1658_v32  ;;  %v5986_v24 = vpop.eup %5985  ;;  %v1671_v4 = vadd.f32 1.0, %v5984_v63  ;;  %v1935_v32 = vld [vmem:[%s9253_s6 + $0x20] sm:$0xff]  ;;  %v1937_v63 = vld [vmem:[%s9253_s6 + $0x30] sm:$0xff] }
 0x235   :  { %5989 = vrcp.f32 %v1664_v41  ;;  %v1933_v41 = vld [vmem:[%s9253_s6 + $0x10] sm:$0xff] }
 0x236   :  { %5991 = vrcp.f32 %v1671_v4 }
 0x23e   :  { %v5988_v9 = vpop.eup %5987 }
 0x23f   :  { %v5990_v29 = vpop.eup %5989  ;;  %v1675_v42 = vmul.f32 %v5988_v9, %v5986_v24  ;;  %v1940_v24 = vld [vmem:[%s9253_s6 + $0x48] sm:$0xff] }
 0x240   :  { %v1674_v12 = vmul.f32 %v5990_v29, %v7104_v62  ;;  %v1931_v62 = vld [vmem:[%s9253_s6] sm:$0xff]  ;;  %v1944_v9 = vld [vmem:[%s9253_s6 + $0x68] sm:$0xff]  ;;  %v1942_v29 = vld [vmem:[%s9253_s6 + $0x58] sm:$0xff]  ;;  %v5992_v4 = vpop.eup %5991 }
 0x242   :  { %v7469_v15 = vadd.f32 %v1675_v42, %v1674_v12  ;;  %v1575_v40 = vpop.f32.mrb[28].mxu0  ;;  %v1646_v46 = vpop.f32.mrb[28].mxu1  ;;  %v1946_v42 = vld [vmem:[%s9253_s6 + $0x78] sm:$0xff] }
 0x243   :  { %v5862_v43 = vadd.f32 %v1575_v40, %v7100_v6  ;;  %v1577_v5 = vpop.f32.mrb[29].mxu0  ;;  %v1648_v14 = vpop.f32.mrb[29].mxu1 }
 0x244   :  { %v5863_v35 = vadd.f32 %v1577_v5, %v7102_v28  ;;  %5993 = vtanh.f32 %v7469_v15  ;;  %v5879_v59 = vadd.f32 %v1648_v14, %v7109_v7  ;;  %v7501_v5 = vpack.c.bf16 %v1937_v63, %v1933_v41  ;;  %v1939_v14 = vld [vmem:[%s9253_s6 + $0x40] sm:$0xff]  ;;  %v1950_v41 = vld [vmem:[%s9253_s6 + $0x98] sm:$0xff] }
 0x245   :  { %v4710_v19 = vmul.f32 -1.442695, %v5862_v43  ;;  %v7499_v43 = vpack.c.bf16 %v1935_v32, %v1931_v62  ;;  %v7510_v7 = vpack.c.bf16 %v1944_v9, %v1940_v24  ;;  %v7512_v28 = vpack.c.bf16 %v1946_v42, %v1942_v29  ;;  %v1945_v62 = vld [vmem:[%s9253_s6 + $0x70] sm:$0xff]  ;;  %v1948_v32 = vld [vmem:[%s9253_s6 + $0x88] sm:$0xff]  ;;  %v1954_v63 = vld [vmem:[%s9253_s6 + $0xb8] sm:$0xff] }
 0x246   :  { %v4711_v3 = vmul.f32 -1.442695, %v5863_v35  ;;  %v4712_v40 = vmul.f32 -1.442695, %v5879_v59  ;;  %9346 = vst [vmem:[#allocation9_spill] sm:$0xff] %v7501_v5  ;;  %v1943_v35 = vld [vmem:[%s9253_s6 + $0x60] sm:$0xff] }
 0x247   :  { %5995 = vpow2.f32 %v4710_v19  ;;  %9345 = vst [vmem:[#allocation8_spill] sm:$0xff] %v7499_v43  ;;  %v5878_v19 = vadd.f32 %v1646_v46, %v7112_v33  ;;  %9347 = vst [vmem:[#allocation10_spill] sm:$0xff] %v7510_v7  ;;  %v1941_v59 = vld [vmem:[%s9253_s6 + $0x50] sm:$0xff]  ;;  %v1952_v46 = vld [vmem:[%s9253_s6 + $0xa8] sm:$0xff]  ;;  %v7537_v42 = vpack.c.bf16 %v1943_v35, %v1939_v14  ;;  %v7551_v14 = vpack.c.bf16 %v1954_v63, %v1950_v41 }
 0x248   :  { %5997 = vpow2.f32 %v4711_v3  ;;  %9348 = vst [vmem:[#allocation11_spill] sm:$0xff] %v7512_v28  ;;  %v1951_v33 = vld [vmem:[%s9253_s6 + $0xa0] sm:$0xff]  ;;  %v1949_v35 = vld [vmem:[%s9253_s6 + $0x90] sm:$0xff] }
 0x249   :  { %5999 = vpow2.f32 %v4712_v40  ;;  %9349 = vst [vmem:[#allocation12_spill] sm:$0xff] %v7537_v42  ;;  %v7549_v40 = vpack.c.bf16 %v1952_v46, %v1948_v32  ;;  %9352 = vst [vmem:[#allocation18_spill] sm:$0xff] %v7551_v14  ;;  %v1958_v32 = vld [vmem:[%s9253_s6 + $0xd8] sm:$0xff] }
 0x24a   :  { %6001 = vtanh.f32 %v5878_v19  ;;  %v1956_v19 = vld [vmem:[%s9253_s6 + $0xc8] sm:$0xff]  ;;  %v1962_v46 = vld [vmem:[%s9253_s6 + $0xf8] sm:$0xff] }
 0x24b   :  { %9351 = vst [vmem:[#allocation14_spill] sm:$0xff] %v7549_v40 }
 0x24e   :  { %v5994_v12 = vpop.eup %5993 }
 0x24f   :  { %v1678_v3 = vmul.f32 %v5994_v12, %v5992_v4  ;;  %v7539_v4 = vpack.c.bf16 %v1945_v62, %v1941_v59  ;;  %v1947_v12 = vld [vmem:[%s9253_s6 + $0x80] sm:$0xff]  ;;  %v1953_v59 = vld [vmem:[%s9253_s6 + $0xb0] sm:$0xff]  ;;  %v1960_v62 = vld [vmem:[%s9253_s6 + $0xe8] sm:$0xff] }
 0x250   :  { %v7575_v41 = vpack.c.bf16 %v1951_v33, %v1947_v12  ;;  %v7577_v63 = vpack.c.bf16 %v1953_v59, %v1949_v35  ;;  %v1957_v33 = vld [vmem:[%s9253_s6 + $0xd0] sm:$0xff]  ;;  %v1964_v35 = vld [vmem:[%s9253_s6 + $0x108] sm:$0xff] }
 0x251   :  { %v5996_v24 = vpop.eup %5995  ;;  %4713 = vst [vmem:[%s9256_s8 + $0x8] sm:$0xff] %v1678_v3  ;;  %1843 = vmatmul.mubr.f32.vlgmr.msra.gmra.mrb[4].mxu0 %v1678_v3  ;;  %1914 = vmatmul.mubr.f32.vlgmr.msra.gmra.mrb[4].mxu1 %v1678_v3  ;;  %9350 = vst [vmem:[#allocation13_spill] sm:$0xff] %v7539_v4  ;;  %v1961_v12 = vld [vmem:[%s9253_s6 + $0xf0] sm:$0xff]  ;;  %v1968_v59 = vld [vmem:[%s9253_s6 + $0x128] sm:$0xff] }
 0x252   :  { %v5998_v9 = vpop.eup %5997  ;;  %v1682_v29 = vadd.f32 1.0, %v5996_v24  ;;  %5117 = vmatpush1.bf16.msra.mxu0 %v7499_v43  ;;  %5149 = vmatpush1.bf16.msra.mxu1 %v7501_v5  ;;  %9353 = vst [vmem:[#allocation19_spill] sm:$0xff] %v7575_v41  ;;  %9354 = vst [vmem:[#allocation20_spill] sm:$0xff] %v7577_v63  ;;  %v1955_v24 = vld [vmem:[%s9253_s6 + $0xc0] sm:$0xff] }
 0x253   :  { %v1688_v3 = vadd.f32 1.0, %v5998_v9  ;;  %5119 = vmatprep.subr.bf16.mxu0 %v7510_v7  ;;  %5151 = vmatprep.subr.bf16.mxu1 %v7512_v28  ;;  %v1959_v9 = vld [vmem:[%s9253_s6 + $0xe0] sm:$0xff] }
 0x254   :  { %6003 = vrcp.f32 %v1682_v29  ;;  %2059 = vmatprep.mubr.f32.mxu0 %v9334_v60  ;;  %2130 = vmatprep.mubr.f32.mxu1 %v9334_v60  ;;  %v7587_v29 = vpack.c.bf16 %v1960_v62, %v1956_v19  ;;  %v1966_v19 = vld [vmem:[%s9253_s6 + $0x118] sm:$0xff]  ;;  %v1975_v28 = vld [vmem:[%s9253_s6 + $0x160] sm:$0xff] }
 0x255   :  { %6005 = vrcp.f32 %v1688_v3  ;;  %v7589_v3 = vpack.c.bf16 %v1962_v46, %v1958_v32  ;;  %v1970_v62 = vld [vmem:[%s9253_s6 + $0x138] sm:$0xff]  ;;  %v7611_v32 = vpack.c.bf16 %v1959_v9, %v1955_v24  ;;  %v7613_v46 = vpack.c.bf16 %v1961_v12, %v1957_v33  ;;  %v1965_v24 = vld [vmem:[%s9253_s6 + $0x110] sm:$0xff]  ;;  %v1972_v33 = vld [vmem:[%s9253_s6 + $0x148] sm:$0xff]  ;;  %v6000_v12 = vpop.eup %5999 }
 0x256   :  { %5121 = vmatpush1.bf16.msra.mxu0 %v7537_v42  ;;  %5153 = vmatpush1.bf16.msra.mxu1 %v7539_v4  ;;  %9355 = vst [vmem:[#allocation21_spill] sm:$0xff] %v7587_v29  ;;  %v7623_v4 = vpack.c.bf16 %v1968_v59, %v1964_v35  ;;  %v1969_v9 = vld [vmem:[%s9253_s6 + $0x130] sm:$0xff]  ;;  %v1976_v35 = vld [vmem:[%s9253_s6 + $0x168] sm:$0xff]  ;;  %v1974_v59 = vld [vmem:[%s9253_s6 + $0x158] sm:$0xff]  ;;  %v1695_v43 = vadd.f32 1.0, %v6000_v12 }
 0x257   :  { %5123 = vmatprep.subr.bf16.mxu0 %v7549_v40  ;;  %5155 = vmatprep.subr.bf16.mxu1 %v7551_v14  ;;  %9356 = vst [vmem:[#allocation22_spill] sm:$0xff] %v7589_v3  ;;  %9357 = vst [vmem:[#allocation23_spill] sm:$0xff] %v7613_v46  ;;  %v1963_v14 = vld [vmem:[%s9253_s6 + $0x100] sm:$0xff]  ;;  %v1982_v12 = vld [vmem:[%s9253_s6 + $0x198] sm:$0xff] }
 0x258   :  { %v1967_v40 = vld [vmem:[%s9253_s6 + $0x120] sm:$0xff]  ;;  %6007 = vrcp.f32 %v1695_v43  ;;  %v1988_v43 = vld [vmem:[%s9253_s6 + $0x1c8] sm:$0xff] }
 0x259   :  { %v1971_v42 = vld [vmem:[%s9253_s6 + $0x140] sm:$0xff] }
 0x25a   :  { %5125 = vmatpush1.bf16.msra.mxu0 %v7575_v41  ;;  %5157 = vmatpush1.bf16.msra.mxu1 %v7577_v63  ;;  %v7625_v41 = vpack.c.bf16 %v1970_v62, %v1966_v19  ;;  %v1978_v19 = vld [vmem:[%s9253_s6 + $0x178] sm:$0xff]  ;;  %v6002_v62 = vpop.eup %6001  ;;  %v7649_v63 = vpack.c.bf16 %v1969_v9, %v1965_v24  ;;  %v1977_v24 = vld [vmem:[%s9253_s6 + $0x170] sm:$0xff] }
 0x25b   :  { %5127 = vmatprep.subr.bf16.mxu0 %v7587_v29  ;;  %5159 = vmatprep.subr.bf16.mxu1 %v7589_v3  ;;  %v7647_v29 = vpack.c.bf16 %v1967_v40, %v1963_v14  ;;  %v7661_v40 = vpack.c.bf16 %v1978_v19, %v1974_v59  ;;  %v1973_v14 = vld [vmem:[%s9253_s6 + $0x150] sm:$0xff]  ;;  %v7686_v19 = vpack.c.bf16 %v1975_v28, %v1971_v42 }
 0x25c   :  { %v1981_v28 = vld [vmem:[%s9253_s6 + $0x190] sm:$0xff] }
 0x25d   :  { %9359 = vst [vmem:[#allocation25_spill] sm:$0xff] %v7661_v40  ;;  %v1985_v42 = vld [vmem:[%s9253_s6 + $0x1b0] sm:$0xff] }
 0x25e   :  { %v6004_v3 = vpop.eup %6003  ;;  %5129 = vmatpush1.bf16.msra.mxu0 %v7611_v32  ;;  %5161 = vmatpush1.bf16.msra.mxu1 %v7613_v46  ;;  %v7659_v46 = vpack.c.bf16 %v1976_v35, %v1972_v33  ;;  %v1984_v33 = vld [vmem:[%s9253_s6 + $0x1a8] sm:$0xff]  ;;  %v1986_v35 = vld [vmem:[%s9253_s6 + $0x1b8] sm:$0xff] }
 0x25f   :  { %v6006_v7 = vpop.eup %6005  ;;  %v1699_v5 = vmul.f32 %v6004_v3, %v6002_v62  ;;  %5131 = vmatprep.subr.bf16.mxu0 %v7623_v4  ;;  %5163 = vmatprep.subr.bf16.mxu1 %v7625_v41  ;;  %v1980_v3 = vld [vmem:[%s9253_s6 + $0x188] sm:$0xff]  ;;  %v1983_v62 = vld [vmem:[%s9253_s6 + $0x1a0] sm:$0xff] }
 0x260   :  { %9358 = vst [vmem:[#allocation24_spill] sm:$0xff] %v7659_v46  ;;  %v1698_v9 = vmul.f32 %v6006_v7, %v7136_v2  ;;  %v7688_v7 = vpack.c.bf16 %v1977_v24, %v1973_v14  ;;  %v1979_v2 = vld [vmem:[%s9253_s6 + $0x180] sm:$0xff]  ;;  %v1992_v14 = vld [vmem:[%s9253_s6 + $0x1e8] sm:$0xff]  ;;  %v1990_v24 = vld [vmem:[%s9253_s6 + $0x1d8] sm:$0xff] }
 0x262   :  { %v7682_v59 = vadd.f32 %v1699_v5, %v1698_v9  ;;  %5133 = vmatpush1.bf16.msra.mxu0 %v7647_v29  ;;  %5165 = vmatpush1.bf16.msra.mxu1 %v7649_v63  ;;  %9360 = vst [vmem:[#allocation26_spill] sm:$0xff] %v7688_v7  ;;  %v7698_v5 = vpack.c.bf16 %v1984_v33, %v1980_v3  ;;  %v1994_v3 = vld [vmem:[%s9253_s6 + $0x1f8] sm:$0xff] }
 0x263   :  { %5135 = vmatprep.subr.bf16.mxu0 %v7659_v46  ;;  %5167 = vmatprep.subr.bf16.mxu1 %v7661_v40  ;;  %v7700_v9 = vpack.c.bf16 %v1986_v35, %v1982_v12  ;;  %v7723_v33 = vpack.c.bf16 %v1983_v62, %v1979_v2  ;;  %v7725_v12 = vpack.c.bf16 %v1985_v42, %v1981_v28  ;;  %v1987_v35 = vld [vmem:[%s9253_s6 + $0x1c0] sm:$0xff]  ;;  %v1989_v2 = vld [vmem:[%s9253_s6 + $0x1d0] sm:$0xff] }
 0x264   :  { %6009 = vtanh.f32 %v7682_v59  ;;  %v7732_v40 = vpack.c.bf16 %v1992_v14, %v1988_v43  ;;  %v7734_v46 = vpack.c.bf16 %v1994_v3, %v1990_v24  ;;  %v1993_v62 = vld [vmem:[%s9253_s6 + $0x1f0] sm:$0xff]  ;;  %v6008_v43 = vpop.eup %6007 }
 0x265   :  { %v7749_v42 = vpack.c.bf16 %v1993_v62, %v1989_v2 }
 0x266   :  { %5137 = vmatpush1.bf16.msra.mxu0 %v7686_v19  ;;  %5169 = vmatpush1.bf16.msra.mxu1 %v7688_v7  ;;  %v1991_v7 = vld [vmem:[%s9253_s6 + $0x1e0] sm:$0xff] }
 0x267   :  { %5139 = vmatprep.subr.bf16.mxu0 %v7698_v5  ;;  %5171 = vmatprep.subr.bf16.mxu1 %v7700_v9  ;;  %v7747_v28 = vpack.c.bf16 %v1991_v7, %v1987_v35  ;;  %v9363_v35 = vld [vmem:[#allocation17_spill] sm:$0xff] }
 0x26a   :  { %5141 = vmatpush1.bf16.msra.mxu0 %v7723_v33  ;;  %5173 = vmatpush1.bf16.msra.mxu1 %v7725_v12 }
 0x26b   :  { %5143 = vmatprep.subr.bf16.mxu0 %v7732_v40  ;;  %5175 = vmatprep.subr.bf16.mxu1 %v7734_v46 }
 0x26e   :  { %v6010_v14 = vpop.eup %6009  ;;  %5145 = vmatpush1.bf16.msra.mxu0 %v7747_v28  ;;  %5177 = vmatpush1.bf16.msra.mxu1 %v7749_v42 }
 0x26f   :  { %v1702_v24 = vmul.f32 %v6010_v14, %v6008_v43  ;;  %5179 = vmatprep.subr.bf16.mxu0 %v7167_v54  ;;  %5211 = vmatprep.subr.bf16.mxu1 %v7178_v48 }
 0x271   :  { %4714 = vst [vmem:[%s9257_s9 + $0x30] sm:$0xff] %v1702_v24  ;;  %2060 = vmatmul.mubr.f32.vlgmr.msra.gmra.mrb[26].mxu0 %v1702_v24  ;;  %2131 = vmatmul.mubr.f32.vlgmr.msra.gmra.mrb[26].mxu1 %v1702_v24 }
 0x272   :  { %5181 = vmatpush1.bf16.msra.mxu0 %v7180_v55  ;;  %5213 = vmatpush1.bf16.msra.mxu1 %v7189_v37 }
 0x273   :  { %5183 = vmatprep.subr.bf16.mxu0 %v7203_v58  ;;  %5215 = vmatprep.subr.bf16.mxu1 %v7214_v47 }
 0x274   :  { %2328 = vmatprep.mubr.f32.mxu0 %v9334_v60  ;;  %2399 = vmatprep.mubr.f32.mxu1 %v9334_v60 }
 0x276   :  { %5185 = vmatpush1.bf16.msra.mxu0 %v7216_v31  ;;  %5217 = vmatpush1.bf16.msra.mxu1 %v7225_v10 }
 0x277   :  { %5187 = vmatprep.subr.bf16.mxu0 %v7239_v36  ;;  %5219 = vmatprep.subr.bf16.mxu1 %v7250_v49 }
 0x27a   :  { %5189 = vmatpush1.bf16.msra.mxu0 %v7252_v61  ;;  %5221 = vmatpush1.bf16.msra.mxu1 %v7261_v57 }
 0x27b   :  { %5191 = vmatprep.subr.bf16.mxu0 %v7275_v25  ;;  %5223 = vmatprep.subr.bf16.mxu1 %v7286_v8 }
 0x27e   :  { %5193 = vmatpush1.bf16.msra.mxu0 %v7288_v50  ;;  %5225 = vmatpush1.bf16.msra.mxu1 %v7297_v21 }
 0x27f   :  { %5195 = vmatprep.subr.bf16.mxu0 %v7311_v22  ;;  %5227 = vmatprep.subr.bf16.mxu1 %v7322_v30 }
 0x282   :  { %5197 = vmatpush1.bf16.msra.mxu0 %v7324_v34  ;;  %5229 = vmatpush1.bf16.msra.mxu1 %v7333_v27 }
 0x283   :  { %5199 = vmatprep.subr.bf16.mxu0 %v7347_v51  ;;  %5231 = vmatprep.subr.bf16.mxu1 %v7358_v53 }
 0x286   :  { %5201 = vmatpush1.bf16.msra.mxu0 %v7360_v56  ;;  %5233 = vmatpush1.bf16.msra.mxu1 %v7369_v13 }
 0x287   :  { %5203 = vmatprep.subr.bf16.mxu0 %v7383_v26  ;;  %5235 = vmatprep.subr.bf16.mxu1 %v7394_v17 }
 0x28a   :  { %5205 = vmatpush1.bf16.msra.mxu0 %v7396_v38  ;;  %5237 = vmatpush1.bf16.msra.mxu1 %v7405_v1 }
 0x28b   :  { %5207 = vmatprep.subr.bf16.mxu0 %v7419_v18  ;;  %5239 = vmatprep.subr.bf16.mxu1 %v7430_v11  ;;  %v9361_v18 = vld [vmem:[#allocation15_spill] sm:$0xff] }
 0x28e   :  { %5209 = vmatpush1.bf16.msra.mxu0 %v7432_v44  ;;  %5241 = vmatpush1.bf16.msra.mxu1 %v7441_v45 }
 0x28f   :  { %5243 = vmatprep.subr.bf16.mxu0 %v7455_v23  ;;  %5275 = vmatprep.subr.bf16.mxu1 %v7460_v39  ;;  %v9362_v23 = vld [vmem:[#allocation16_spill] sm:$0xff] }
 0x324   :  { %v1844_v54 = vpop.f32.mrb[4].mxu0  ;;  %v1915_v48 = vpop.f32.mrb[4].mxu1 }
 0x325   :  { %v5822_v55 = vadd.f32 %v1844_v54, %v7085_v16  ;;  %v1846_v37 = vpop.f32.mrb[5].mxu0  ;;  %v1917_v58 = vpop.f32.mrb[5].mxu1  ;;  %v5838_v61 = vadd.f32 %v1915_v48, %v7094_v0  ;;  %v9364_v54 = vld [vmem:[#allocation8_spill] sm:$0xff]  ;;  %v9365_v48 = vld [vmem:[#allocation9_spill] sm:$0xff] }
 0x326   :  { %v5823_v47 = vadd.f32 %v1846_v37, %v7087_v20  ;;  %v5839_v36 = vadd.f32 %v1917_v58, %v7091_v52  ;;  %v9366_v37 = vld [vmem:[#allocation10_spill] sm:$0xff]  ;;  %v9367_v58 = vld [vmem:[#allocation11_spill] sm:$0xff] }
 0x327   :  { %v4715_v31 = vmul.f32 -1.442695, %v5822_v55 }
 0x328   :  { %v4716_v10 = vmul.f32 -1.442695, %v5823_v47  ;;  %v4717_v49 = vmul.f32 -1.442695, %v5839_v36  ;;  %v9368_v47 = vld [vmem:[#allocation12_spill] sm:$0xff]  ;;  %v9371_v36 = vld [vmem:[#allocation18_spill] sm:$0xff] }
 0x329   :  { %6011 = vpow2.f32 %v4715_v31  ;;  %v9369_v31 = vld [vmem:[#allocation13_spill] sm:$0xff] }
 0x32a   :  { %6013 = vpow2.f32 %v4716_v10  ;;  %v9370_v10 = vld [vmem:[#allocation14_spill] sm:$0xff] }
 0x32b   :  { %6015 = vpow2.f32 %v4717_v49  ;;  %v9372_v49 = vld [vmem:[#allocation19_spill] sm:$0xff] }
 0x32c   :  { %6017 = vtanh.f32 %v5838_v61  ;;  %v9373_v61 = vld [vmem:[#allocation20_spill] sm:$0xff] }
 0x333   :  { %v6012_v57 = vpop.eup %6011 }
 0x334   :  { %v6014_v25 = vpop.eup %6013  ;;  %v2144_v8 = vadd.f32 1.0, %v6012_v57  ;;  %v9374_v57 = vld [vmem:[#allocation21_spill] sm:$0xff] }
 0x335   :  { %v2150_v50 = vadd.f32 1.0, %v6014_v25  ;;  %v6016_v21 = vpop.eup %6015  ;;  %v9375_v25 = vld [vmem:[#allocation22_spill] sm:$0xff] }
 0x336   :  { %6019 = vrcp.f32 %v2144_v8  ;;  %v6018_v22 = vpop.eup %6017  ;;  %v2157_v51 = vadd.f32 1.0, %v6016_v21 }
 0x337   :  { %6021 = vrcp.f32 %v2150_v50 }
 0x338   :  { %6023 = vrcp.f32 %v2157_v51 }
 0x340   :  { %v6020_v30 = vpop.eup %6019 }
 0x341   :  { %v6022_v34 = vpop.eup %6021  ;;  %v2161_v27 = vmul.f32 %v6020_v30, %v6018_v22  ;;  %v9376_v22 = vld [vmem:[#allocation23_spill] sm:$0xff] }
 0x342   :  { %v2160_v53 = vmul.f32 %v6022_v34, %v7469_v15  ;;  %v6024_v15 = vpop.eup %6023 }
 0x344   :  { %v7799_v56 = vadd.f32 %v2161_v27, %v2160_v53  ;;  %v2061_v13 = vpop.f32.mrb[26].mxu0  ;;  %v2132_v26 = vpop.f32.mrb[26].mxu1 }
 0x345   :  { %v5860_v17 = vadd.f32 %v2061_v13, %v7100_v6  ;;  %v2063_v38 = vpop.f32.mrb[27].mxu0  ;;  %v2134_v1 = vpop.f32.mrb[27].mxu1  ;;  %v5876_v2 = vadd.f32 %v2132_v26, %v9363_v35  ;;  %v9377_v13 = vld [vmem:[#allocation24_spill] sm:$0xff]  ;;  %v2691_v26 = vld [vmem:[%s9251_s3 + $0x30] sm:$0xff] }
 0x346   :  { %v5861_v11 = vadd.f32 %v2063_v38, %v9361_v18  ;;  %6025 = vtanh.f32 %v7799_v56  ;;  %v5877_v39 = vadd.f32 %v2134_v1, %v9362_v23  ;;  %v2694_v38 = vld [vmem:[%s9251_s3 + $0x48] sm:$0xff] }
 0x347   :  { %v4718_v44 = vmul.f32 -1.442695, %v5860_v17  ;;  %v2698_v1 = vld [vmem:[%s9251_s3 + $0x68] sm:$0xff] }
 0x348   :  { %v4719_v45 = vmul.f32 -1.442695, %v5861_v11  ;;  %v4720_v3 = vmul.f32 -1.442695, %v5877_v39  ;;  %v2696_v11 = vld [vmem:[%s9251_s3 + $0x58] sm:$0xff]  ;;  %v2693_v39 = vld [vmem:[%s9251_s3 + $0x40] sm:$0xff] }
 0x349   :  { %6027 = vpow2.f32 %v4718_v44  ;;  %v7895_v44 = vpack.c.bf16 %v2698_v1, %v2694_v38  ;;  %v2730_v38 = vld [vmem:[%s9251_s3 + $0x168] sm:$0xff]  ;;  %v2728_v1 = vld [vmem:[%s9251_s3 + $0x158] sm:$0xff] }
 0x34a   :  { %6029 = vpow2.f32 %v4719_v45  ;;  %v2700_v45 = vld [vmem:[%s9251_s3 + $0x78] sm:$0xff] }
 0x34b   :  { %6031 = vpow2.f32 %v4720_v3 }
 0x34c   :  { %6033 = vtanh.f32 %v5876_v2  ;;  %v2695_v2 = vld [vmem:[%s9251_s3 + $0x50] sm:$0xff] }
 0x350   :  { %v6026_v7 = vpop.eup %6025 }
 0x351   :  { %v2164_v62 = vmul.f32 %v6026_v7, %v6024_v15  ;;  %v2697_v15 = vld [vmem:[%s9251_s3 + $0x60] sm:$0xff]  ;;  %v7906_v7 = vpack.c.bf16 %v2700_v45, %v2696_v11  ;;  %v2732_v45 = vld [vmem:[%s9251_s3 + $0x178] sm:$0xff] }
 0x352   :  { %v7908_v3 = vpack.c.bf16 %v2697_v15, %v2693_v39  ;;  %v2725_v39 = vld [vmem:[%s9251_s3 + $0x140] sm:$0xff] }
 0x353   :  { %v6028_v43 = vpop.eup %6027  ;;  %4721 = vst [vmem:[%s9256_s8 + $0x10] sm:$0xff] %v2164_v62  ;;  %2329 = vmatmul.mubr.f32.vlgmr.msra.gmra.mrb[6].mxu0 %v2164_v62  ;;  %2400 = vmatmul.mubr.f32.vlgmr.msra.gmra.mrb[6].mxu1 %v2164_v62  ;;  %v2699_v62 = vld [vmem:[%s9251_s3 + $0x70] sm:$0xff]  ;;  %v2729_v15 = vld [vmem:[%s9251_s3 + $0x160] sm:$0xff] }
 0x354   :  { %v6030_v14 = vpop.eup %6029  ;;  %v2168_v24 = vadd.f32 1.0, %v6028_v43  ;;  %5245 = vmatpush1.bf16.msra.mxu0 %v9364_v54  ;;  %5277 = vmatpush1.bf16.msra.mxu1 %v9365_v48  ;;  %v7917_v43 = vpack.c.bf16 %v2699_v62, %v2695_v2  ;;  %v2704_v54 = vld [vmem:[%s9251_s3 + $0x98] sm:$0xff]  ;;  %v8050_v2 = vpack.c.bf16 %v2732_v45, %v2728_v1  ;;  %v8052_v62 = vpack.c.bf16 %v2729_v15, %v2725_v39  ;;  %v2902_v45 = vld [vmem:[%s9253_s6 + $0x8] sm:$0xff] }
 0x355   :  { %v2174_v55 = vadd.f32 1.0, %v6030_v14  ;;  %5247 = vmatprep.subr.bf16.mxu0 %v9366_v37  ;;  %5279 = vmatprep.subr.bf16.mxu1 %v9367_v58  ;;  %v6032_v8 = vpop.eup %6031  ;;  %v2702_v14 = vld [vmem:[%s9251_s3 + $0x88] sm:$0xff]  ;;  %v2701_v37 = vld [vmem:[%s9251_s3 + $0x80] sm:$0xff]  ;;  %v2904_v15 = vld [vmem:[%s9253_s6 + $0x18] sm:$0xff] }
 0x356   :  { %6035 = vrcp.f32 %v2168_v24  ;;  %2545 = vmatprep.mubr.f32.mxu0 %v9334_v60  ;;  %2616 = vmatprep.mubr.f32.mxu1 %v9334_v60  ;;  %v6034_v50 = vpop.eup %6033  ;;  %v2181_v27 = vadd.f32 1.0, %v6032_v8  ;;  %v2706_v24 = vld [vmem:[%s9251_s3 + $0xa8] sm:$0xff]  ;;  %v2705_v58 = vld [vmem:[%s9251_s3 + $0xa0] sm:$0xff] }
 0x357   :  { %6037 = vrcp.f32 %v2174_v55  ;;  %v7931_v48 = vpack.c.bf16 %v2706_v24, %v2702_v14  ;;  %v2708_v55 = vld [vmem:[%s9251_s3 + $0xb8] sm:$0xff]  ;;  %v2727_v14 = vld [vmem:[%s9251_s3 + $0x150] sm:$0xff]  ;;  %v2906_v39 = vld [vmem:[%s9253_s6 + $0x28] sm:$0xff] }
 0x358   :  { %5249 = vmatpush1.bf16.msra.mxu0 %v9368_v47  ;;  %5281 = vmatpush1.bf16.msra.mxu1 %v9369_v31  ;;  %6039 = vrcp.f32 %v2181_v27  ;;  %v7942_v47 = vpack.c.bf16 %v2708_v55, %v2704_v54  ;;  %v7944_v31 = vpack.c.bf16 %v2705_v58, %v2701_v37  ;;  %v2711_v27 = vld [vmem:[%s9251_s3 + $0xd0] sm:$0xff]  ;;  %v2734_v55 = vld [vmem:[%s9251_s3 + $0x188] sm:$0xff]  ;;  %v2736_v58 = vld [vmem:[%s9251_s3 + $0x198] sm:$0xff] }
 0x359   :  { %5251 = vmatprep.subr.bf16.mxu0 %v9370_v10  ;;  %5283 = vmatprep.subr.bf16.mxu1 %v9371_v36  ;;  %v2703_v10 = vld [vmem:[%s9251_s3 + $0x90] sm:$0xff]  ;;  %v2738_v37 = vld [vmem:[%s9251_s3 + $0x1a8] sm:$0xff] }
 0x35a   :  { %v2707_v36 = vld [vmem:[%s9251_s3 + $0xb0] sm:$0xff] }
 0x35b   :  { %v2731_v24 = vld [vmem:[%s9251_s3 + $0x170] sm:$0xff] }
 0x35c   :  { %5253 = vmatpush1.bf16.msra.mxu0 %v9372_v49  ;;  %5285 = vmatpush1.bf16.msra.mxu1 %v9373_v61  ;;  %v7953_v49 = vpack.c.bf16 %v2707_v36, %v2703_v10  ;;  %v2710_v61 = vld [vmem:[%s9251_s3 + $0xc8] sm:$0xff]  ;;  %v8061_v54 = vpack.c.bf16 %v2731_v24, %v2727_v14  ;;  %v8075_v10 = vpack.c.bf16 %v2738_v37, %v2734_v55  ;;  %v2740_v36 = vld [vmem:[%s9251_s3 + $0x1b8] sm:$0xff] }
 0x35d   :  { %5255 = vmatprep.subr.bf16.mxu0 %v9374_v57  ;;  %5287 = vmatprep.subr.bf16.mxu1 %v9375_v25  ;;  %v2714_v57 = vld [vmem:[%s9251_s3 + $0xe8] sm:$0xff]  ;;  %v2712_v25 = vld [vmem:[%s9251_s3 + $0xd8] sm:$0xff]  ;;  %v8147_v14 = vpack.c.bf16 %v2906_v39, %v2902_v45 }
 0x35e   :  { %v7967_v8 = vpack.c.bf16 %v2714_v57, %v2710_v61  ;;  %v2733_v61 = vld [vmem:[%s9251_s3 + $0x180] sm:$0xff]  ;;  %v2908_v24 = vld [vmem:[%s9253_s6 + $0x38] sm:$0xff] }
 0x35f   :  { %v2737_v57 = vld [vmem:[%s9251_s3 + $0x1a0] sm:$0xff]  ;;  %v8152_v55 = vpack.c.bf16 %v2908_v24, %v2904_v15 }
 0x360   :  { %v6036_v21 = vpop.eup %6035  ;;  %5257 = vmatpush1.bf16.msra.mxu0 %v7611_v32  ;;  %5289 = vmatpush1.bf16.msra.mxu1 %v9376_v22  ;;  %v9378_v32 = vld [vmem:[#allocation25_spill] sm:$0xff]  ;;  %v2713_v22 = vld [vmem:[%s9251_s3 + $0xe0] sm:$0xff] }
 0x361   :  { %v6038_v30 = vpop.eup %6037  ;;  %v2185_v34 = vmul.f32 %v6036_v21, %v6034_v50  ;;  %5259 = vmatprep.subr.bf16.mxu0 %v7623_v4  ;;  %5291 = vmatprep.subr.bf16.mxu1 %v7625_v41  ;;  %v9379_v4 = vld [vmem:[#allocation26_spill] sm:$0xff]  ;;  %v2716_v50 = vld [vmem:[%s9251_s3 + $0xf8] sm:$0xff]  ;;  %v2709_v21 = vld [vmem:[%s9251_s3 + $0xc0] sm:$0xff] }
 0x362   :  { %v2184_v51 = vmul.f32 %v6038_v30, %v7682_v59  ;;  %v6040_v41 = vpop.eup %6039  ;;  %v2688_v59 = vld [vmem:[%s9251_s3 + $0x18] sm:$0xff]  ;;  %v7978_v30 = vpack.c.bf16 %v2716_v50, %v2712_v25  ;;  %v8086_v25 = vpack.c.bf16 %v2740_v36, %v2736_v58  ;;  %v8088_v50 = vpack.c.bf16 %v2737_v57, %v2733_v61 }
 0x364   :  { %v7828_v53 = vadd.f32 %v2185_v34, %v2184_v51  ;;  %5261 = vmatpush1.bf16.msra.mxu0 %v7647_v29  ;;  %5293 = vmatpush1.bf16.msra.mxu1 %v7649_v63  ;;  %v7980_v34 = vpack.c.bf16 %v2713_v22, %v2709_v21  ;;  %v2715_v51 = vld [vmem:[%s9251_s3 + $0xf0] sm:$0xff] }
 0x365   :  { %5263 = vmatprep.subr.bf16.mxu0 %v9377_v13  ;;  %5295 = vmatprep.subr.bf16.mxu1 %v9378_v32  ;;  %v7989_v13 = vpack.c.bf16 %v2715_v51, %v2711_v27  ;;  %v2718_v32 = vld [vmem:[%s9251_s3 + $0x108] sm:$0xff]  ;;  %v2735_v21 = vld [vmem:[%s9251_s3 + $0x190] sm:$0xff] }
 0x366   :  { %6041 = vtanh.f32 %v7828_v53  ;;  %v2739_v22 = vld [vmem:[%s9251_s3 + $0x1b0] sm:$0xff]  ;;  %v2742_v51 = vld [vmem:[%s9251_s3 + $0x1c8] sm:$0xff] }
 0x367   :  { %v8097_v27 = vpack.c.bf16 %v2739_v22, %v2735_v21 }
 0x368   :  { %5265 = vmatpush1.bf16.msra.mxu0 %v7686_v19  ;;  %5297 = vmatpush1.bf16.msra.mxu1 %v9379_v4  ;;  %v2722_v4 = vld [vmem:[%s9251_s3 + $0x128] sm:$0xff] }
 0x369   :  { %5267 = vmatprep.subr.bf16.mxu0 %v7698_v5  ;;  %5299 = vmatprep.subr.bf16.mxu1 %v7700_v9  ;;  %v2692_v5 = vld [vmem:[%s9251_s3 + $0x38] sm:$0xff]  ;;  %v2685_v9 = vld [vmem:[%s9251_s3] sm:$0xff] }
 0x36c   :  { %5269 = vmatpush1.bf16.msra.mxu0 %v7723_v33  ;;  %5301 = vmatpush1.bf16.msra.mxu1 %v7725_v12  ;;  %v2689_v33 = vld [vmem:[%s9251_s3 + $0x20] sm:$0xff]  ;;  %v7870_v12 = vpack.c.bf16 %v2692_v5, %v2688_v59 }
 0x36d   :  { %5271 = vmatprep.subr.bf16.mxu0 %v7732_v40  ;;  %5303 = vmatprep.subr.bf16.mxu1 %v7734_v46  ;;  %v2686_v46 = vld [vmem:[%s9251_s3 + $0x8] sm:$0xff] }
 0x36e   :  { %v2690_v40 = vld [vmem:[%s9251_s3 + $0x28] sm:$0xff] }
 0x36f   :  { %v7859_v19 = vpack.c.bf16 %v2690_v40, %v2686_v46  ;;  %v2717_v46 = vld [vmem:[%s9251_s3 + $0x100] sm:$0xff] }
 0x370   :  { %v6042_v63 = vpop.eup %6041  ;;  %5273 = vmatpush1.bf16.msra.mxu0 %v7747_v28  ;;  %5305 = vmatpush1.bf16.msra.mxu1 %v7749_v42  ;;  %v7872_v28 = vpack.c.bf16 %v2689_v33, %v2685_v9  ;;  %v2687_v42 = vld [vmem:[%s9251_s3 + $0x10] sm:$0xff]  ;;  %v2721_v40 = vld [vmem:[%s9251_s3 + $0x120] sm:$0xff] }
 0x371   :  { %v2188_v29 = vmul.f32 %v6042_v63, %v6040_v41  ;;  %5307 = vmatprep.subr.bf16.mxu0 %v7859_v19  ;;  %v7881_v17 = vpack.c.bf16 %v2691_v26, %v2687_v42  ;;  %5339 = vmatprep.subr.bf16.mxu1 %v7870_v12  ;;  %v2720_v41 = vld [vmem:[%s9251_s3 + $0x118] sm:$0xff]  ;;  %v8003_v63 = vpack.c.bf16 %v2722_v4, %v2718_v32  ;;  %v2719_v9 = vld [vmem:[%s9251_s3 + $0x110] sm:$0xff]  ;;  %v2726_v26 = vld [vmem:[%s9251_s3 + $0x148] sm:$0xff] }
 0x372   :  { %v8016_v5 = vpack.c.bf16 %v2721_v40, %v2717_v46  ;;  %v2723_v33 = vld [vmem:[%s9251_s3 + $0x130] sm:$0xff]  ;;  %v8039_v11 = vpack.c.bf16 %v2730_v38, %v2726_v26  ;;  %v2746_v32 = vld [vmem:[%s9251_s3 + $0x1e8] sm:$0xff]  ;;  %v2744_v4 = vld [vmem:[%s9251_s3 + $0x1d8] sm:$0xff] }
 0x373   :  { %4722 = vst [vmem:[%s9257_s9 + $0x28] sm:$0xff] %v2188_v29  ;;  %2546 = vmatmul.mubr.f32.vlgmr.msra.gmra.mrb[24].mxu0 %v2188_v29  ;;  %2617 = vmatmul.mubr.f32.vlgmr.msra.gmra.mrb[24].mxu1 %v2188_v29  ;;  %v2724_v29 = vld [vmem:[%s9251_s3 + $0x138] sm:$0xff]  ;;  %v8025_v42 = vpack.c.bf16 %v2723_v33, %v2719_v9  ;;  %v2741_v46 = vld [vmem:[%s9251_s3 + $0x1c0] sm:$0xff]  ;;  %v2743_v26 = vld [vmem:[%s9251_s3 + $0x1d0] sm:$0xff] }
 0x374   :  { %2813 = vmatprep.mubr.f32.mxu0 %v9334_v60  ;;  %2884 = vmatprep.mubr.f32.mxu1 %v9334_v60  ;;  %v8014_v59 = vpack.c.bf16 %v2724_v29, %v2720_v41  ;;  %v8111_v41 = vpack.c.bf16 %v2746_v32, %v2742_v51  ;;  %v2748_v29 = vld [vmem:[%s9251_s3 + $0x1f8] sm:$0xff]  ;;  %v2745_v40 = vld [vmem:[%s9251_s3 + $0x1e0] sm:$0xff]  ;;  %v2747_v38 = vld [vmem:[%s9251_s3 + $0x1f0] sm:$0xff] }
 0x375   :  { %5309 = vmatpush1.bf16.msra.mxu0 %v7872_v28  ;;  %5341 = vmatpush1.bf16.msra.mxu1 %v7881_v17  ;;  %v8122_v9 = vpack.c.bf16 %v2748_v29, %v2744_v4  ;;  %v8124_v33 = vpack.c.bf16 %v2745_v40, %v2741_v46  ;;  %v8133_v1 = vpack.c.bf16 %v2747_v38, %v2743_v26 }
 0x376   :  { %5311 = vmatprep.subr.bf16.mxu0 %v7895_v44  ;;  %5343 = vmatprep.subr.bf16.mxu1 %v7906_v7 }
 0x379   :  { %5313 = vmatpush1.bf16.msra.mxu0 %v7908_v3  ;;  %5345 = vmatpush1.bf16.msra.mxu1 %v7917_v43 }
 0x37a   :  { %5315 = vmatprep.subr.bf16.mxu0 %v7931_v48  ;;  %5347 = vmatprep.subr.bf16.mxu1 %v7942_v47 }
 0x37d   :  { %5317 = vmatpush1.bf16.msra.mxu0 %v7944_v31  ;;  %5349 = vmatpush1.bf16.msra.mxu1 %v7953_v49 }
 0x37e   :  { %5319 = vmatprep.subr.bf16.mxu0 %v7967_v8  ;;  %5351 = vmatprep.subr.bf16.mxu1 %v7978_v30 }
 0x381   :  { %5321 = vmatpush1.bf16.msra.mxu0 %v7980_v34  ;;  %5353 = vmatpush1.bf16.msra.mxu1 %v7989_v13 }
 0x382   :  { %5323 = vmatprep.subr.bf16.mxu0 %v8003_v63  ;;  %5355 = vmatprep.subr.bf16.mxu1 %v8014_v59 }
 0x385   :  { %5325 = vmatpush1.bf16.msra.mxu0 %v8016_v5  ;;  %5357 = vmatpush1.bf16.msra.mxu1 %v8025_v42 }
 0x386   :  { %5327 = vmatprep.subr.bf16.mxu0 %v8039_v11  ;;  %5359 = vmatprep.subr.bf16.mxu1 %v8050_v2 }
 0x389   :  { %5329 = vmatpush1.bf16.msra.mxu0 %v8052_v62  ;;  %5361 = vmatpush1.bf16.msra.mxu1 %v8061_v54 }
 0x38a   :  { %5331 = vmatprep.subr.bf16.mxu0 %v8075_v10  ;;  %5363 = vmatprep.subr.bf16.mxu1 %v8086_v25 }
 0x38d   :  { %5333 = vmatpush1.bf16.msra.mxu0 %v8088_v50  ;;  %5365 = vmatpush1.bf16.msra.mxu1 %v8097_v27 }
 0x38e   :  { %5335 = vmatprep.subr.bf16.mxu0 %v8111_v41  ;;  %5367 = vmatprep.subr.bf16.mxu1 %v8122_v9 }
 0x391   :  { %5337 = vmatpush1.bf16.msra.mxu0 %v8124_v33  ;;  %5369 = vmatpush1.bf16.msra.mxu1 %v8133_v1 }
 0x392   :  { %5371 = vmatprep.subr.bf16.mxu0 %v8147_v14  ;;  %5403 = vmatprep.subr.bf16.mxu1 %v8152_v55 }
 0x426   :  { %v2330_v37 = vpop.f32.mrb[6].mxu0  ;;  %v2401_v58 = vpop.f32.mrb[6].mxu1 }
 0x427   :  { %v5824_v36 = vadd.f32 %v2330_v37, %v7085_v16  ;;  %v2332_v61 = vpop.f32.mrb[7].mxu0  ;;  %v2403_v57 = vpop.f32.mrb[7].mxu1  ;;  %v5840_v29 = vadd.f32 %v2401_v58, %v7094_v0 }
 0x428   :  { %v5825_v21 = vadd.f32 %v2332_v61, %v7087_v20  ;;  %v5841_v32 = vadd.f32 %v2403_v57, %v7091_v52 }
 0x429   :  { %v4723_v22 = vmul.f32 -1.442695, %v5824_v36 }
 0x42a   :  { %v4724_v51 = vmul.f32 -1.442695, %v5825_v21  ;;  %v4725_v4 = vmul.f32 -1.442695, %v5841_v32 }
 0x42b   :  { %6043 = vpow2.f32 %v4723_v22 }
 0x42c   :  { %6045 = vpow2.f32 %v4724_v51 }
 0x42d   :  { %6047 = vpow2.f32 %v4725_v4 }
 0x42e   :  { %6049 = vtanh.f32 %v5840_v29 }
 0x435   :  { %v6044_v46 = vpop.eup %6043 }
 0x436   :  { %v6046_v40 = vpop.eup %6045  ;;  %v2630_v26 = vadd.f32 1.0, %v6044_v46 }
 0x437   :  { %v2636_v38 = vadd.f32 1.0, %v6046_v40  ;;  %v6048_v45 = vpop.eup %6047 }
 0x438   :  { %6051 = vrcp.f32 %v2630_v26  ;;  %v6050_v39 = vpop.eup %6049  ;;  %v2643_v36 = vadd.f32 1.0, %v6048_v45  ;;  %v2905_v26 = vld [vmem:[%s9253_s6 + $0x20] sm:$0xff]  ;;  %v2907_v45 = vld [vmem:[%s9253_s6 + $0x30] sm:$0xff] }
 0x439   :  { %6053 = vrcp.f32 %v2636_v38  ;;  %v2903_v38 = vld [vmem:[%s9253_s6 + $0x10] sm:$0xff] }
 0x43a   :  { %6055 = vrcp.f32 %v2643_v36 }
 0x442   :  { %v6052_v15 = vpop.eup %6051 }
 0x443   :  { %v6054_v24 = vpop.eup %6053  ;;  %v2647_v37 = vmul.f32 %v6052_v15, %v6050_v39  ;;  %v2910_v39 = vld [vmem:[%s9253_s6 + $0x48] sm:$0xff] }
 0x444   :  { %v2646_v61 = vmul.f32 %v6054_v24, %v7799_v56  ;;  %v2901_v56 = vld [vmem:[%s9253_s6] sm:$0xff]  ;;  %v2914_v15 = vld [vmem:[%s9253_s6 + $0x68] sm:$0xff]  ;;  %v2912_v24 = vld [vmem:[%s9253_s6 + $0x58] sm:$0xff]  ;;  %v6056_v36 = vpop.eup %6055 }
 0x446   :  { %v8161_v57 = vadd.f32 %v2647_v37, %v2646_v61  ;;  %v2547_v21 = vpop.f32.mrb[24].mxu0  ;;  %v2618_v58 = vpop.f32.mrb[24].mxu1  ;;  %v2916_v37 = vld [vmem:[%s9253_s6 + $0x78] sm:$0xff] }
 0x447   :  { %v5858_v22 = vadd.f32 %v2547_v21, %v7100_v6  ;;  %v2549_v51 = vpop.f32.mrb[25].mxu0  ;;  %v2620_v32 = vpop.f32.mrb[25].mxu1 }
 0x448   :  { %v5859_v4 = vadd.f32 %v2549_v51, %v9361_v18  ;;  %6057 = vtanh.f32 %v8161_v57  ;;  %v5875_v40 = vadd.f32 %v2620_v32, %v9362_v23  ;;  %v8193_v51 = vpack.c.bf16 %v2907_v45, %v2903_v38  ;;  %v2909_v32 = vld [vmem:[%s9253_s6 + $0x40] sm:$0xff]  ;;  %v2920_v38 = vld [vmem:[%s9253_s6 + $0x98] sm:$0xff] }
 0x449   :  { %v4726_v29 = vmul.f32 -1.442695, %v5858_v22  ;;  %v8191_v22 = vpack.c.bf16 %v2905_v26, %v2901_v56  ;;  %v8202_v23 = vpack.c.bf16 %v2914_v15, %v2910_v39  ;;  %v8204_v18 = vpack.c.bf16 %v2916_v37, %v2912_v24  ;;  %v2915_v56 = vld [vmem:[%s9253_s6 + $0x70] sm:$0xff]  ;;  %v2918_v26 = vld [vmem:[%s9253_s6 + $0x88] sm:$0xff]  ;;  %v2924_v45 = vld [vmem:[%s9253_s6 + $0xb8] sm:$0xff] }
 0x44a   :  { %v4727_v46 = vmul.f32 -1.442695, %v5859_v4  ;;  %v4728_v21 = vmul.f32 -1.442695, %v5875_v40  ;;  %9381 = vst [vmem:[#allocation9_spill] sm:$0xff] %v8193_v51  ;;  %v2913_v4 = vld [vmem:[%s9253_s6 + $0x60] sm:$0xff] }
 0x44b   :  { %6059 = vpow2.f32 %v4726_v29  ;;  %9380 = vst [vmem:[#allocation8_spill] sm:$0xff] %v8191_v22  ;;  %v5874_v29 = vadd.f32 %v2618_v58, %v9363_v35  ;;  %9382 = vst [vmem:[#allocation10_spill] sm:$0xff] %v8202_v23  ;;  %v2911_v40 = vld [vmem:[%s9253_s6 + $0x50] sm:$0xff]  ;;  %v2922_v58 = vld [vmem:[%s9253_s6 + $0xa8] sm:$0xff]  ;;  %v8229_v37 = vpack.c.bf16 %v2913_v4, %v2909_v32  ;;  %v8243_v32 = vpack.c.bf16 %v2924_v45, %v2920_v38 }
 0x44c   :  { %6061 = vpow2.f32 %v4727_v46  ;;  %9383 = vst [vmem:[#allocation11_spill] sm:$0xff] %v8204_v18  ;;  %v2921_v35 = vld [vmem:[%s9253_s6 + $0xa0] sm:$0xff]  ;;  %v2919_v4 = vld [vmem:[%s9253_s6 + $0x90] sm:$0xff] }
 0x44d   :  { %6063 = vpow2.f32 %v4728_v21  ;;  %9384 = vst [vmem:[#allocation12_spill] sm:$0xff] %v8229_v37  ;;  %v8241_v21 = vpack.c.bf16 %v2922_v58, %v2918_v26  ;;  %9387 = vst [vmem:[#allocation18_spill] sm:$0xff] %v8243_v32  ;;  %v2928_v26 = vld [vmem:[%s9253_s6 + $0xd8] sm:$0xff] }
 0x44e   :  { %6065 = vtanh.f32 %v5874_v29  ;;  %v2926_v29 = vld [vmem:[%s9253_s6 + $0xc8] sm:$0xff]  ;;  %v2932_v58 = vld [vmem:[%s9253_s6 + $0xf8] sm:$0xff] }
 0x44f   :  { %9386 = vst [vmem:[#allocation14_spill] sm:$0xff] %v8241_v21 }
 0x452   :  { %v6058_v61 = vpop.eup %6057 }
 0x453   :  { %v2650_v46 = vmul.f32 %v6058_v61, %v6056_v36  ;;  %v8231_v36 = vpack.c.bf16 %v2915_v56, %v2911_v40  ;;  %v2917_v61 = vld [vmem:[%s9253_s6 + $0x80] sm:$0xff]  ;;  %v2923_v40 = vld [vmem:[%s9253_s6 + $0xb0] sm:$0xff]  ;;  %v2930_v56 = vld [vmem:[%s9253_s6 + $0xe8] sm:$0xff] }
 0x454   :  { %v8267_v38 = vpack.c.bf16 %v2921_v35, %v2917_v61  ;;  %v8269_v45 = vpack.c.bf16 %v2923_v40, %v2919_v4  ;;  %v2927_v35 = vld [vmem:[%s9253_s6 + $0xd0] sm:$0xff]  ;;  %v2934_v4 = vld [vmem:[%s9253_s6 + $0x108] sm:$0xff] }
 0x455   :  { %v6060_v39 = vpop.eup %6059  ;;  %4729 = vst [vmem:[%s9256_s8 + $0x18] sm:$0xff] %v2650_v46  ;;  %2814 = vmatmul.mubr.f32.vlgmr.msra.gmra.mrb[8].mxu0 %v2650_v46  ;;  %2885 = vmatmul.mubr.f32.vlgmr.msra.gmra.mrb[8].mxu1 %v2650_v46  ;;  %9385 = vst [vmem:[#allocation13_spill] sm:$0xff] %v8231_v36  ;;  %v2931_v61 = vld [vmem:[%s9253_s6 + $0xf0] sm:$0xff]  ;;  %v2938_v40 = vld [vmem:[%s9253_s6 + $0x128] sm:$0xff] }
 0x456   :  { %v6062_v15 = vpop.eup %6061  ;;  %v2654_v24 = vadd.f32 1.0, %v6060_v39  ;;  %5373 = vmatpush1.bf16.msra.mxu0 %v8191_v22  ;;  %5405 = vmatpush1.bf16.msra.mxu1 %v8193_v51  ;;  %9388 = vst [vmem:[#allocation19_spill] sm:$0xff] %v8267_v38  ;;  %9389 = vst [vmem:[#allocation20_spill] sm:$0xff] %v8269_v45  ;;  %v2925_v39 = vld [vmem:[%s9253_s6 + $0xc0] sm:$0xff] }
 0x457   :  { %v2660_v46 = vadd.f32 1.0, %v6062_v15  ;;  %5375 = vmatprep.subr.bf16.mxu0 %v8202_v23  ;;  %5407 = vmatprep.subr.bf16.mxu1 %v8204_v18  ;;  %v2929_v15 = vld [vmem:[%s9253_s6 + $0xe0] sm:$0xff] }
 0x458   :  { %6067 = vrcp.f32 %v2654_v24  ;;  %3029 = vmatprep.mubr.f32.mxu0 %v9334_v60  ;;  %3100 = vmatprep.mubr.f32.mxu1 %v9334_v60  ;;  %v8279_v24 = vpack.c.bf16 %v2930_v56, %v2926_v29  ;;  %v2936_v29 = vld [vmem:[%s9253_s6 + $0x118] sm:$0xff]  ;;  %v2945_v18 = vld [vmem:[%s9253_s6 + $0x160] sm:$0xff] }
 0x459   :  { %6069 = vrcp.f32 %v2660_v46  ;;  %v8281_v46 = vpack.c.bf16 %v2932_v58, %v2928_v26  ;;  %v2940_v56 = vld [vmem:[%s9253_s6 + $0x138] sm:$0xff]  ;;  %v8303_v26 = vpack.c.bf16 %v2929_v15, %v2925_v39  ;;  %v8305_v58 = vpack.c.bf16 %v2931_v61, %v2927_v35  ;;  %v2935_v39 = vld [vmem:[%s9253_s6 + $0x110] sm:$0xff]  ;;  %v2942_v35 = vld [vmem:[%s9253_s6 + $0x148] sm:$0xff]  ;;  %v6064_v61 = vpop.eup %6063 }
 0x45a   :  { %5377 = vmatpush1.bf16.msra.mxu0 %v8229_v37  ;;  %5409 = vmatpush1.bf16.msra.mxu1 %v8231_v36  ;;  %9390 = vst [vmem:[#allocation21_spill] sm:$0xff] %v8279_v24  ;;  %v8315_v36 = vpack.c.bf16 %v2938_v40, %v2934_v4  ;;  %v2939_v15 = vld [vmem:[%s9253_s6 + $0x130] sm:$0xff]  ;;  %v2946_v4 = vld [vmem:[%s9253_s6 + $0x168] sm:$0xff]  ;;  %v2944_v40 = vld [vmem:[%s9253_s6 + $0x158] sm:$0xff]  ;;  %v2667_v22 = vadd.f32 1.0, %v6064_v61 }
 0x45b   :  { %5379 = vmatprep.subr.bf16.mxu0 %v8241_v21  ;;  %5411 = vmatprep.subr.bf16.mxu1 %v8243_v32  ;;  %9391 = vst [vmem:[#allocation22_spill] sm:$0xff] %v8281_v46  ;;  %9392 = vst [vmem:[#allocation23_spill] sm:$0xff] %v8305_v58  ;;  %v2933_v32 = vld [vmem:[%s9253_s6 + $0x100] sm:$0xff]  ;;  %v2952_v61 = vld [vmem:[%s9253_s6 + $0x198] sm:$0xff] }
 0x45c   :  { %v2937_v21 = vld [vmem:[%s9253_s6 + $0x120] sm:$0xff]  ;;  %6071 = vrcp.f32 %v2667_v22  ;;  %v2958_v22 = vld [vmem:[%s9253_s6 + $0x1c8] sm:$0xff] }
 0x45d   :  { %v2941_v37 = vld [vmem:[%s9253_s6 + $0x140] sm:$0xff] }
 0x45e   :  { %5381 = vmatpush1.bf16.msra.mxu0 %v8267_v38  ;;  %5413 = vmatpush1.bf16.msra.mxu1 %v8269_v45  ;;  %v8317_v38 = vpack.c.bf16 %v2940_v56, %v2936_v29  ;;  %v2948_v29 = vld [vmem:[%s9253_s6 + $0x178] sm:$0xff]  ;;  %v6066_v56 = vpop.eup %6065  ;;  %v8341_v45 = vpack.c.bf16 %v2939_v15, %v2935_v39  ;;  %v2947_v39 = vld [vmem:[%s9253_s6 + $0x170] sm:$0xff] }
 0x45f   :  { %5383 = vmatprep.subr.bf16.mxu0 %v8279_v24  ;;  %5415 = vmatprep.subr.bf16.mxu1 %v8281_v46  ;;  %v8339_v24 = vpack.c.bf16 %v2937_v21, %v2933_v32  ;;  %v8353_v21 = vpack.c.bf16 %v2948_v29, %v2944_v40  ;;  %v2943_v32 = vld [vmem:[%s9253_s6 + $0x150] sm:$0xff]  ;;  %v8378_v29 = vpack.c.bf16 %v2945_v18, %v2941_v37 }
 0x460   :  { %v2951_v18 = vld [vmem:[%s9253_s6 + $0x190] sm:$0xff] }
 0x461   :  { %9394 = vst [vmem:[#allocation25_spill] sm:$0xff] %v8353_v21  ;;  %v2955_v37 = vld [vmem:[%s9253_s6 + $0x1b0] sm:$0xff] }
 0x462   :  { %v6068_v46 = vpop.eup %6067  ;;  %5385 = vmatpush1.bf16.msra.mxu0 %v8303_v26  ;;  %5417 = vmatpush1.bf16.msra.mxu1 %v8305_v58  ;;  %v8351_v58 = vpack.c.bf16 %v2946_v4, %v2942_v35  ;;  %v2954_v35 = vld [vmem:[%s9253_s6 + $0x1a8] sm:$0xff]  ;;  %v2956_v4 = vld [vmem:[%s9253_s6 + $0x1b8] sm:$0xff] }
 0x463   :  { %v6070_v23 = vpop.eup %6069  ;;  %v2671_v51 = vmul.f32 %v6068_v46, %v6066_v56  ;;  %5387 = vmatprep.subr.bf16.mxu0 %v8315_v36  ;;  %5419 = vmatprep.subr.bf16.mxu1 %v8317_v38  ;;  %v2950_v46 = vld [vmem:[%s9253_s6 + $0x188] sm:$0xff]  ;;  %v2953_v56 = vld [vmem:[%s9253_s6 + $0x1a0] sm:$0xff] }
 0x464   :  { %9393 = vst [vmem:[#allocation24_spill] sm:$0xff] %v8351_v58  ;;  %v2670_v15 = vmul.f32 %v6070_v23, %v7828_v53  ;;  %v8380_v23 = vpack.c.bf16 %v2947_v39, %v2943_v32  ;;  %v2949_v53 = vld [vmem:[%s9253_s6 + $0x180] sm:$0xff]  ;;  %v2962_v32 = vld [vmem:[%s9253_s6 + $0x1e8] sm:$0xff]  ;;  %v2960_v39 = vld [vmem:[%s9253_s6 + $0x1d8] sm:$0xff] }
 0x466   :  { %v8374_v40 = vadd.f32 %v2671_v51, %v2670_v15  ;;  %5389 = vmatpush1.bf16.msra.mxu0 %v8339_v24  ;;  %5421 = vmatpush1.bf16.msra.mxu1 %v8341_v45  ;;  %9395 = vst [vmem:[#allocation26_spill] sm:$0xff] %v8380_v23  ;;  %v8390_v51 = vpack.c.bf16 %v2954_v35, %v2950_v46  ;;  %v2964_v46 = vld [vmem:[%s9253_s6 + $0x1f8] sm:$0xff] }
 0x467   :  { %5391 = vmatprep.subr.bf16.mxu0 %v8351_v58  ;;  %5423 = vmatprep.subr.bf16.mxu1 %v8353_v21  ;;  %v8392_v15 = vpack.c.bf16 %v2956_v4, %v2952_v61  ;;  %v8415_v35 = vpack.c.bf16 %v2953_v56, %v2949_v53  ;;  %v8417_v61 = vpack.c.bf16 %v2955_v37, %v2951_v18  ;;  %v2957_v4 = vld [vmem:[%s9253_s6 + $0x1c0] sm:$0xff]  ;;  %v2959_v53 = vld [vmem:[%s9253_s6 + $0x1d0] sm:$0xff] }
 0x468   :  { %6073 = vtanh.f32 %v8374_v40  ;;  %v8424_v21 = vpack.c.bf16 %v2962_v32, %v2958_v22  ;;  %v8426_v58 = vpack.c.bf16 %v2964_v46, %v2960_v39  ;;  %v2963_v56 = vld [vmem:[%s9253_s6 + $0x1f0] sm:$0xff]  ;;  %v6072_v22 = vpop.eup %6071 }
 0x469   :  { %v8441_v37 = vpack.c.bf16 %v2963_v56, %v2959_v53 }
 0x46a   :  { %5393 = vmatpush1.bf16.msra.mxu0 %v8378_v29  ;;  %5425 = vmatpush1.bf16.msra.mxu1 %v8380_v23  ;;  %v2961_v23 = vld [vmem:[%s9253_s6 + $0x1e0] sm:$0xff] }
 0x46b   :  { %5395 = vmatprep.subr.bf16.mxu0 %v8390_v51  ;;  %5427 = vmatprep.subr.bf16.mxu1 %v8392_v15  ;;  %v8439_v18 = vpack.c.bf16 %v2961_v23, %v2957_v4  ;;  %v9398_v4 = vld [vmem:[#allocation17_spill] sm:$0xff] }
 0x46e   :  { %5397 = vmatpush1.bf16.msra.mxu0 %v8415_v35  ;;  %5429 = vmatpush1.bf16.msra.mxu1 %v8417_v61 }
 0x46f   :  { %5399 = vmatprep.subr.bf16.mxu0 %v8424_v21  ;;  %5431 = vmatprep.subr.bf16.mxu1 %v8426_v58 }
 0x472   :  { %v6074_v32 = vpop.eup %6073  ;;  %5401 = vmatpush1.bf16.msra.mxu0 %v8439_v18  ;;  %5433 = vmatpush1.bf16.msra.mxu1 %v8441_v37 }
 0x473   :  { %v2674_v39 = vmul.f32 %v6074_v32, %v6072_v22  ;;  %5435 = vmatprep.subr.bf16.mxu0 %v7859_v19  ;;  %5467 = vmatprep.subr.bf16.mxu1 %v7870_v12 }
 0x475   :  { %4730 = vst [vmem:[%s9257_s9 + $0x20] sm:$0xff] %v2674_v39  ;;  %3030 = vmatmul.mubr.f32.vlgmr.msra.gmra.mrb[22].mxu0 %v2674_v39  ;;  %3101 = vmatmul.mubr.f32.vlgmr.msra.gmra.mrb[22].mxu1 %v2674_v39 }
 0x476   :  { %5437 = vmatpush1.bf16.msra.mxu0 %v7872_v28  ;;  %5469 = vmatpush1.bf16.msra.mxu1 %v7881_v17 }
 0x477   :  { %5439 = vmatprep.subr.bf16.mxu0 %v7895_v44  ;;  %5471 = vmatprep.subr.bf16.mxu1 %v7906_v7 }
 0x478   :  { %3297 = vmatprep.mubr.f32.mxu0 %v9334_v60  ;;  %3368 = vmatprep.mubr.f32.mxu1 %v9334_v60 }
 0x47a   :  { %5441 = vmatpush1.bf16.msra.mxu0 %v7908_v3  ;;  %5473 = vmatpush1.bf16.msra.mxu1 %v7917_v43 }
 0x47b   :  { %5443 = vmatprep.subr.bf16.mxu0 %v7931_v48  ;;  %5475 = vmatprep.subr.bf16.mxu1 %v7942_v47 }
 0x47e   :  { %5445 = vmatpush1.bf16.msra.mxu0 %v7944_v31  ;;  %5477 = vmatpush1.bf16.msra.mxu1 %v7953_v49 }
 0x47f   :  { %5447 = vmatprep.subr.bf16.mxu0 %v7967_v8  ;;  %5479 = vmatprep.subr.bf16.mxu1 %v7978_v30 }
 0x482   :  { %5449 = vmatpush1.bf16.msra.mxu0 %v7980_v34  ;;  %5481 = vmatpush1.bf16.msra.mxu1 %v7989_v13 }
 0x483   :  { %5451 = vmatprep.subr.bf16.mxu0 %v8003_v63  ;;  %5483 = vmatprep.subr.bf16.mxu1 %v8014_v59 }
 0x486   :  { %5453 = vmatpush1.bf16.msra.mxu0 %v8016_v5  ;;  %5485 = vmatpush1.bf16.msra.mxu1 %v8025_v42 }
 0x487   :  { %5455 = vmatprep.subr.bf16.mxu0 %v8039_v11  ;;  %5487 = vmatprep.subr.bf16.mxu1 %v8050_v2 }
 0x48a   :  { %5457 = vmatpush1.bf16.msra.mxu0 %v8052_v62  ;;  %5489 = vmatpush1.bf16.msra.mxu1 %v8061_v54 }
 0x48b   :  { %5459 = vmatprep.subr.bf16.mxu0 %v8075_v10  ;;  %5491 = vmatprep.subr.bf16.mxu1 %v8086_v25 }
 0x48e   :  { %5461 = vmatpush1.bf16.msra.mxu0 %v8088_v50  ;;  %5493 = vmatpush1.bf16.msra.mxu1 %v8097_v27 }
 0x48f   :  { %5463 = vmatprep.subr.bf16.mxu0 %v8111_v41  ;;  %5495 = vmatprep.subr.bf16.mxu1 %v8122_v9  ;;  %v9396_v41 = vld [vmem:[#allocation15_spill] sm:$0xff] }
 0x492   :  { %5465 = vmatpush1.bf16.msra.mxu0 %v8124_v33  ;;  %5497 = vmatpush1.bf16.msra.mxu1 %v8133_v1 }
 0x493   :  { %5499 = vmatprep.subr.bf16.mxu0 %v8147_v14  ;;  %5531 = vmatprep.subr.bf16.mxu1 %v8152_v55  ;;  %v9397_v14 = vld [vmem:[#allocation16_spill] sm:$0xff] }
 0x528   :  { %v2815_v19 = vpop.f32.mrb[8].mxu0  ;;  %v2886_v12 = vpop.f32.mrb[8].mxu1 }
 0x529   :  { %v5826_v28 = vadd.f32 %v2815_v19, %v7085_v16  ;;  %v2817_v17 = vpop.f32.mrb[9].mxu0  ;;  %v2888_v44 = vpop.f32.mrb[9].mxu1  ;;  %v5842_v31 = vadd.f32 %v2886_v12, %v7094_v0  ;;  %v9399_v19 = vld [vmem:[#allocation8_spill] sm:$0xff]  ;;  %v9400_v12 = vld [vmem:[#allocation9_spill] sm:$0xff] }
 0x52a   :  { %v5827_v7 = vadd.f32 %v2817_v17, %v7087_v20  ;;  %v5843_v48 = vadd.f32 %v2888_v44, %v7091_v52  ;;  %v9401_v17 = vld [vmem:[#allocation10_spill] sm:$0xff]  ;;  %v9402_v44 = vld [vmem:[#allocation11_spill] sm:$0xff] }
 0x52b   :  { %v4731_v3 = vmul.f32 -1.442695, %v5826_v28 }
 0x52c   :  { %v4732_v43 = vmul.f32 -1.442695, %v5827_v7  ;;  %v4733_v47 = vmul.f32 -1.442695, %v5843_v48  ;;  %v9403_v7 = vld [vmem:[#allocation12_spill] sm:$0xff]  ;;  %v9406_v48 = vld [vmem:[#allocation18_spill] sm:$0xff] }
 0x52d   :  { %6075 = vpow2.f32 %v4731_v3  ;;  %v9404_v3 = vld [vmem:[#allocation13_spill] sm:$0xff] }
 0x52e   :  { %6077 = vpow2.f32 %v4732_v43  ;;  %v9405_v43 = vld [vmem:[#allocation14_spill] sm:$0xff] }
 0x52f   :  { %6079 = vpow2.f32 %v4733_v47  ;;  %v9407_v47 = vld [vmem:[#allocation19_spill] sm:$0xff] }
 0x530   :  { %6081 = vtanh.f32 %v5842_v31  ;;  %v9408_v31 = vld [vmem:[#allocation20_spill] sm:$0xff] }
 0x537   :  { %v6076_v49 = vpop.eup %6075 }
 0x538   :  { %v6078_v8 = vpop.eup %6077  ;;  %v3114_v30 = vadd.f32 1.0, %v6076_v49  ;;  %v9409_v49 = vld [vmem:[#allocation21_spill] sm:$0xff] }
 0x539   :  { %v3120_v34 = vadd.f32 1.0, %v6078_v8  ;;  %v6080_v13 = vpop.eup %6079  ;;  %v9410_v8 = vld [vmem:[#allocation22_spill] sm:$0xff] }
 0x53a   :  { %6083 = vrcp.f32 %v3114_v30  ;;  %v6082_v63 = vpop.eup %6081  ;;  %v3127_v11 = vadd.f32 1.0, %v6080_v13 }
 0x53b   :  { %6085 = vrcp.f32 %v3120_v34 }
 0x53c   :  { %6087 = vrcp.f32 %v3127_v11 }
 0x544   :  { %v6084_v59 = vpop.eup %6083 }
 0x545   :  { %v6086_v5 = vpop.eup %6085  ;;  %v3131_v42 = vmul.f32 %v6084_v59, %v6082_v63  ;;  %v9411_v63 = vld [vmem:[#allocation23_spill] sm:$0xff] }
 0x546   :  { %v3130_v2 = vmul.f32 %v6086_v5, %v8161_v57  ;;  %v6088_v57 = vpop.eup %6087 }
 0x548   :  { %v8491_v62 = vadd.f32 %v3131_v42, %v3130_v2  ;;  %v3031_v54 = vpop.f32.mrb[22].mxu0  ;;  %v3102_v10 = vpop.f32.mrb[22].mxu1 }
 0x549   :  { %v5856_v25 = vadd.f32 %v3031_v54, %v7100_v6  ;;  %v3033_v50 = vpop.f32.mrb[23].mxu0  ;;  %v3104_v27 = vpop.f32.mrb[23].mxu1  ;;  %v5872_v53 = vadd.f32 %v3102_v10, %v9398_v4  ;;  %v9412_v54 = vld [vmem:[#allocation24_spill] sm:$0xff]  ;;  %v3659_v10 = vld [vmem:[%s9251_s3 + $0x30] sm:$0xff] }
 0x54a   :  { %v5857_v9 = vadd.f32 %v3033_v50, %v9396_v41  ;;  %6089 = vtanh.f32 %v8491_v62  ;;  %v5873_v55 = vadd.f32 %v3104_v27, %v9397_v14  ;;  %v3662_v50 = vld [vmem:[%s9251_s3 + $0x48] sm:$0xff] }
 0x54b   :  { %v4734_v33 = vmul.f32 -1.442695, %v5856_v25  ;;  %v3666_v27 = vld [vmem:[%s9251_s3 + $0x68] sm:$0xff] }
 0x54c   :  { %v4735_v1 = vmul.f32 -1.442695, %v5857_v9  ;;  %v4736_v46 = vmul.f32 -1.442695, %v5873_v55  ;;  %v3664_v9 = vld [vmem:[%s9251_s3 + $0x58] sm:$0xff]  ;;  %v3661_v55 = vld [vmem:[%s9251_s3 + $0x40] sm:$0xff] }
 0x54d   :  { %6091 = vpow2.f32 %v4734_v33  ;;  %v8587_v33 = vpack.c.bf16 %v3666_v27, %v3662_v50  ;;  %v3698_v50 = vld [vmem:[%s9251_s3 + $0x168] sm:$0xff]  ;;  %v3696_v27 = vld [vmem:[%s9251_s3 + $0x158] sm:$0xff] }
 0x54e   :  { %6093 = vpow2.f32 %v4735_v1  ;;  %v3668_v1 = vld [vmem:[%s9251_s3 + $0x78] sm:$0xff] }
 0x54f   :  { %6095 = vpow2.f32 %v4736_v46 }
 0x550   :  { %6097 = vtanh.f32 %v5872_v53  ;;  %v3663_v53 = vld [vmem:[%s9251_s3 + $0x50] sm:$0xff] }
 0x554   :  { %v6090_v23 = vpop.eup %6089 }
 0x555   :  { %v3134_v56 = vmul.f32 %v6090_v23, %v6088_v57  ;;  %v3665_v57 = vld [vmem:[%s9251_s3 + $0x60] sm:$0xff]  ;;  %v8598_v23 = vpack.c.bf16 %v3668_v1, %v3664_v9  ;;  %v3700_v1 = vld [vmem:[%s9251_s3 + $0x178] sm:$0xff] }
 0x556   :  { %v8600_v46 = vpack.c.bf16 %v3665_v57, %v3661_v55  ;;  %v3693_v55 = vld [vmem:[%s9251_s3 + $0x140] sm:$0xff] }
 0x557   :  { %v6092_v22 = vpop.eup %6091  ;;  %4737 = vst [vmem:[%s9256_s8 + $0x20] sm:$0xff] %v3134_v56  ;;  %3298 = vmatmul.mubr.f32.vlgmr.msra.gmra.mrb[10].mxu0 %v3134_v56  ;;  %3369 = vmatmul.mubr.f32.vlgmr.msra.gmra.mrb[10].mxu1 %v3134_v56  ;;  %v3667_v56 = vld [vmem:[%s9251_s3 + $0x70] sm:$0xff]  ;;  %v3697_v57 = vld [vmem:[%s9251_s3 + $0x160] sm:$0xff] }
 0x558   :  { %v6094_v32 = vpop.eup %6093  ;;  %v3138_v39 = vadd.f32 1.0, %v6092_v22  ;;  %5501 = vmatpush1.bf16.msra.mxu0 %v9399_v19  ;;  %5533 = vmatpush1.bf16.msra.mxu1 %v9400_v12  ;;  %v8609_v22 = vpack.c.bf16 %v3667_v56, %v3663_v53  ;;  %v3672_v19 = vld [vmem:[%s9251_s3 + $0x98] sm:$0xff]  ;;  %v8742_v53 = vpack.c.bf16 %v3700_v1, %v3696_v27  ;;  %v8744_v56 = vpack.c.bf16 %v3697_v57, %v3693_v55  ;;  %v3870_v1 = vld [vmem:[%s9253_s6 + $0x8] sm:$0xff] }
 0x559   :  { %v3144_v28 = vadd.f32 1.0, %v6094_v32  ;;  %5503 = vmatprep.subr.bf16.mxu0 %v9401_v17  ;;  %5535 = vmatprep.subr.bf16.mxu1 %v9402_v44  ;;  %v6096_v30 = vpop.eup %6095  ;;  %v3670_v32 = vld [vmem:[%s9251_s3 + $0x88] sm:$0xff]  ;;  %v3669_v17 = vld [vmem:[%s9251_s3 + $0x80] sm:$0xff]  ;;  %v3872_v57 = vld [vmem:[%s9253_s6 + $0x18] sm:$0xff] }
 0x55a   :  { %6099 = vrcp.f32 %v3138_v39  ;;  %3513 = vmatprep.mubr.f32.mxu0 %v9334_v60  ;;  %3584 = vmatprep.mubr.f32.mxu1 %v9334_v60  ;;  %v6098_v34 = vpop.eup %6097  ;;  %v3151_v42 = vadd.f32 1.0, %v6096_v30  ;;  %v3674_v39 = vld [vmem:[%s9251_s3 + $0xa8] sm:$0xff]  ;;  %v3673_v44 = vld [vmem:[%s9251_s3 + $0xa0] sm:$0xff] }
 0x55b   :  { %6101 = vrcp.f32 %v3144_v28  ;;  %v8623_v12 = vpack.c.bf16 %v3674_v39, %v3670_v32  ;;  %v3676_v28 = vld [vmem:[%s9251_s3 + $0xb8] sm:$0xff]  ;;  %v3695_v32 = vld [vmem:[%s9251_s3 + $0x150] sm:$0xff]  ;;  %v3874_v55 = vld [vmem:[%s9253_s6 + $0x28] sm:$0xff] }
 0x55c   :  { %5505 = vmatpush1.bf16.msra.mxu0 %v9403_v7  ;;  %5537 = vmatpush1.bf16.msra.mxu1 %v9404_v3  ;;  %6103 = vrcp.f32 %v3151_v42  ;;  %v8634_v7 = vpack.c.bf16 %v3676_v28, %v3672_v19  ;;  %v8636_v3 = vpack.c.bf16 %v3673_v44, %v3669_v17  ;;  %v3679_v42 = vld [vmem:[%s9251_s3 + $0xd0] sm:$0xff]  ;;  %v3702_v28 = vld [vmem:[%s9251_s3 + $0x188] sm:$0xff]  ;;  %v3704_v44 = vld [vmem:[%s9251_s3 + $0x198] sm:$0xff] }
 0x55d   :  { %5507 = vmatprep.subr.bf16.mxu0 %v9405_v43  ;;  %5539 = vmatprep.subr.bf16.mxu1 %v9406_v48  ;;  %v3671_v43 = vld [vmem:[%s9251_s3 + $0x90] sm:$0xff]  ;;  %v3706_v17 = vld [vmem:[%s9251_s3 + $0x1a8] sm:$0xff] }
 0x55e   :  { %v3675_v48 = vld [vmem:[%s9251_s3 + $0xb0] sm:$0xff] }
 0x55f   :  { %v3699_v39 = vld [vmem:[%s9251_s3 + $0x170] sm:$0xff] }
 0x560   :  { %5509 = vmatpush1.bf16.msra.mxu0 %v9407_v47  ;;  %5541 = vmatpush1.bf16.msra.mxu1 %v9408_v31  ;;  %v8645_v47 = vpack.c.bf16 %v3675_v48, %v3671_v43  ;;  %v3678_v31 = vld [vmem:[%s9251_s3 + $0xc8] sm:$0xff]  ;;  %v8753_v19 = vpack.c.bf16 %v3699_v39, %v3695_v32  ;;  %v8767_v43 = vpack.c.bf16 %v3706_v17, %v3702_v28  ;;  %v3708_v48 = vld [vmem:[%s9251_s3 + $0x1b8] sm:$0xff] }
 0x561   :  { %5511 = vmatprep.subr.bf16.mxu0 %v9409_v49  ;;  %5543 = vmatprep.subr.bf16.mxu1 %v9410_v8  ;;  %v3682_v49 = vld [vmem:[%s9251_s3 + $0xe8] sm:$0xff]  ;;  %v3680_v8 = vld [vmem:[%s9251_s3 + $0xd8] sm:$0xff]  ;;  %v8839_v32 = vpack.c.bf16 %v3874_v55, %v3870_v1 }
 0x562   :  { %v8659_v30 = vpack.c.bf16 %v3682_v49, %v3678_v31  ;;  %v3701_v31 = vld [vmem:[%s9251_s3 + $0x180] sm:$0xff]  ;;  %v3876_v39 = vld [vmem:[%s9253_s6 + $0x38] sm:$0xff] }
 0x563   :  { %v3705_v49 = vld [vmem:[%s9251_s3 + $0x1a0] sm:$0xff]  ;;  %v8844_v28 = vpack.c.bf16 %v3876_v39, %v3872_v57 }
 0x564   :  { %v6100_v13 = vpop.eup %6099  ;;  %5513 = vmatpush1.bf16.msra.mxu0 %v8303_v26  ;;  %5545 = vmatpush1.bf16.msra.mxu1 %v9411_v63  ;;  %v9413_v26 = vld [vmem:[#allocation25_spill] sm:$0xff]  ;;  %v3681_v63 = vld [vmem:[%s9251_s3 + $0xe0] sm:$0xff] }
 0x565   :  { %v6102_v59 = vpop.eup %6101  ;;  %v3155_v5 = vmul.f32 %v6100_v13, %v6098_v34  ;;  %5515 = vmatprep.subr.bf16.mxu0 %v8315_v36  ;;  %5547 = vmatprep.subr.bf16.mxu1 %v8317_v38  ;;  %v9414_v36 = vld [vmem:[#allocation26_spill] sm:$0xff]  ;;  %v3684_v34 = vld [vmem:[%s9251_s3 + $0xf8] sm:$0xff]  ;;  %v3677_v13 = vld [vmem:[%s9251_s3 + $0xc0] sm:$0xff] }
 0x566   :  { %v3154_v11 = vmul.f32 %v6102_v59, %v8374_v40  ;;  %v6104_v38 = vpop.eup %6103  ;;  %v3656_v40 = vld [vmem:[%s9251_s3 + $0x18] sm:$0xff]  ;;  %v8670_v59 = vpack.c.bf16 %v3684_v34, %v3680_v8  ;;  %v8778_v8 = vpack.c.bf16 %v3708_v48, %v3704_v44  ;;  %v8780_v34 = vpack.c.bf16 %v3705_v49, %v3701_v31 }
 0x568   :  { %v8520_v2 = vadd.f32 %v3155_v5, %v3154_v11  ;;  %5517 = vmatpush1.bf16.msra.mxu0 %v8339_v24  ;;  %5549 = vmatpush1.bf16.msra.mxu1 %v8341_v45  ;;  %v8672_v5 = vpack.c.bf16 %v3681_v63, %v3677_v13  ;;  %v3683_v11 = vld [vmem:[%s9251_s3 + $0xf0] sm:$0xff] }
 0x569   :  { %5519 = vmatprep.subr.bf16.mxu0 %v9412_v54  ;;  %5551 = vmatprep.subr.bf16.mxu1 %v9413_v26  ;;  %v8681_v54 = vpack.c.bf16 %v3683_v11, %v3679_v42  ;;  %v3686_v26 = vld [vmem:[%s9251_s3 + $0x108] sm:$0xff]  ;;  %v3703_v13 = vld [vmem:[%s9251_s3 + $0x190] sm:$0xff] }
 0x56a   :  { %6105 = vtanh.f32 %v8520_v2  ;;  %v3707_v63 = vld [vmem:[%s9251_s3 + $0x1b0] sm:$0xff]  ;;  %v3710_v11 = vld [vmem:[%s9251_s3 + $0x1c8] sm:$0xff] }
 0x56b   :  { %v8789_v42 = vpack.c.bf16 %v3707_v63, %v3703_v13 }
 0x56c   :  { %5521 = vmatpush1.bf16.msra.mxu0 %v8378_v29  ;;  %5553 = vmatpush1.bf16.msra.mxu1 %v9414_v36  ;;  %v3690_v36 = vld [vmem:[%s9251_s3 + $0x128] sm:$0xff] }
 0x56d   :  { %5523 = vmatprep.subr.bf16.mxu0 %v8390_v51  ;;  %5555 = vmatprep.subr.bf16.mxu1 %v8392_v15  ;;  %v3660_v51 = vld [vmem:[%s9251_s3 + $0x38] sm:$0xff]  ;;  %v3653_v15 = vld [vmem:[%s9251_s3] sm:$0xff] }
 0x570   :  { %5525 = vmatpush1.bf16.msra.mxu0 %v8415_v35  ;;  %5557 = vmatpush1.bf16.msra.mxu1 %v8417_v61  ;;  %v3657_v35 = vld [vmem:[%s9251_s3 + $0x20] sm:$0xff]  ;;  %v8562_v61 = vpack.c.bf16 %v3660_v51, %v3656_v40 }
 0x571   :  { %5527 = vmatprep.subr.bf16.mxu0 %v8424_v21  ;;  %5559 = vmatprep.subr.bf16.mxu1 %v8426_v58  ;;  %v3654_v58 = vld [vmem:[%s9251_s3 + $0x8] sm:$0xff] }
 0x572   :  { %v3658_v21 = vld [vmem:[%s9251_s3 + $0x28] sm:$0xff] }
 0x573   :  { %v8551_v29 = vpack.c.bf16 %v3658_v21, %v3654_v58  ;;  %v3685_v58 = vld [vmem:[%s9251_s3 + $0x100] sm:$0xff] }
 0x574   :  { %v6106_v45 = vpop.eup %6105  ;;  %5529 = vmatpush1.bf16.msra.mxu0 %v8439_v18  ;;  %5561 = vmatpush1.bf16.msra.mxu1 %v8441_v37  ;;  %v8564_v18 = vpack.c.bf16 %v3657_v35, %v3653_v15  ;;  %v3655_v37 = vld [vmem:[%s9251_s3 + $0x10] sm:$0xff]  ;;  %v3689_v21 = vld [vmem:[%s9251_s3 + $0x120] sm:$0xff] }
 0x575   :  { %v3158_v24 = vmul.f32 %v6106_v45, %v6104_v38  ;;  %5563 = vmatprep.subr.bf16.mxu0 %v8551_v29  ;;  %v8573_v25 = vpack.c.bf16 %v3659_v10, %v3655_v37  ;;  %5595 = vmatprep.subr.bf16.mxu1 %v8562_v61  ;;  %v3688_v38 = vld [vmem:[%s9251_s3 + $0x118] sm:$0xff]  ;;  %v8695_v45 = vpack.c.bf16 %v3690_v36, %v3686_v26  ;;  %v3687_v15 = vld [vmem:[%s9251_s3 + $0x110] sm:$0xff]  ;;  %v3694_v10 = vld [vmem:[%s9251_s3 + $0x148] sm:$0xff] }
 0x576   :  { %v8708_v51 = vpack.c.bf16 %v3689_v21, %v3685_v58  ;;  %v3691_v35 = vld [vmem:[%s9251_s3 + $0x130] sm:$0xff]  ;;  %v8731_v9 = vpack.c.bf16 %v3698_v50, %v3694_v10  ;;  %v3714_v26 = vld [vmem:[%s9251_s3 + $0x1e8] sm:$0xff]  ;;  %v3712_v36 = vld [vmem:[%s9251_s3 + $0x1d8] sm:$0xff] }
 0x577   :  { %4738 = vst [vmem:[%s9257_s9 + $0x18] sm:$0xff] %v3158_v24  ;;  %3514 = vmatmul.mubr.f32.vlgmr.msra.gmra.mrb[20].mxu0 %v3158_v24  ;;  %3585 = vmatmul.mubr.f32.vlgmr.msra.gmra.mrb[20].mxu1 %v3158_v24  ;;  %v3692_v24 = vld [vmem:[%s9251_s3 + $0x138] sm:$0xff]  ;;  %v8717_v37 = vpack.c.bf16 %v3691_v35, %v3687_v15  ;;  %v3709_v58 = vld [vmem:[%s9251_s3 + $0x1c0] sm:$0xff]  ;;  %v3711_v10 = vld [vmem:[%s9251_s3 + $0x1d0] sm:$0xff] }
 0x578   :  { %3781 = vmatprep.mubr.f32.mxu0 %v9334_v60  ;;  %3852 = vmatprep.mubr.f32.mxu1 %v9334_v60  ;;  %v8706_v40 = vpack.c.bf16 %v3692_v24, %v3688_v38  ;;  %v8803_v38 = vpack.c.bf16 %v3714_v26, %v3710_v11  ;;  %v3716_v24 = vld [vmem:[%s9251_s3 + $0x1f8] sm:$0xff]  ;;  %v3713_v21 = vld [vmem:[%s9251_s3 + $0x1e0] sm:$0xff]  ;;  %v3715_v50 = vld [vmem:[%s9251_s3 + $0x1f0] sm:$0xff] }
 0x579   :  { %5565 = vmatpush1.bf16.msra.mxu0 %v8564_v18  ;;  %5597 = vmatpush1.bf16.msra.mxu1 %v8573_v25  ;;  %v8814_v15 = vpack.c.bf16 %v3716_v24, %v3712_v36  ;;  %v8816_v35 = vpack.c.bf16 %v3713_v21, %v3709_v58  ;;  %v8825_v27 = vpack.c.bf16 %v3715_v50, %v3711_v10 }
 0x57a   :  { %5567 = vmatprep.subr.bf16.mxu0 %v8587_v33  ;;  %5599 = vmatprep.subr.bf16.mxu1 %v8598_v23 }
 0x57d   :  { %5569 = vmatpush1.bf16.msra.mxu0 %v8600_v46  ;;  %5601 = vmatpush1.bf16.msra.mxu1 %v8609_v22 }
 0x57e   :  { %5571 = vmatprep.subr.bf16.mxu0 %v8623_v12  ;;  %5603 = vmatprep.subr.bf16.mxu1 %v8634_v7 }
 0x581   :  { %5573 = vmatpush1.bf16.msra.mxu0 %v8636_v3  ;;  %5605 = vmatpush1.bf16.msra.mxu1 %v8645_v47 }
 0x582   :  { %5575 = vmatprep.subr.bf16.mxu0 %v8659_v30  ;;  %5607 = vmatprep.subr.bf16.mxu1 %v8670_v59 }
 0x585   :  { %5577 = vmatpush1.bf16.msra.mxu0 %v8672_v5  ;;  %5609 = vmatpush1.bf16.msra.mxu1 %v8681_v54 }
 0x586   :  { %5579 = vmatprep.subr.bf16.mxu0 %v8695_v45  ;;  %5611 = vmatprep.subr.bf16.mxu1 %v8706_v40 }
 0x589   :  { %5581 = vmatpush1.bf16.msra.mxu0 %v8708_v51  ;;  %5613 = vmatpush1.bf16.msra.mxu1 %v8717_v37 }
 0x58a   :  { %5583 = vmatprep.subr.bf16.mxu0 %v8731_v9  ;;  %5615 = vmatprep.subr.bf16.mxu1 %v8742_v53 }
 0x58d   :  { %5585 = vmatpush1.bf16.msra.mxu0 %v8744_v56  ;;  %5617 = vmatpush1.bf16.msra.mxu1 %v8753_v19 }
 0x58e   :  { %5587 = vmatprep.subr.bf16.mxu0 %v8767_v43  ;;  %5619 = vmatprep.subr.bf16.mxu1 %v8778_v8 }
 0x591   :  { %5589 = vmatpush1.bf16.msra.mxu0 %v8780_v34  ;;  %5621 = vmatpush1.bf16.msra.mxu1 %v8789_v42 }
 0x592   :  { %5591 = vmatprep.subr.bf16.mxu0 %v8803_v38  ;;  %5623 = vmatprep.subr.bf16.mxu1 %v8814_v15 }
 0x595   :  { %5593 = vmatpush1.bf16.msra.mxu0 %v8816_v35  ;;  %5625 = vmatpush1.bf16.msra.mxu1 %v8825_v27 }
 0x596   :  { %5627 = vmatprep.subr.bf16.mxu0 %v8839_v32  ;;  %5659 = vmatprep.subr.bf16.mxu1 %v8844_v28 }
 0x62a   :  { %v3299_v17 = vpop.f32.mrb[10].mxu0  ;;  %v3370_v44 = vpop.f32.mrb[10].mxu1 }
 0x62b   :  { %v5828_v48 = vadd.f32 %v3299_v17, %v7085_v16  ;;  %v3301_v31 = vpop.f32.mrb[11].mxu0  ;;  %v3372_v49 = vpop.f32.mrb[11].mxu1  ;;  %v5844_v24 = vadd.f32 %v3370_v44, %v7094_v0 }
 0x62c   :  { %v5829_v13 = vadd.f32 %v3301_v31, %v7087_v20  ;;  %v5845_v26 = vadd.f32 %v3372_v49, %v7091_v52 }
 0x62d   :  { %v4739_v63 = vmul.f32 -1.442695, %v5828_v48 }
 0x62e   :  { %v4740_v11 = vmul.f32 -1.442695, %v5829_v13  ;;  %v4741_v36 = vmul.f32 -1.442695, %v5845_v26 }
 0x62f   :  { %6107 = vpow2.f32 %v4739_v63 }
 0x630   :  { %6109 = vpow2.f32 %v4740_v11 }
 0x631   :  { %6111 = vpow2.f32 %v4741_v36 }
 0x632   :  { %6113 = vtanh.f32 %v5844_v24 }
 0x639   :  { %v6108_v58 = vpop.eup %6107 }
 0x63a   :  { %v6110_v21 = vpop.eup %6109  ;;  %v3598_v10 = vadd.f32 1.0, %v6108_v58 }
 0x63b   :  { %v3604_v50 = vadd.f32 1.0, %v6110_v21  ;;  %v6112_v1 = vpop.eup %6111 }
 0x63c   :  { %6115 = vrcp.f32 %v3598_v10  ;;  %v6114_v55 = vpop.eup %6113  ;;  %v3611_v48 = vadd.f32 1.0, %v6112_v1  ;;  %v3873_v10 = vld [vmem:[%s9253_s6 + $0x20] sm:$0xff]  ;;  %v3875_v1 = vld [vmem:[%s9253_s6 + $0x30] sm:$0xff] }
 0x63d   :  { %6117 = vrcp.f32 %v3604_v50  ;;  %v3871_v50 = vld [vmem:[%s9253_s6 + $0x10] sm:$0xff] }
 0x63e   :  { %6119 = vrcp.f32 %v3611_v48 }
 0x646   :  { %v6116_v57 = vpop.eup %6115 }
 0x647   :  { %v6118_v39 = vpop.eup %6117  ;;  %v3615_v17 = vmul.f32 %v6116_v57, %v6114_v55  ;;  %v3878_v55 = vld [vmem:[%s9253_s6 + $0x48] sm:$0xff] }
 0x648   :  { %v3614_v31 = vmul.f32 %v6118_v39, %v8491_v62  ;;  %v3869_v62 = vld [vmem:[%s9253_s6] sm:$0xff]  ;;  %v3882_v57 = vld [vmem:[%s9253_s6 + $0x68] sm:$0xff]  ;;  %v3880_v39 = vld [vmem:[%s9253_s6 + $0x58] sm:$0xff]  ;;  %v6120_v48 = vpop.eup %6119 }
 0x64a   :  { %v8853_v49 = vadd.f32 %v3615_v17, %v3614_v31  ;;  %v3515_v13 = vpop.f32.mrb[20].mxu0  ;;  %v3586_v44 = vpop.f32.mrb[20].mxu1  ;;  %v3884_v17 = vld [vmem:[%s9253_s6 + $0x78] sm:$0xff] }
 0x64b   :  { %v5854_v63 = vadd.f32 %v3515_v13, %v7100_v6  ;;  %v3517_v11 = vpop.f32.mrb[21].mxu0  ;;  %v3588_v26 = vpop.f32.mrb[21].mxu1 }
 0x64c   :  { %v5855_v36 = vadd.f32 %v3517_v11, %v9396_v41  ;;  %6121 = vtanh.f32 %v8853_v49  ;;  %v5871_v21 = vadd.f32 %v3588_v26, %v9397_v14  ;;  %v8885_v11 = vpack.c.bf16 %v3875_v1, %v3871_v50  ;;  %v3877_v26 = vld [vmem:[%s9253_s6 + $0x40] sm:$0xff]  ;;  %v3888_v50 = vld [vmem:[%s9253_s6 + $0x98] sm:$0xff] }
 0x64d   :  { %v4742_v24 = vmul.f32 -1.442695, %v5854_v63  ;;  %v8883_v63 = vpack.c.bf16 %v3873_v10, %v3869_v62  ;;  %v8894_v14 = vpack.c.bf16 %v3882_v57, %v3878_v55  ;;  %v8896_v41 = vpack.c.bf16 %v3884_v17, %v3880_v39  ;;  %v3883_v62 = vld [vmem:[%s9253_s6 + $0x70] sm:$0xff]  ;;  %v3886_v10 = vld [vmem:[%s9253_s6 + $0x88] sm:$0xff]  ;;  %v3892_v1 = vld [vmem:[%s9253_s6 + $0xb8] sm:$0xff] }
 0x64e   :  { %v4743_v58 = vmul.f32 -1.442695, %v5855_v36  ;;  %v4744_v13 = vmul.f32 -1.442695, %v5871_v21  ;;  %9416 = vst [vmem:[#allocation9_spill] sm:$0xff] %v8885_v11  ;;  %v3881_v36 = vld [vmem:[%s9253_s6 + $0x60] sm:$0xff] }
 0x64f   :  { %6123 = vpow2.f32 %v4742_v24  ;;  %9415 = vst [vmem:[#allocation8_spill] sm:$0xff] %v8883_v63  ;;  %v5870_v24 = vadd.f32 %v3586_v44, %v9398_v4  ;;  %9417 = vst [vmem:[#allocation10_spill] sm:$0xff] %v8894_v14  ;;  %v3879_v21 = vld [vmem:[%s9253_s6 + $0x50] sm:$0xff]  ;;  %v3890_v44 = vld [vmem:[%s9253_s6 + $0xa8] sm:$0xff]  ;;  %v8921_v17 = vpack.c.bf16 %v3881_v36, %v3877_v26  ;;  %v8935_v26 = vpack.c.bf16 %v3892_v1, %v3888_v50 }
 0x650   :  { %6125 = vpow2.f32 %v4743_v58  ;;  %9418 = vst [vmem:[#allocation11_spill] sm:$0xff] %v8896_v41  ;;  %v3889_v4 = vld [vmem:[%s9253_s6 + $0xa0] sm:$0xff]  ;;  %v3887_v36 = vld [vmem:[%s9253_s6 + $0x90] sm:$0xff] }
 0x651   :  { %6127 = vpow2.f32 %v4744_v13  ;;  %9419 = vst [vmem:[#allocation12_spill] sm:$0xff] %v8921_v17  ;;  %v8933_v13 = vpack.c.bf16 %v3890_v44, %v3886_v10  ;;  %9422 = vst [vmem:[#allocation18_spill] sm:$0xff] %v8935_v26  ;;  %v3896_v10 = vld [vmem:[%s9253_s6 + $0xd8] sm:$0xff] }
 0x652   :  { %6129 = vtanh.f32 %v5870_v24  ;;  %v3894_v24 = vld [vmem:[%s9253_s6 + $0xc8] sm:$0xff]  ;;  %v3900_v44 = vld [vmem:[%s9253_s6 + $0xf8] sm:$0xff] }
 0x653   :  { %9421 = vst [vmem:[#allocation14_spill] sm:$0xff] %v8933_v13 }
 0x656   :  { %v6122_v31 = vpop.eup %6121 }
 0x657   :  { %v3618_v58 = vmul.f32 %v6122_v31, %v6120_v48  ;;  %v8923_v48 = vpack.c.bf16 %v3883_v62, %v3879_v21  ;;  %v3885_v31 = vld [vmem:[%s9253_s6 + $0x80] sm:$0xff]  ;;  %v3891_v21 = vld [vmem:[%s9253_s6 + $0xb0] sm:$0xff]  ;;  %v3898_v62 = vld [vmem:[%s9253_s6 + $0xe8] sm:$0xff] }
 0x658   :  { %v8959_v50 = vpack.c.bf16 %v3889_v4, %v3885_v31  ;;  %v8961_v1 = vpack.c.bf16 %v3891_v21, %v3887_v36  ;;  %v3895_v4 = vld [vmem:[%s9253_s6 + $0xd0] sm:$0xff]  ;;  %v3902_v36 = vld [vmem:[%s9253_s6 + $0x108] sm:$0xff] }
 0x659   :  { %v6124_v55 = vpop.eup %6123  ;;  %4745 = vst [vmem:[%s9256_s8 + $0x28] sm:$0xff] %v3618_v58  ;;  %3782 = vmatmul.mubr.f32.vlgmr.msra.gmra.mrb[12].mxu0 %v3618_v58  ;;  %3853 = vmatmul.mubr.f32.vlgmr.msra.gmra.mrb[12].mxu1 %v3618_v58  ;;  %9420 = vst [vmem:[#allocation13_spill] sm:$0xff] %v8923_v48  ;;  %v3899_v31 = vld [vmem:[%s9253_s6 + $0xf0] sm:$0xff]  ;;  %v3906_v21 = vld [vmem:[%s9253_s6 + $0x128] sm:$0xff] }
 0x65a   :  { %v6126_v57 = vpop.eup %6125  ;;  %v3622_v39 = vadd.f32 1.0, %v6124_v55  ;;  %5629 = vmatpush1.bf16.msra.mxu0 %v8883_v63  ;;  %5661 = vmatpush1.bf16.msra.mxu1 %v8885_v11  ;;  %9423 = vst [vmem:[#allocation19_spill] sm:$0xff] %v8959_v50  ;;  %9424 = vst [vmem:[#allocation20_spill] sm:$0xff] %v8961_v1  ;;  %v3893_v55 = vld [vmem:[%s9253_s6 + $0xc0] sm:$0xff] }
 0x65b   :  { %v3628_v58 = vadd.f32 1.0, %v6126_v57  ;;  %5631 = vmatprep.subr.bf16.mxu0 %v8894_v14  ;;  %5663 = vmatprep.subr.bf16.mxu1 %v8896_v41  ;;  %v3897_v57 = vld [vmem:[%s9253_s6 + $0xe0] sm:$0xff] }
 0x65c   :  { %6131 = vrcp.f32 %v3622_v39  ;;  %3997 = vmatprep.mubr.f32.mxu0 %v9334_v60  ;;  %4068 = vmatprep.mubr.f32.mxu1 %v9334_v60  ;;  %v8971_v39 = vpack.c.bf16 %v3898_v62, %v3894_v24  ;;  %v3904_v24 = vld [vmem:[%s9253_s6 + $0x118] sm:$0xff]  ;;  %v3913_v41 = vld [vmem:[%s9253_s6 + $0x160] sm:$0xff] }
 0x65d   :  { %6133 = vrcp.f32 %v3628_v58  ;;  %v8973_v58 = vpack.c.bf16 %v3900_v44, %v3896_v10  ;;  %v3908_v62 = vld [vmem:[%s9253_s6 + $0x138] sm:$0xff]  ;;  %v8995_v10 = vpack.c.bf16 %v3897_v57, %v3893_v55  ;;  %v8997_v44 = vpack.c.bf16 %v3899_v31, %v3895_v4  ;;  %v3903_v55 = vld [vmem:[%s9253_s6 + $0x110] sm:$0xff]  ;;  %v3910_v4 = vld [vmem:[%s9253_s6 + $0x148] sm:$0xff]  ;;  %v6128_v31 = vpop.eup %6127 }
 0x65e   :  { %5633 = vmatpush1.bf16.msra.mxu0 %v8921_v17  ;;  %5665 = vmatpush1.bf16.msra.mxu1 %v8923_v48  ;;  %9425 = vst [vmem:[#allocation21_spill] sm:$0xff] %v8971_v39  ;;  %v9007_v48 = vpack.c.bf16 %v3906_v21, %v3902_v36  ;;  %v3907_v57 = vld [vmem:[%s9253_s6 + $0x130] sm:$0xff]  ;;  %v3914_v36 = vld [vmem:[%s9253_s6 + $0x168] sm:$0xff]  ;;  %v3912_v21 = vld [vmem:[%s9253_s6 + $0x158] sm:$0xff]  ;;  %v3635_v63 = vadd.f32 1.0, %v6128_v31 }
 0x65f   :  { %5635 = vmatprep.subr.bf16.mxu0 %v8933_v13  ;;  %5667 = vmatprep.subr.bf16.mxu1 %v8935_v26  ;;  %9426 = vst [vmem:[#allocation22_spill] sm:$0xff] %v8973_v58  ;;  %9427 = vst [vmem:[#allocation23_spill] sm:$0xff] %v8997_v44  ;;  %v3901_v26 = vld [vmem:[%s9253_s6 + $0x100] sm:$0xff]  ;;  %v3920_v31 = vld [vmem:[%s9253_s6 + $0x198] sm:$0xff] }
 0x660   :  { %v3905_v13 = vld [vmem:[%s9253_s6 + $0x120] sm:$0xff]  ;;  %6135 = vrcp.f32 %v3635_v63  ;;  %v3926_v63 = vld [vmem:[%s9253_s6 + $0x1c8] sm:$0xff] }
 0x661   :  { %v3909_v17 = vld [vmem:[%s9253_s6 + $0x140] sm:$0xff] }
 0x662   :  { %5637 = vmatpush1.bf16.msra.mxu0 %v8959_v50  ;;  %5669 = vmatpush1.bf16.msra.mxu1 %v8961_v1  ;;  %v9009_v50 = vpack.c.bf16 %v3908_v62, %v3904_v24  ;;  %v3916_v24 = vld [vmem:[%s9253_s6 + $0x178] sm:$0xff]  ;;  %v6130_v62 = vpop.eup %6129  ;;  %v9033_v1 = vpack.c.bf16 %v3907_v57, %v3903_v55  ;;  %v3915_v55 = vld [vmem:[%s9253_s6 + $0x170] sm:$0xff] }
 0x663   :  { %5639 = vmatprep.subr.bf16.mxu0 %v8971_v39  ;;  %5671 = vmatprep.subr.bf16.mxu1 %v8973_v58  ;;  %v9031_v39 = vpack.c.bf16 %v3905_v13, %v3901_v26  ;;  %v9045_v13 = vpack.c.bf16 %v3916_v24, %v3912_v21  ;;  %v3911_v26 = vld [vmem:[%s9253_s6 + $0x150] sm:$0xff]  ;;  %v9070_v24 = vpack.c.bf16 %v3913_v41, %v3909_v17 }
 0x664   :  { %v3919_v41 = vld [vmem:[%s9253_s6 + $0x190] sm:$0xff] }
 0x665   :  { %9429 = vst [vmem:[#allocation25_spill] sm:$0xff] %v9045_v13  ;;  %v3923_v17 = vld [vmem:[%s9253_s6 + $0x1b0] sm:$0xff] }
 0x666   :  { %v6132_v58 = vpop.eup %6131  ;;  %5641 = vmatpush1.bf16.msra.mxu0 %v8995_v10  ;;  %5673 = vmatpush1.bf16.msra.mxu1 %v8997_v44  ;;  %v9043_v44 = vpack.c.bf16 %v3914_v36, %v3910_v4  ;;  %v3922_v4 = vld [vmem:[%s9253_s6 + $0x1a8] sm:$0xff]  ;;  %v3924_v36 = vld [vmem:[%s9253_s6 + $0x1b8] sm:$0xff] }
 0x667   :  { %v6134_v14 = vpop.eup %6133  ;;  %v3639_v11 = vmul.f32 %v6132_v58, %v6130_v62  ;;  %5643 = vmatprep.subr.bf16.mxu0 %v9007_v48  ;;  %5675 = vmatprep.subr.bf16.mxu1 %v9009_v50  ;;  %v3918_v58 = vld [vmem:[%s9253_s6 + $0x188] sm:$0xff]  ;;  %v3921_v62 = vld [vmem:[%s9253_s6 + $0x1a0] sm:$0xff] }
 0x668   :  { %9428 = vst [vmem:[#allocation24_spill] sm:$0xff] %v9043_v44  ;;  %v3638_v57 = vmul.f32 %v6134_v14, %v8520_v2  ;;  %v9072_v14 = vpack.c.bf16 %v3915_v55, %v3911_v26  ;;  %v3917_v2 = vld [vmem:[%s9253_s6 + $0x180] sm:$0xff]  ;;  %v3930_v26 = vld [vmem:[%s9253_s6 + $0x1e8] sm:$0xff]  ;;  %v3928_v55 = vld [vmem:[%s9253_s6 + $0x1d8] sm:$0xff] }
 0x66a   :  { %v9066_v21 = vadd.f32 %v3639_v11, %v3638_v57  ;;  %5645 = vmatpush1.bf16.msra.mxu0 %v9031_v39  ;;  %5677 = vmatpush1.bf16.msra.mxu1 %v9033_v1  ;;  %9430 = vst [vmem:[#allocation26_spill] sm:$0xff] %v9072_v14  ;;  %v9082_v11 = vpack.c.bf16 %v3922_v4, %v3918_v58  ;;  %v3932_v58 = vld [vmem:[%s9253_s6 + $0x1f8] sm:$0xff] }
 0x66b   :  { %5647 = vmatprep.subr.bf16.mxu0 %v9043_v44  ;;  %5679 = vmatprep.subr.bf16.mxu1 %v9045_v13  ;;  %v9084_v57 = vpack.c.bf16 %v3924_v36, %v3920_v31  ;;  %v9107_v4 = vpack.c.bf16 %v3921_v62, %v3917_v2  ;;  %v9109_v31 = vpack.c.bf16 %v3923_v17, %v3919_v41  ;;  %v3925_v36 = vld [vmem:[%s9253_s6 + $0x1c0] sm:$0xff]  ;;  %v3927_v2 = vld [vmem:[%s9253_s6 + $0x1d0] sm:$0xff] }
 0x66c   :  { %6137 = vtanh.f32 %v9066_v21  ;;  %v9116_v13 = vpack.c.bf16 %v3930_v26, %v3926_v63  ;;  %v9118_v44 = vpack.c.bf16 %v3932_v58, %v3928_v55  ;;  %v3931_v62 = vld [vmem:[%s9253_s6 + $0x1f0] sm:$0xff]  ;;  %v6136_v63 = vpop.eup %6135 }
 0x66d   :  { %v9133_v17 = vpack.c.bf16 %v3931_v62, %v3927_v2 }
 0x66e   :  { %5649 = vmatpush1.bf16.msra.mxu0 %v9070_v24  ;;  %5681 = vmatpush1.bf16.msra.mxu1 %v9072_v14  ;;  %v3929_v14 = vld [vmem:[%s9253_s6 + $0x1e0] sm:$0xff] }
 0x66f   :  { %5651 = vmatprep.subr.bf16.mxu0 %v9082_v11  ;;  %5683 = vmatprep.subr.bf16.mxu1 %v9084_v57  ;;  %v9131_v41 = vpack.c.bf16 %v3929_v14, %v3925_v36  ;;  %v9433_v36 = vld [vmem:[#allocation17_spill] sm:$0xff] }
 0x672   :  { %5653 = vmatpush1.bf16.msra.mxu0 %v9107_v4  ;;  %5685 = vmatpush1.bf16.msra.mxu1 %v9109_v31 }
 0x673   :  { %5655 = vmatprep.subr.bf16.mxu0 %v9116_v13  ;;  %5687 = vmatprep.subr.bf16.mxu1 %v9118_v44 }
 0x676   :  { %v6138_v26 = vpop.eup %6137  ;;  %5657 = vmatpush1.bf16.msra.mxu0 %v9131_v41  ;;  %5689 = vmatpush1.bf16.msra.mxu1 %v9133_v17 }
 0x677   :  { %v3642_v55 = vmul.f32 %v6138_v26, %v6136_v63  ;;  %5691 = vmatprep.subr.bf16.mxu0 %v8551_v29  ;;  %5723 = vmatprep.subr.bf16.mxu1 %v8562_v61 }
 0x679   :  { %4746 = vst [vmem:[%s9257_s9 + $0x10] sm:$0xff] %v3642_v55  ;;  %3998 = vmatmul.mubr.f32.vlgmr.msra.gmra.mrb[18].mxu0 %v3642_v55  ;;  %4069 = vmatmul.mubr.f32.vlgmr.msra.gmra.mrb[18].mxu1 %v3642_v55 }
 0x67a   :  { %5693 = vmatpush1.bf16.msra.mxu0 %v8564_v18  ;;  %5725 = vmatpush1.bf16.msra.mxu1 %v8573_v25 }
 0x67b   :  { %5695 = vmatprep.subr.bf16.mxu0 %v8587_v33  ;;  %5727 = vmatprep.subr.bf16.mxu1 %v8598_v23 }
 0x67c   :  { %4265 = vmatprep.mubr.f32.mxu0 %v9334_v60  ;;  %4336 = vmatprep.mubr.f32.mxu1 %v9334_v60 }
 0x67e   :  { %5697 = vmatpush1.bf16.msra.mxu0 %v8600_v46  ;;  %5729 = vmatpush1.bf16.msra.mxu1 %v8609_v22 }
 0x67f   :  { %5699 = vmatprep.subr.bf16.mxu0 %v8623_v12  ;;  %5731 = vmatprep.subr.bf16.mxu1 %v8634_v7 }
 0x682   :  { %5701 = vmatpush1.bf16.msra.mxu0 %v8636_v3  ;;  %5733 = vmatpush1.bf16.msra.mxu1 %v8645_v47 }
 0x683   :  { %5703 = vmatprep.subr.bf16.mxu0 %v8659_v30  ;;  %5735 = vmatprep.subr.bf16.mxu1 %v8670_v59 }
 0x686   :  { %5705 = vmatpush1.bf16.msra.mxu0 %v8672_v5  ;;  %5737 = vmatpush1.bf16.msra.mxu1 %v8681_v54 }
 0x687   :  { %5707 = vmatprep.subr.bf16.mxu0 %v8695_v45  ;;  %5739 = vmatprep.subr.bf16.mxu1 %v8706_v40 }
 0x68a   :  { %5709 = vmatpush1.bf16.msra.mxu0 %v8708_v51  ;;  %5741 = vmatpush1.bf16.msra.mxu1 %v8717_v37 }
 0x68b   :  { %5711 = vmatprep.subr.bf16.mxu0 %v8731_v9  ;;  %5743 = vmatprep.subr.bf16.mxu1 %v8742_v53 }
 0x68e   :  { %5713 = vmatpush1.bf16.msra.mxu0 %v8744_v56  ;;  %5745 = vmatpush1.bf16.msra.mxu1 %v8753_v19 }
 0x68f   :  { %5715 = vmatprep.subr.bf16.mxu0 %v8767_v43  ;;  %5747 = vmatprep.subr.bf16.mxu1 %v8778_v8 }
 0x692   :  { %5717 = vmatpush1.bf16.msra.mxu0 %v8780_v34  ;;  %5749 = vmatpush1.bf16.msra.mxu1 %v8789_v42 }
 0x693   :  { %5719 = vmatprep.subr.bf16.mxu0 %v8803_v38  ;;  %5751 = vmatprep.subr.bf16.mxu1 %v8814_v15  ;;  %v9431_v38 = vld [vmem:[#allocation15_spill] sm:$0xff] }
 0x696   :  { %5721 = vmatpush1.bf16.msra.mxu0 %v8816_v35  ;;  %5753 = vmatpush1.bf16.msra.mxu1 %v8825_v27 }
 0x697   :  { %5755 = vmatprep.subr.bf16.mxu0 %v8839_v32  ;;  %5787 = vmatprep.subr.bf16.mxu1 %v8844_v28  ;;  %v9432_v32 = vld [vmem:[#allocation16_spill] sm:$0xff] }
 0x72c   :  { %v3783_v29 = vpop.f32.mrb[12].mxu0  ;;  %v3854_v61 = vpop.f32.mrb[12].mxu1 }
 0x72d   :  { %v5830_v18 = vadd.f32 %v3783_v29, %v7085_v16  ;;  %v3785_v25 = vpop.f32.mrb[13].mxu0  ;;  %v3856_v33 = vpop.f32.mrb[13].mxu1  ;;  %v5846_v3 = vadd.f32 %v3854_v61, %v7094_v0  ;;  %v9434_v29 = vld [vmem:[#allocation8_spill] sm:$0xff]  ;;  %v9435_v61 = vld [vmem:[#allocation9_spill] sm:$0xff] }
 0x72e   :  { %v5831_v23 = vadd.f32 %v3785_v25, %v7087_v20  ;;  %v5847_v12 = vadd.f32 %v3856_v33, %v7091_v52  ;;  %v9436_v25 = vld [vmem:[#allocation10_spill] sm:$0xff]  ;;  %v9437_v33 = vld [vmem:[#allocation11_spill] sm:$0xff] }
 0x72f   :  { %v4747_v46 = vmul.f32 -1.442695, %v5830_v18 }
 0x730   :  { %v4748_v22 = vmul.f32 -1.442695, %v5831_v23  ;;  %v4749_v7 = vmul.f32 -1.442695, %v5847_v12  ;;  %v9438_v23 = vld [vmem:[#allocation12_spill] sm:$0xff]  ;;  %v9441_v12 = vld [vmem:[#allocation18_spill] sm:$0xff] }
 0x731   :  { %6139 = vpow2.f32 %v4747_v46  ;;  %v9439_v46 = vld [vmem:[#allocation13_spill] sm:$0xff] }
 0x732   :  { %6141 = vpow2.f32 %v4748_v22  ;;  %v9440_v22 = vld [vmem:[#allocation14_spill] sm:$0xff] }
 0x733   :  { %6143 = vpow2.f32 %v4749_v7  ;;  %v9442_v7 = vld [vmem:[#allocation19_spill] sm:$0xff] }
 0x734   :  { %6145 = vtanh.f32 %v5846_v3  ;;  %v9443_v3 = vld [vmem:[#allocation20_spill] sm:$0xff] }
 0x73b   :  { %v6140_v47 = vpop.eup %6139 }
 0x73c   :  { %v6142_v30 = vpop.eup %6141  ;;  %v4082_v59 = vadd.f32 1.0, %v6140_v47  ;;  %v9444_v47 = vld [vmem:[#allocation21_spill] sm:$0xff] }
 0x73d   :  { %v4088_v5 = vadd.f32 1.0, %v6142_v30  ;;  %v6144_v54 = vpop.eup %6143  ;;  %v9445_v30 = vld [vmem:[#allocation22_spill] sm:$0xff] }
 0x73e   :  { %6147 = vrcp.f32 %v4082_v59  ;;  %v6146_v45 = vpop.eup %6145  ;;  %v4095_v9 = vadd.f32 1.0, %v6144_v54  ;;  %v9446_v54 = vld [vmem:[#allocation23_spill] sm:$0xff] }
 0x73f   :  { %6149 = vrcp.f32 %v4088_v5 }
 0x740   :  { %6151 = vrcp.f32 %v4095_v9 }
 0x748   :  { %v6148_v40 = vpop.eup %6147 }
 0x749   :  { %v6150_v51 = vpop.eup %6149  ;;  %v4099_v37 = vmul.f32 %v6148_v40, %v6146_v45 }
 0x74a   :  { %v4098_v53 = vmul.f32 %v6150_v51, %v8853_v49  ;;  %v6152_v49 = vpop.eup %6151 }
 0x74c   :  { %v9183_v56 = vadd.f32 %v4099_v37, %v4098_v53  ;;  %v3999_v19 = vpop.f32.mrb[18].mxu0  ;;  %v4070_v43 = vpop.f32.mrb[18].mxu1  ;;  %v9447_v53 = vld [vmem:[#allocation24_spill] sm:$0xff] }
 0x74d   :  { %v5852_v8 = vadd.f32 %v3999_v19, %v7100_v6  ;;  %v4001_v34 = vpop.f32.mrb[19].mxu0  ;;  %v4072_v42 = vpop.f32.mrb[19].mxu1  ;;  %v5868_v2 = vadd.f32 %v4070_v43, %v9433_v36 }
 0x74e   :  { %v5853_v15 = vadd.f32 %v4001_v34, %v9431_v38  ;;  %6153 = vtanh.f32 %v9183_v56  ;;  %v5869_v28 = vadd.f32 %v4072_v42, %v9432_v32 }
 0x74f   :  { %v4750_v35 = vmul.f32 -1.442695, %v5852_v8 }
 0x750   :  { %v4751_v27 = vmul.f32 -1.442695, %v5853_v15  ;;  %v4752_v58 = vmul.f32 -1.442695, %v5869_v28 }
 0x751   :  { %6155 = vpow2.f32 %v4750_v35 }
 0x752   :  { %6157 = vpow2.f32 %v4751_v27 }
 0x753   :  { %6159 = vpow2.f32 %v4752_v58 }
 0x754   :  { %6161 = vtanh.f32 %v5868_v2 }
 0x758   :  { %v6154_v14 = vpop.eup %6153 }
 0x759   :  { %v4102_v62 = vmul.f32 %v6154_v14, %v6152_v49 }
 0x75b   :  { %v6156_v63 = vpop.eup %6155  ;;  %4753 = vst [vmem:[%s9256_s8 + $0x30] sm:$0xff] %v4102_v62  ;;  %4266 = vmatmul.mubr.f32.vlgmr.msra.gmra.mrb[14].mxu0 %v4102_v62  ;;  %4337 = vmatmul.mubr.f32.vlgmr.msra.gmra.mrb[14].mxu1 %v4102_v62 }
 0x75c   :  { %v6158_v26 = vpop.eup %6157  ;;  %v4106_v55 = vadd.f32 1.0, %v6156_v63  ;;  %5757 = vmatpush1.bf16.msra.mxu0 %v9434_v29  ;;  %5789 = vmatpush1.bf16.msra.mxu1 %v9435_v61 }
 0x75d   :  { %v4112_v18 = vadd.f32 1.0, %v6158_v26  ;;  %5759 = vmatprep.subr.bf16.mxu0 %v9436_v25  ;;  %5791 = vmatprep.subr.bf16.mxu1 %v9437_v33  ;;  %v6160_v59 = vpop.eup %6159 }
 0x75e   :  { %6163 = vrcp.f32 %v4106_v55  ;;  %4481 = vmatprep.mubr.f32.mxu0 %v9334_v60  ;;  %4552 = vmatprep.mubr.f32.mxu1 %v9334_v60  ;;  %v6162_v5 = vpop.eup %6161  ;;  %v4119_v51 = vadd.f32 1.0, %v6160_v59 }
 0x75f   :  { %6165 = vrcp.f32 %v4112_v18 }
 0x760   :  { %5761 = vmatpush1.bf16.msra.mxu0 %v9438_v23  ;;  %5793 = vmatpush1.bf16.msra.mxu1 %v9439_v46  ;;  %6167 = vrcp.f32 %v4119_v51 }
 0x761   :  { %5763 = vmatprep.subr.bf16.mxu0 %v9440_v22  ;;  %5795 = vmatprep.subr.bf16.mxu1 %v9441_v12 }
 0x764   :  { %5765 = vmatpush1.bf16.msra.mxu0 %v9442_v7  ;;  %5797 = vmatpush1.bf16.msra.mxu1 %v9443_v3 }
 0x765   :  { %5767 = vmatprep.subr.bf16.mxu0 %v9444_v47  ;;  %5799 = vmatprep.subr.bf16.mxu1 %v9445_v30 }
 0x768   :  { %v6164_v60 = vpop.eup %6163  ;;  %5769 = vmatpush1.bf16.msra.mxu0 %v8995_v10  ;;  %5801 = vmatpush1.bf16.msra.mxu1 %v9446_v54  ;;  %v9448_v10 = vld [vmem:[#allocation25_spill] sm:$0xff] }
 0x769   :  { %v6166_v45 = vpop.eup %6165  ;;  %v4123_v40 = vmul.f32 %v6164_v60, %v6162_v5  ;;  %5771 = vmatprep.subr.bf16.mxu0 %v9007_v48  ;;  %5803 = vmatprep.subr.bf16.mxu1 %v9009_v50  ;;  %v9449_v48 = vld [vmem:[#allocation26_spill] sm:$0xff] }
 0x76a   :  { %v4122_v37 = vmul.f32 %v6166_v45, %v9066_v21  ;;  %v6168_v50 = vpop.eup %6167 }
 0x76c   :  { %v9212_v9 = vadd.f32 %v4123_v40, %v4122_v37  ;;  %5773 = vmatpush1.bf16.msra.mxu0 %v9031_v39  ;;  %5805 = vmatpush1.bf16.msra.mxu1 %v9033_v1 }
 0x76d   :  { %5775 = vmatprep.subr.bf16.mxu0 %v9447_v53  ;;  %5807 = vmatprep.subr.bf16.mxu1 %v9448_v10 }
 0x76e   :  { %6169 = vtanh.f32 %v9212_v9 }
 0x770   :  { %5777 = vmatpush1.bf16.msra.mxu0 %v9070_v24  ;;  %5809 = vmatpush1.bf16.msra.mxu1 %v9449_v48 }
 0x771   :  { %5779 = vmatprep.subr.bf16.mxu0 %v9082_v11  ;;  %5811 = vmatprep.subr.bf16.mxu1 %v9084_v57 }
 0x774   :  { %5781 = vmatpush1.bf16.msra.mxu0 %v9107_v4  ;;  %5813 = vmatpush1.bf16.msra.mxu1 %v9109_v31 }
 0x775   :  { %5783 = vmatprep.subr.bf16.mxu0 %v9116_v13  ;;  %5815 = vmatprep.subr.bf16.mxu1 %v9118_v44 }
 0x778   :  { %v6170_v1 = vpop.eup %6169  ;;  %5785 = vmatpush1.bf16.msra.mxu0 %v9131_v41  ;;  %5817 = vmatpush1.bf16.msra.mxu1 %v9133_v17 }
 0x779   :  { %v4126_v39 = vmul.f32 %v6170_v1, %v6168_v50 }
 0x77b   :  { %4754 = vst [vmem:[%s9257_s9 + $0x8] sm:$0xff] %v4126_v39  ;;  %4482 = vmatmul.mubr.f32.vlgmr.msra.gmra.mrb[16].mxu0 %v4126_v39  ;;  %4553 = vmatmul.mubr.f32.vlgmr.msra.gmra.mrb[16].mxu1 %v4126_v39 }
 0x82e   :  { %v4267_v21 = vpop.f32.mrb[14].mxu0  ;;  %v4338_v24 = vpop.f32.mrb[14].mxu1 }
 0x82f   :  { %v5832_v11 = vadd.f32 %v4267_v21, %v7085_v16  ;;  %v4269_v13 = vpop.f32.mrb[15].mxu0  ;;  %v4340_v57 = vpop.f32.mrb[15].mxu1  ;;  %v5848_v19 = vadd.f32 %v4338_v24, %v7094_v0 }
 0x830   :  { %v5833_v44 = vadd.f32 %v4269_v13, %v7087_v20  ;;  %v5849_v41 = vadd.f32 %v4340_v57, %v7091_v52 }
 0x831   :  { %v4755_v4 = vmul.f32 -1.442695, %v5832_v11 }
 0x832   :  { %v4756_v31 = vmul.f32 -1.442695, %v5833_v44  ;;  %v4757_v17 = vmul.f32 -1.442695, %v5849_v41 }
 0x833   :  { %6171 = vpow2.f32 %v4755_v4 }
 0x834   :  { %6173 = vpow2.f32 %v4756_v31 }
 0x835   :  { %6175 = vpow2.f32 %v4757_v17 }
 0x836   :  { %6177 = vtanh.f32 %v5848_v19 }
 0x83d   :  { %v6172_v43 = vpop.eup %6171 }
 0x83e   :  { %v6174_v8 = vpop.eup %6173  ;;  %v4566_v34 = vadd.f32 1.0, %v6172_v43 }
 0x83f   :  { %v4572_v42 = vadd.f32 1.0, %v6174_v8  ;;  %v6176_v16 = vpop.eup %6175 }
 0x840   :  { %6179 = vrcp.f32 %v4566_v34  ;;  %v6178_v15 = vpop.eup %6177  ;;  %v4579_v28 = vadd.f32 1.0, %v6176_v16 }
 0x841   :  { %6181 = vrcp.f32 %v4572_v42 }
 0x842   :  { %6183 = vrcp.f32 %v4579_v28 }
 0x84a   :  { %v6180_v20 = vpop.eup %6179 }
 0x84b   :  { %v6182_v35 = vpop.eup %6181  ;;  %v4583_v27 = vmul.f32 %v6180_v20, %v6178_v15 }
 0x84c   :  { %v4582_v49 = vmul.f32 %v6182_v35, %v9183_v56  ;;  %v6184_v61 = vpop.eup %6183 }
 0x84e   :  { %v4584_v52 = vadd.f32 %v4583_v27, %v4582_v49  ;;  %v4483_v14 = vpop.f32.mrb[16].mxu0  ;;  %v4554_v58 = vpop.f32.mrb[16].mxu1 }
 0x84f   :  { %v5850_v0 = vadd.f32 %v4483_v14, %v7100_v6  ;;  %v4485_v2 = vpop.f32.mrb[17].mxu0  ;;  %v4556_v62 = vpop.f32.mrb[17].mxu1  ;;  %v5866_v33 = vadd.f32 %v4554_v58, %v9433_v36 }
 0x850   :  { %6185 = vtanh.f32 %v4584_v52  ;;  %v5851_v63 = vadd.f32 %v4485_v2, %v9431_v38  ;;  %v5867_v29 = vadd.f32 %v4556_v62, %v9432_v32 }
 0x851   :  { %v4758_v26 = vmul.f32 -1.442695, %v5850_v0 }
 0x852   :  { %v4759_v55 = vmul.f32 -1.442695, %v5851_v63  ;;  %v4760_v56 = vmul.f32 -1.442695, %v5867_v29 }
 0x853   :  { %6187 = vpow2.f32 %v4758_v26 }
 0x854   :  { %6189 = vpow2.f32 %v4759_v55 }
 0x855   :  { %6191 = vpow2.f32 %v4760_v56 }
 0x856   :  { %6193 = vtanh.f32 %v5866_v33 }
 0x85a   :  { %v6186_v18 = vpop.eup %6185 }
 0x85b   :  { %v4586_v25 = vmul.f32 %v6186_v18, %v6184_v61 }
 0x85d   :  { %v6188_v23 = vpop.eup %6187  ;;  %4761 = vst [vmem:[%s9256_s8 + $0x38] sm:$0xff] %v4586_v25 }
 0x85e   :  { %v6190_v6 = vpop.eup %6189  ;;  %v4590_v46 = vadd.f32 1.0, %v6188_v23 }
 0x85f   :  { %v4596_v38 = vadd.f32 1.0, %v6190_v6  ;;  %v6192_v22 = vpop.eup %6191 }
 0x860   :  { %6195 = vrcp.f32 %v4590_v46  ;;  %v6194_v32 = vpop.eup %6193  ;;  %v4603_v47 = vadd.f32 1.0, %v6192_v22 }
 0x861   :  { %6197 = vrcp.f32 %v4596_v38 }
 0x862   :  { %6199 = vrcp.f32 %v4603_v47 }
 0x86a   :  { %v6196_v12 = vpop.eup %6195 }
 0x86b   :  { %v6198_v7 = vpop.eup %6197  ;;  %v4607_v3 = vmul.f32 %v6196_v12, %v6194_v32 }
 0x86c   :  { %v4606_v36 = vmul.f32 %v6198_v7, %v9212_v9  ;;  %v6200_v59 = vpop.eup %6199 }
 0x86e   :  { %v4608_v30 = vadd.f32 %v4607_v3, %v4606_v36 }
 0x870   :  { %6201 = vtanh.f32 %v4608_v30 }
 0x87a   :  { %v6202_v5 = vpop.eup %6201 }
 0x87b   :  { %v4610_v60 = vmul.f32 %v6202_v5, %v6200_v59 }
 0x87d   :  { %4613 = vst [vmem:[%s9257_s9] sm:$0xff] %v4610_v60 }

</bundles_post_ra>
